<compile_context>
chip_gen: v7x
topology: tpu7x:2x2x1
jax: 0.10.0
libtpu: 0.0.40
codegen_flags: <defaults>
</compile_context>

<pallas_src>
import functools

import jax
import jax.numpy as jnp
from jax.experimental import pallas as pl
from jax.experimental.pallas import tpu as pltpu


def _gmf_kernel(eu_ref, ei_ref, w_ref, b_ref, out_ref):
    # eu_ref, ei_ref: (TB, F)  gathered user/item embedding tiles (VMEM)
    # w_ref:          (1, F)   predict_layer weight row (VMEM, same block every step -> resident)
    # b_ref:          (1,)     predict_layer bias (SMEM scalar)
    # out_ref:        (TB, 1)
    prod = eu_ref[...] * ei_ref[...]                       # VPU: GMF elementwise product
    weighted = prod * w_ref[...]                           # VPU: broadcast (1,F) over batch
    s = jnp.sum(weighted, axis=-1, keepdims=True)          # XLU lane reduction -> (TB, 1)
    out_ref[...] = s + b_ref[0]                            # scalar bias from SMEM


@functools.partial(jax.jit, static_argnames=("block_b",))
def gmf_forward(user, item, embed_user, embed_item, w, b, *, block_b=2048):
    """Full GMF forward: embedding gather (XLA glue), fused mul + reduce + bias in Pallas."""
    B = user.shape[0]
    F = embed_user.shape[1]

    # Cap the batch tile so double-buffered inputs (2 inputs x 2 buffers x TB x F x 4B)
    # stay within a conservative scoped-VMEM budget on all generations.
    vmem_budget = 8 * 1024 * 1024
    max_bb = vmem_budget // (2 * 2 * F * 4)
    block_b = max(8, (min(block_b, max_bb) // 8) * 8)

    num_tiles = pl.cdiv(B, block_b)
    b_padded = num_tiles * block_b

    # Pad the (cheap) index vectors so gathered tensors are tile-aligned;
    # padded rows gather row 0 and are sliced off at the end.
    if b_padded != B:
        pad = b_padded - B
        user = jnp.pad(user, (0, pad))
        item = jnp.pad(item, (0, pad))

    # Embedding lookups (glue; equivalent to nn.Embedding forward).
    eu = jnp.take(embed_user, user, axis=0)   # (Bp, F)
    ei = jnp.take(embed_item, item, axis=0)   # (Bp, F)

    w2 = w.reshape(1, F).astype(jnp.float32)  # (1, F) - broadcast row, no transpose needed
    b1 = b.reshape(1).astype(jnp.float32)     # (1,)   - SMEM scalar

    out = pl.pallas_call(
        _gmf_kernel,
        out_shape=jax.ShapeDtypeStruct((b_padded, 1), jnp.float32),
        grid_spec=pltpu.PrefetchScalarGridSpec(
            num_scalar_prefetch=0,
            grid=(num_tiles,),
            in_specs=[
                pl.BlockSpec((block_b, F), lambda i: (i, 0)),       # user embedding tile
                pl.BlockSpec((block_b, F), lambda i: (i, 0)),       # item embedding tile
                pl.BlockSpec((1, F), lambda i: (0, 0)),             # weight row (resident)
                pl.BlockSpec(memory_space=pltpu.MemorySpace.SMEM),  # bias scalar
            ],
            out_specs=pl.BlockSpec((block_b, 1), lambda i: (i, 0)),
        ),
        compiler_params=pltpu.CompilerParams(
            dimension_semantics=("parallel",)),
    )(eu, ei, w2, b1)

    return out.reshape(-1)[:B]                # prediction.view(-1)


def init_params(key, user_num, item_num, factor_num):
    k1, k2, k3, k4 = jax.random.split(key, 4)
    # nn.init.normal_(std=0.01) for both embedding tables
    embed_user = 0.01 * jax.random.normal(k1, (user_num, factor_num), jnp.float32)
    embed_item = 0.01 * jax.random.normal(k2, (item_num, factor_num), jnp.float32)
    # nn.Linear default init: U(-1/sqrt(fan_in), 1/sqrt(fan_in))
    bound = 1.0 / (factor_num ** 0.5)
    w = jax.random.uniform(k3, (1, factor_num), jnp.float32, -bound, bound)
    b = jax.random.uniform(k4, (1,), jnp.float32, -bound, bound)
    return embed_user, embed_item, w, b


if __name__ == "__main__":
    user_num, item_num, factor_num = 96, 160, 32
    batch = 1000   # deliberately NOT a multiple of the tile - exercises cdiv + padding

    key = jax.random.PRNGKey(0)
    kp, ku, ki = jax.random.split(key, 3)

    embed_user, embed_item, w, b = init_params(kp, user_num, item_num, factor_num)
    user = jax.random.randint(ku, (batch,), 0, user_num, dtype=jnp.int32)
    item = jax.random.randint(ki, (batch,), 0, item_num, dtype=jnp.int32)

    pred = gmf_forward(user, item, embed_user, embed_item, w, b)
    pred = jax.block_until_ready(pred)

    # Pure-JAX reference check
    ref = (jnp.take(embed_user, user, 0) * jnp.take(embed_item, item, 0)) @ w.reshape(-1) + b[0]
    assert pred.shape == (batch,)
    assert jnp.allclose(pred, ref, atol=1e-5), (pred, ref)

    print("KERNEL_OK")
</pallas_src>

<mosaic_0001>
module attributes {stable_mosaic.version = 11 : i64} {
  func.func @_gmf_kernel(%arg0: i32, %arg1: memref<2048x32xf32, #tpu.memory_space<vmem>>, %arg2: memref<2048x32xf32, #tpu.memory_space<vmem>>, %arg3: memref<1x32xf32, #tpu.memory_space<vmem>>, %arg4: memref<1xf32, #tpu.memory_space<smem>>, %arg5: memref<2048x1xf32, #tpu.memory_space<vmem>>) attributes {dimension_semantics = [#tpu.dimension_semantics<parallel>], iteration_bounds = array<i64: 1>, scalar_prefetch = 0 : i64, scratch_operands = 0 : i64, tpu.core_type = #tpu.core_type<tc>, window_params = [{transform_indices = @transform_0, window_bounds = array<i64: 2048, 32>}, {transform_indices = @transform_1, window_bounds = array<i64: 2048, 32>}, {pipeline_mode = #tpu.pipeline_mode<synchronous>, transform_indices = @transform_2, window_bounds = array<i64: 1, 32>}, {transform_indices = @transform_3, window_bounds = array<i64: 1>}, {transform_indices = @transform_4, window_bounds = array<i64: 2048, 1>}]} {
    %c0 = arith.constant 0 : index
    %c0_0 = arith.constant 0 : index
    %0 = vector.load %arg1[%c0, %c0_0] : memref<2048x32xf32, #tpu.memory_space<vmem>>, vector<2048x32xf32>
    %c0_1 = arith.constant 0 : index
    %c0_2 = arith.constant 0 : index
    %1 = vector.load %arg2[%c0_1, %c0_2] : memref<2048x32xf32, #tpu.memory_space<vmem>>, vector<2048x32xf32>
    %2 = arith.mulf %0, %1 : vector<2048x32xf32>
    %c0_3 = arith.constant 0 : index
    %c0_4 = arith.constant 0 : index
    %3 = vector.load %arg3[%c0_3, %c0_4] : memref<1x32xf32, #tpu.memory_space<vmem>>, vector<1x32xf32>
    %4 = vector.broadcast %3 : vector<1x32xf32> to vector<2048x32xf32>
    %5 = arith.mulf %2, %4 : vector<2048x32xf32>
    %cst = arith.constant dense<0.000000e+00> : vector<2048xf32>
    %6 = vector.multi_reduction <add>, %5, %cst [1] : vector<2048x32xf32> to vector<2048xf32>
    %7 = vector.shape_cast %6 : vector<2048xf32> to vector<2048x1xf32>
    %c0_5 = arith.constant 0 : index
    %8 = memref.load %arg4[%c0_5] : memref<1xf32, #tpu.memory_space<smem>>
    %9 = vector.broadcast %8 : f32 to vector<2048x1xf32>
    %10 = arith.addf %7, %9 : vector<2048x1xf32>
    %c0_6 = arith.constant 0 : index
    %c0_7 = arith.constant 0 : index
    %11 = vector.load %arg5[%c0_6, %c0_7] : memref<2048x1xf32, #tpu.memory_space<vmem>>, vector<2048x1xf32>
    tpu.vector_store %arg5[%c0_6, %c0_7], %10 {strides = array<i32>} : memref<2048x1xf32, #tpu.memory_space<vmem>>, vector<2048x1xf32>,
    return
  }
  func.func @transform_0(%arg0: i32) -> (i32, i32) {
    %c0_i32 = arith.constant 0 : i32
    %c0_i32_0 = arith.constant 0 : i32
    return %arg0, %c0_i32 : i32, i32
  }
  func.func @transform_1(%arg0: i32) -> (i32, i32) {
    %c0_i32 = arith.constant 0 : i32
    %c0_i32_0 = arith.constant 0 : i32
    return %arg0, %c0_i32 : i32, i32
  }
  func.func @transform_2(%arg0: i32) -> (i32, i32) {
    %c0_i32 = arith.constant 0 : i32
    %c0_i32_0 = arith.constant 0 : i32
    %c0_i32_1 = arith.constant 0 : i32
    return %c0_i32, %c0_i32_0 : i32, i32
  }
  func.func @transform_3(%arg0: i32) -> i32 {
    %c0_i32 = arith.constant 0 : i32
    %c0_i32_0 = arith.constant 0 : i32
    return %c0_i32 : i32
  }
  func.func @transform_4(%arg0: i32) -> (i32, i32) {
    %c0_i32 = arith.constant 0 : i32
    %c0_i32_0 = arith.constant 0 : i32
    return %arg0, %c0_i32 : i32, i32
  }
}

</mosaic_0001>

<bundles_post_ra>
// kernel: gmf_forward.1
= control target key start
LH: loop header
LB: loop body
LE: loop exit
PB: predicated region body
PF: predicated region fallthrough
CT: control target
= control target key end

     0   :  { %vm1049_vm0 = vcmask 261120   ;;  %vm2076_vm1 = vcmask 7168   ;;  %s5721_s0 = inlined_call_operand.vmem [shape: f32[2048,32], index: 0, kind: input, shape index: {}]   ;;  %s5722_s1 = inlined_call_operand.vmem [shape: f32[2048,32], index: 1, kind: input, shape index: {}]   ;;  %s5723_s2 = inlined_call_operand.vmem [shape: f32[1,32], index: 2, kind: input, shape index: {}]   ;;  %s5724_s3 = inlined_call_operand.<no memory space> [shape: f32[1], index: 3, kind: input, shape index: {}]   ;;  %s5725_s4 = inlined_call_operand.vmem [shape: f32[2048,1], index: 4, kind: output, shape index: {}]  }
   0x1   :  { %v20_v0 = vld [vmem:[%s5721_s0 + $0x10] sm:$0xff]  ;;  %v2376_v2 = vld [vmem:[%s5723_s2] ss:$0 sm:$0xff]  ;;  %v21_v6 = vld [vmem:[%s5721_s0 + $0x18] sm:$0xff] }
   0x2   :  { %v276_v1 = vld [vmem:[%s5722_s1 + $0x10] sm:$0xff]  ;;  %v18_v4 = vld [vmem:[%s5721_s0] sm:$0xff]  ;;  %v277_v8 = vld [vmem:[%s5722_s1 + $0x18] sm:$0xff] }
   0x3   :  { %v532_v3 = vmul.f32 %v276_v1, %v20_v0  ;;  %v274_v5 = vld [vmem:[%s5722_s1] sm:$0xff]  ;;  %v19_v9 = vld [vmem:[%s5721_s0 + $0x8] sm:$0xff]  ;;  %v533_v12 = vmul.f32 %v277_v8, %v21_v6  ;;  %v25_v20 = vld [vmem:[%s5721_s0 + $0x38] sm:$0xff] }
   0x4   :  { %v530_v7 = vmul.f32 %v274_v5, %v18_v4  ;;  %v275_v10 = vld [vmem:[%s5722_s1 + $0x8] sm:$0xff]  ;;  %v22_v16 = vld [vmem:[%s5721_s0 + $0x20] sm:$0xff]  ;;  %v281_v21 = vld [vmem:[%s5722_s1 + $0x38] sm:$0xff] }
   0x5   :  { %v795_v11 = vmul.f32 %v2376_v2, %v532_v3  ;;  %v531_v13 = vmul.f32 %v275_v10, %v19_v9  ;;  %v23_v14 = vld [vmem:[%s5721_s0 + $0x28] sm:$0xff]  ;;  %v278_v19 = vld [vmem:[%s5722_s1 + $0x20] sm:$0xff]  ;;  %v796_v23 = vmul.f32 %v2376_v2, %v533_v12  ;;  %v24_v26 = vld [vmem:[%s5721_s0 + $0x30] sm:$0xff]  ;;  %v537_v31 = vmul.f32 %v281_v21, %v25_v20 }
   0x6   :  { %v279_v15 = vld [vmem:[%s5722_s1 + $0x28] sm:$0xff]  ;;  %v793_v17 = vmul.f32 %v2376_v2, %v530_v7  ;;  %v534_v25 = vmul.f32 %v278_v19, %v22_v16  ;;  %v280_v27 = vld [vmem:[%s5722_s1 + $0x30] sm:$0xff]  ;;  %v26_v37 = vld [vmem:[%s5721_s0 + $0x40] sm:$0xff] }
   0x7   :  { %v535_v18 = vmul.f32 %v279_v15, %v23_v14  ;;  %v1056_v22 = vsel %vm1049_vm0, %v795_v11, 0.0  ;;  %v794_v24 = vmul.f32 %v2376_v2, %v531_v13  ;;  %v1059_v29 = vsel %vm1049_vm0, %v796_v23, 0.0  ;;  %v27_v35 = vld [vmem:[%s5721_s0 + $0x48] sm:$0xff]  ;;  %v282_v38 = vld [vmem:[%s5722_s1 + $0x40] sm:$0xff]  ;;  %v29_v45 = vld [vmem:[%s5721_s0 + $0x58] sm:$0xff] }
   0x8   :  { %1057 = vadd.xlane.f32.xlu1 %v1056_v22  ;;  %v1050_v28 = vsel %vm1049_vm0, %v793_v17, 0.0  ;;  %v797_v33 = vmul.f32 %v2376_v2, %v534_v25  ;;  %v536_v34 = vmul.f32 %v280_v27, %v24_v26  ;;  %v283_v36 = vld [vmem:[%s5722_s1 + $0x48] sm:$0xff]  ;;  %v800_v40 = vmul.f32 %v2376_v2, %v537_v31  ;;  %v285_v46 = vld [vmem:[%s5722_s1 + $0x58] sm:$0xff]  ;;  %v28_v47 = vld [vmem:[%s5721_s0 + $0x50] sm:$0xff] }
   0x9   :  { %1051 = vadd.xlane.f32.xlu0 %v1050_v28  ;;  %v798_v30 = vmul.f32 %v2376_v2, %v535_v18  ;;  %v1053_v32 = vsel %vm1049_vm0, %v794_v24, 0.0  ;;  %v539_v41 = vmul.f32 %v283_v36, %v27_v35  ;;  %v538_v44 = vmul.f32 %v282_v38, %v26_v37  ;;  %v284_v48 = vld [vmem:[%s5722_s1 + $0x50] sm:$0xff]  ;;  %v31_v55 = vld [vmem:[%s5721_s0 + $0x68] sm:$0xff]  ;;  %v30_v57 = vld [vmem:[%s5721_s0 + $0x60] sm:$0xff] }
   0xa   :  { %v1062_v42 = vsel %vm1049_vm0, %v797_v33, 0.0  ;;  %v799_v43 = vmul.f32 %v2376_v2, %v536_v34  ;;  %v1071_v49 = vsel %vm1049_vm0, %v800_v40, 0.0  ;;  %v541_v51 = vmul.f32 %v285_v46, %v29_v45  ;;  %v287_v56 = vld [vmem:[%s5722_s1 + $0x68] sm:$0xff]  ;;  %v286_v58 = vld [vmem:[%s5722_s1 + $0x60] sm:$0xff]  ;;  %v33_v1 = vld [vmem:[%s5721_s0 + $0x78] sm:$0xff] }
   0xb   :  { %v1065_v39 = vsel %vm1049_vm0, %v798_v30, 0.0  ;;  %v802_v50 = vmul.f32 %v2376_v2, %v539_v41  ;;  %v801_v53 = vmul.f32 %v2376_v2, %v538_v44  ;;  %v540_v54 = vmul.f32 %v284_v48, %v28_v47  ;;  %v289_v3 = vld [vmem:[%s5722_s1 + $0x78] sm:$0xff]  ;;  %v32_v4 = vld [vmem:[%s5721_s0 + $0x70] sm:$0xff]  ;;  %v35_v12 = vld [vmem:[%s5721_s0 + $0x88] sm:$0xff] }
   0xc   :  { %1060 = vadd.xlane.f32.xlu1 %v1059_v29  ;;  %v1068_v52 = vsel %vm1049_vm0, %v799_v43, 0.0  ;;  %v804_v60 = vmul.f32 %v2376_v2, %v541_v51  ;;  %v543_v61 = vmul.f32 %v287_v56, %v31_v55  ;;  %v542_v0 = vmul.f32 %v286_v58, %v30_v57  ;;  %v288_v5 = vld [vmem:[%s5722_s1 + $0x70] sm:$0xff]  ;;  %v291_v13 = vld [vmem:[%s5722_s1 + $0x88] sm:$0xff]  ;;  %v34_v14 = vld [vmem:[%s5721_s0 + $0x80] sm:$0xff] }
   0xd   :  { %1054 = vadd.xlane.f32.xlu0 %v1053_v32  ;;  %v1077_v59 = vsel %vm1049_vm0, %v802_v50, 0.0  ;;  %v1074_v62 = vsel %vm1049_vm0, %v801_v53, 0.0  ;;  %v803_v63 = vmul.f32 %v2376_v2, %v540_v54  ;;  %v545_v8 = vmul.f32 %v289_v3, %v33_v1  ;;  %v290_v15 = vld [vmem:[%s5722_s1 + $0x80] sm:$0xff]  ;;  %v37_v22 = vld [vmem:[%s5721_s0 + $0x98] sm:$0xff]  ;;  %v36_v24 = vld [vmem:[%s5721_s0 + $0x90] sm:$0xff] }
   0xe   :  { %v1083_v6 = vsel %vm1049_vm0, %v804_v60, 0.0  ;;  %v806_v7 = vmul.f32 %v2376_v2, %v543_v61  ;;  %v805_v10 = vmul.f32 %v2376_v2, %v542_v0  ;;  %v544_v11 = vmul.f32 %v288_v5, %v32_v4  ;;  %v293_v23 = vld [vmem:[%s5722_s1 + $0x98] sm:$0xff]  ;;  %v292_v25 = vld [vmem:[%s5722_s1 + $0x90] sm:$0xff]  ;;  %v39_v32 = vld [vmem:[%s5721_s0 + $0xa8] sm:$0xff] }
   0xf   :  { %v1080_v9 = vsel %vm1049_vm0, %v803_v63, 0.0  ;;  %v808_v17 = vmul.f32 %v2376_v2, %v545_v8  ;;  %v547_v18 = vmul.f32 %v291_v13, %v35_v12  ;;  %v546_v21 = vmul.f32 %v290_v15, %v34_v14  ;;  %v295_v33 = vld [vmem:[%s5722_s1 + $0xa8] sm:$0xff]  ;;  %v38_v34 = vld [vmem:[%s5721_s0 + $0xa0] sm:$0xff]  ;;  %v297_v43 = vld [vmem:[%s5722_s1 + $0xb8] sm:$0xff] }
  0x10   :  { %1066 = vadd.xlane.f32.xlu1 %v1065_v39  ;;  %v1089_v16 = vsel %vm1049_vm0, %v806_v7, 0.0  ;;  %v1086_v19 = vsel %vm1049_vm0, %v805_v10, 0.0  ;;  %v807_v20 = vmul.f32 %v2376_v2, %v544_v11  ;;  %v549_v28 = vmul.f32 %v293_v23, %v37_v22  ;;  %v294_v35 = vld [vmem:[%s5722_s1 + $0xa0] sm:$0xff]  ;;  %v40_v44 = vld [vmem:[%s5721_s0 + $0xb0] sm:$0xff]  ;;  %v299_v53 = vld [vmem:[%s5722_s1 + $0xc8] sm:$0xff] }
  0x11   :  { %1063 = vadd.xlane.f32.xlu0 %v1062_v42  ;;  %v1095_v26 = vsel %vm1049_vm0, %v808_v17, 0.0  ;;  %v810_v27 = vmul.f32 %v2376_v2, %v547_v18  ;;  %v809_v30 = vmul.f32 %v2376_v2, %v546_v21  ;;  %v548_v31 = vmul.f32 %v292_v25, %v36_v24  ;;  %v41_v42 = vld [vmem:[%s5721_s0 + $0xb8] sm:$0xff]  ;;  %v296_v45 = vld [vmem:[%s5722_s1 + $0xb0] sm:$0xff]  ;;  %v42_v54 = vld [vmem:[%s5721_s0 + $0xc0] sm:$0xff] }
  0x12   :  { %v1092_v29 = vsel %vm1049_vm0, %v807_v20, 0.0  ;;  %v812_v37 = vmul.f32 %v2376_v2, %v549_v28  ;;  %v551_v38 = vmul.f32 %v295_v33, %v39_v32  ;;  %v550_v41 = vmul.f32 %v294_v35, %v38_v34  ;;  %v298_v55 = vld [vmem:[%s5722_s1 + $0xc0] sm:$0xff]  ;;  %v301_v63 = vld [vmem:[%s5722_s1 + $0xd8] sm:$0xff]  ;;  %v44_v0 = vld [vmem:[%s5721_s0 + $0xd0] sm:$0xff] }
  0x13   :  { %v1101_v36 = vsel %vm1049_vm0, %v810_v27, 0.0  ;;  %v1098_v39 = vsel %vm1049_vm0, %v809_v30, 0.0  ;;  %v811_v40 = vmul.f32 %v2376_v2, %v548_v31  ;;  %v553_v48 = vmul.f32 %v297_v43, %v41_v42  ;;  %v300_v1 = vld [vmem:[%s5722_s1 + $0xd0] sm:$0xff]  ;;  %v303_v10 = vld [vmem:[%s5722_s1 + $0xe8] sm:$0xff]  ;;  %v46_v11 = vld [vmem:[%s5721_s0 + $0xe0] sm:$0xff] }
  0x14   :  { %1072 = vadd.xlane.f32.xlu1 %v1071_v49  ;;  %v1107_v46 = vsel %vm1049_vm0, %v812_v37, 0.0  ;;  %v814_v47 = vmul.f32 %v2376_v2, %v551_v38  ;;  %v813_v50 = vmul.f32 %v2376_v2, %v550_v41  ;;  %v552_v51 = vmul.f32 %v296_v45, %v40_v44  ;;  %v302_v12 = vld [vmem:[%s5722_s1 + $0xe0] sm:$0xff]  ;;  %v305_v20 = vld [vmem:[%s5722_s1 + $0xf8] sm:$0xff]  ;;  %v48_v21 = vld [vmem:[%s5721_s0 + $0xf0] sm:$0xff] }
  0x15   :  { %1069 = vadd.xlane.f32.xlu0 %v1068_v52  ;;  %v1104_v49 = vsel %vm1049_vm0, %v811_v40, 0.0  ;;  %v43_v52 = vld [vmem:[%s5721_s0 + $0xc8] sm:$0xff]  ;;  %v816_v57 = vmul.f32 %v2376_v2, %v553_v48  ;;  %v554_v61 = vmul.f32 %v298_v55, %v42_v54  ;;  %v556_v8 = vmul.f32 %v300_v1, %v44_v0  ;;  %v304_v22 = vld [vmem:[%s5722_s1 + $0xf0] sm:$0xff]  ;;  %v50_v31 = vld [vmem:[%s5721_s0 + $0x100] sm:$0xff] }
  0x16   :  { %v1113_v56 = vsel %vm1049_vm0, %v814_v47, 0.0  ;;  %v555_v58 = vmul.f32 %v299_v53, %v43_v52  ;;  %v815_v60 = vmul.f32 %v2376_v2, %v552_v51  ;;  %v558_v18 = vmul.f32 %v302_v12, %v46_v11  ;;  %v307_v30 = vld [vmem:[%s5722_s1 + $0x108] sm:$0xff]  ;;  %v306_v32 = vld [vmem:[%s5722_s1 + $0x100] sm:$0xff]  ;;  %v309_v40 = vld [vmem:[%s5722_s1 + $0x118] sm:$0xff] }
  0x17   :  { %v1119_v3 = vsel %vm1049_vm0, %v816_v57, 0.0  ;;  %v817_v7 = vmul.f32 %v2376_v2, %v554_v61  ;;  %v819_v17 = vmul.f32 %v2376_v2, %v556_v8  ;;  %v560_v28 = vmul.f32 %v304_v22, %v48_v21  ;;  %v52_v41 = vld [vmem:[%s5721_s0 + $0x110] sm:$0xff]  ;;  %v54_v51 = vld [vmem:[%s5721_s0 + $0x120] sm:$0xff] }
  0x18   :  { %1078 = vadd.xlane.f32.xlu1 %v1077_v59  ;;  %v1110_v59 = vsel %vm1049_vm0, %v813_v50, 0.0  ;;  %v818_v4 = vmul.f32 %v2376_v2, %v555_v58  ;;  %v821_v27 = vmul.f32 %v2376_v2, %v558_v18  ;;  %v562_v38 = vmul.f32 %v306_v32, %v50_v31  ;;  %v308_v42 = vld [vmem:[%s5722_s1 + $0x110] sm:$0xff]  ;;  %v311_v50 = vld [vmem:[%s5722_s1 + $0x128] sm:$0xff]  ;;  %v310_v52 = vld [vmem:[%s5722_s1 + $0x120] sm:$0xff] }
  0x19   :  { %1075 = vadd.xlane.f32.xlu0 %v1074_v62  ;;  %v45_v62 = vld [vmem:[%s5721_s0 + $0xd8] sm:$0xff]  ;;  %v823_v37 = vmul.f32 %v2376_v2, %v560_v28  ;;  %v564_v48 = vmul.f32 %v308_v42, %v52_v41  ;;  %v566_v58 = vmul.f32 %v310_v52, %v54_v51  ;;  %v56_v61 = vld [vmem:[%s5721_s0 + $0x130] sm:$0xff]  ;;  %v58_v8 = vld [vmem:[%s5721_s0 + $0x140] sm:$0xff] }
  0x1a   :  { %v557_v5 = vmul.f32 %v301_v63, %v45_v62  ;;  %v1125_v13 = vsel %vm1049_vm0, %v818_v4, 0.0  ;;  %v825_v47 = vmul.f32 %v2376_v2, %v562_v38  ;;  %v312_v62 = vld [vmem:[%s5722_s1 + $0x130] sm:$0xff]  ;;  %v62_v28 = vld [vmem:[%s5721_s0 + $0x160] sm:$0xff] }
  0x1b   :  { %v827_v57 = vmul.f32 %v2376_v2, %v564_v48  ;;  %v829_v4 = vmul.f32 %v2376_v2, %v566_v58  ;;  %v60_v18 = vld [vmem:[%s5721_s0 + $0x150] sm:$0xff]  ;;  %v66_v48 = vld [vmem:[%s5721_s0 + $0x180] sm:$0xff] }
  0x1c   :  { %1084 = vadd.xlane.f32.xlu1 %v1083_v6  ;;  %v1116_v6 = vsel %vm1049_vm0, %v815_v60, 0.0  ;;  %v820_v14 = vmul.f32 %v2376_v2, %v557_v5  ;;  %v313_v60 = vld [vmem:[%s5722_s1 + $0x138] sm:$0xff]  ;;  %v568_v5 = vmul.f32 %v312_v62, %v56_v61  ;;  %v64_v38 = vld [vmem:[%s5721_s0 + $0x170] sm:$0xff] }
  0x1d   :  { %1081 = vadd.xlane.f32.xlu0 %v1080_v9  ;;  %v47_v9 = vld [vmem:[%s5721_s0 + $0xe8] sm:$0xff]  ;;  %v68_v58 = vld [vmem:[%s5721_s0 + $0x190] sm:$0xff] }
  0x1e   :  { %v559_v15 = vmul.f32 %v303_v10, %v47_v9  ;;  %v1131_v23 = vsel %vm1049_vm0, %v820_v14, 0.0  ;;  %v314_v9 = vld [vmem:[%s5722_s1 + $0x140] sm:$0xff]  ;;  %v831_v14 = vmul.f32 %v2376_v2, %v568_v5 }
  0x1f   :  { %v70_v5 = vld [vmem:[%s5721_s0 + $0x1a0] sm:$0xff] }
  0x20   :  { %1090 = vadd.xlane.f32.xlu1 %v1089_v16  ;;  %v1122_v16 = vsel %vm1049_vm0, %v817_v7, 0.0  ;;  %v822_v24 = vmul.f32 %v2376_v2, %v559_v15  ;;  %v315_v7 = vld [vmem:[%s5722_s1 + $0x148] sm:$0xff]  ;;  %v570_v15 = vmul.f32 %v314_v9, %v58_v8 }
  0x21   :  { %1087 = vadd.xlane.f32.xlu0 %v1086_v19  ;;  %v49_v19 = vld [vmem:[%s5721_s0 + $0xf8] sm:$0xff] }
  0x22   :  { %v561_v25 = vmul.f32 %v305_v20, %v49_v19  ;;  %v1137_v33 = vsel %vm1049_vm0, %v822_v24, 0.0  ;;  %v316_v19 = vld [vmem:[%s5722_s1 + $0x150] sm:$0xff]  ;;  %v833_v24 = vmul.f32 %v2376_v2, %v570_v15 }
  0x23   :  { %v72_v15 = vld [vmem:[%s5721_s0 + $0x1b0] sm:$0xff] }
  0x24   :  { %1096 = vadd.xlane.f32.xlu1 %v1095_v26  ;;  %v1128_v26 = vsel %vm1049_vm0, %v819_v17, 0.0  ;;  %v824_v34 = vmul.f32 %v2376_v2, %v561_v25  ;;  %v317_v17 = vld [vmem:[%s5722_s1 + $0x158] sm:$0xff]  ;;  %v572_v25 = vmul.f32 %v316_v19, %v60_v18 }
  0x25   :  { %1093 = vadd.xlane.f32.xlu0 %v1092_v29  ;;  %v51_v29 = vld [vmem:[%s5721_s0 + $0x108] sm:$0xff] }
  0x26   :  { %v563_v35 = vmul.f32 %v307_v30, %v51_v29  ;;  %v1143_v43 = vsel %vm1049_vm0, %v824_v34, 0.0  ;;  %v318_v29 = vld [vmem:[%s5722_s1 + $0x160] sm:$0xff]  ;;  %v835_v34 = vmul.f32 %v2376_v2, %v572_v25 }
  0x27   :  { %v74_v25 = vld [vmem:[%s5721_s0 + $0x1c0] sm:$0xff] }
  0x28   :  { %1102 = vadd.xlane.f32.xlu1 %v1101_v36  ;;  %v1134_v36 = vsel %vm1049_vm0, %v821_v27, 0.0  ;;  %v826_v44 = vmul.f32 %v2376_v2, %v563_v35  ;;  %v319_v27 = vld [vmem:[%s5722_s1 + $0x168] sm:$0xff]  ;;  %v574_v35 = vmul.f32 %v318_v29, %v62_v28 }
  0x29   :  { %1099 = vadd.xlane.f32.xlu0 %v1098_v39  ;;  %v53_v39 = vld [vmem:[%s5721_s0 + $0x118] sm:$0xff] }
  0x2a   :  { %v565_v45 = vmul.f32 %v309_v40, %v53_v39  ;;  %v1149_v53 = vsel %vm1049_vm0, %v826_v44, 0.0  ;;  %v320_v39 = vld [vmem:[%s5722_s1 + $0x170] sm:$0xff]  ;;  %v837_v44 = vmul.f32 %v2376_v2, %v574_v35 }
  0x2b   :  { %v76_v35 = vld [vmem:[%s5721_s0 + $0x1d0] sm:$0xff] }
  0x2c   :  { %1108 = vadd.xlane.f32.xlu1 %v1107_v46  ;;  %v1140_v46 = vsel %vm1049_vm0, %v823_v37, 0.0  ;;  %v828_v54 = vmul.f32 %v2376_v2, %v565_v45  ;;  %v321_v37 = vld [vmem:[%s5722_s1 + $0x178] sm:$0xff]  ;;  %v576_v45 = vmul.f32 %v320_v39, %v64_v38 }
  0x2d   :  { %1105 = vadd.xlane.f32.xlu0 %v1104_v49  ;;  %v55_v49 = vld [vmem:[%s5721_s0 + $0x128] sm:$0xff] }
  0x2e   :  { %v567_v55 = vmul.f32 %v311_v50, %v55_v49  ;;  %v1155_v63 = vsel %vm1049_vm0, %v828_v54, 0.0  ;;  %v322_v49 = vld [vmem:[%s5722_s1 + $0x180] sm:$0xff]  ;;  %v839_v54 = vmul.f32 %v2376_v2, %v576_v45 }
  0x2f   :  { %v78_v45 = vld [vmem:[%s5721_s0 + $0x1e0] sm:$0xff] }
  0x30   :  { %1114 = vadd.xlane.f32.xlu1 %v1113_v56  ;;  %v1146_v56 = vsel %vm1049_vm0, %v825_v47, 0.0  ;;  %v830_v0 = vmul.f32 %v2376_v2, %v567_v55  ;;  %v323_v47 = vld [vmem:[%s5722_s1 + $0x188] sm:$0xff]  ;;  %v578_v55 = vmul.f32 %v322_v49, %v66_v48 }
  0x31   :  { %1111 = vadd.xlane.f32.xlu0 %v1110_v59  ;;  %v57_v59 = vld [vmem:[%s5721_s0 + $0x138] sm:$0xff] }
  0x32   :  { %v569_v1 = vmul.f32 %v313_v60, %v57_v59  ;;  %v1161_v10 = vsel %vm1049_vm0, %v830_v0, 0.0  ;;  %v324_v59 = vld [vmem:[%s5722_s1 + $0x190] sm:$0xff]  ;;  %v841_v0 = vmul.f32 %v2376_v2, %v578_v55 }
  0x33   :  { %v80_v55 = vld [vmem:[%s5721_s0 + $0x1f0] sm:$0xff] }
  0x34   :  { %1120 = vadd.xlane.f32.xlu1 %v1119_v3  ;;  %v1152_v3 = vsel %vm1049_vm0, %v827_v57, 0.0  ;;  %v832_v11 = vmul.f32 %v2376_v2, %v569_v1  ;;  %v325_v57 = vld [vmem:[%s5722_s1 + $0x198] sm:$0xff]  ;;  %v580_v1 = vmul.f32 %v324_v59, %v68_v58 }
  0x35   :  { %1117 = vadd.xlane.f32.xlu0 %v1116_v6  ;;  %v59_v6 = vld [vmem:[%s5721_s0 + $0x148] sm:$0xff] }
  0x36   :  { %v571_v12 = vmul.f32 %v315_v7, %v59_v6  ;;  %v1167_v20 = vsel %vm1049_vm0, %v832_v11, 0.0  ;;  %v326_v6 = vld [vmem:[%s5722_s1 + $0x1a0] sm:$0xff]  ;;  %v843_v11 = vmul.f32 %v2376_v2, %v580_v1 }
  0x37   :  { %v82_v1 = vld [vmem:[%s5721_s0 + $0x200] sm:$0xff] }
  0x38   :  { %1126 = vadd.xlane.f32.xlu1 %v1125_v13  ;;  %v1158_v13 = vsel %vm1049_vm0, %v829_v4, 0.0  ;;  %v834_v21 = vmul.f32 %v2376_v2, %v571_v12  ;;  %v327_v4 = vld [vmem:[%s5722_s1 + $0x1a8] sm:$0xff]  ;;  %v582_v12 = vmul.f32 %v326_v6, %v70_v5 }
  0x39   :  { %1123 = vadd.xlane.f32.xlu0 %v1122_v16  ;;  %v61_v16 = vld [vmem:[%s5721_s0 + $0x158] sm:$0xff] }
  0x3a   :  { %v573_v22 = vmul.f32 %v317_v17, %v61_v16  ;;  %v1173_v30 = vsel %vm1049_vm0, %v834_v21, 0.0  ;;  %v328_v16 = vld [vmem:[%s5722_s1 + $0x1b0] sm:$0xff]  ;;  %v845_v21 = vmul.f32 %v2376_v2, %v582_v12 }
  0x3b   :  { %v84_v12 = vld [vmem:[%s5721_s0 + $0x210] sm:$0xff] }
  0x3c   :  { %1132 = vadd.xlane.f32.xlu1 %v1131_v23  ;;  %v1164_v23 = vsel %vm1049_vm0, %v831_v14, 0.0  ;;  %v836_v31 = vmul.f32 %v2376_v2, %v573_v22  ;;  %v329_v14 = vld [vmem:[%s5722_s1 + $0x1b8] sm:$0xff]  ;;  %v584_v22 = vmul.f32 %v328_v16, %v72_v15 }
  0x3d   :  { %1129 = vadd.xlane.f32.xlu0 %v1128_v26  ;;  %v63_v26 = vld [vmem:[%s5721_s0 + $0x168] sm:$0xff] }
  0x3e   :  { %v575_v32 = vmul.f32 %v319_v27, %v63_v26  ;;  %v1179_v40 = vsel %vm1049_vm0, %v836_v31, 0.0  ;;  %v330_v26 = vld [vmem:[%s5722_s1 + $0x1c0] sm:$0xff]  ;;  %v847_v31 = vmul.f32 %v2376_v2, %v584_v22 }
  0x3f   :  { %v86_v22 = vld [vmem:[%s5721_s0 + $0x220] sm:$0xff] }
  0x40   :  { %1138 = vadd.xlane.f32.xlu1 %v1137_v33  ;;  %v1170_v33 = vsel %vm1049_vm0, %v833_v24, 0.0  ;;  %v838_v41 = vmul.f32 %v2376_v2, %v575_v32  ;;  %v331_v24 = vld [vmem:[%s5722_s1 + $0x1c8] sm:$0xff]  ;;  %v586_v32 = vmul.f32 %v330_v26, %v74_v25 }
  0x41   :  { %1135 = vadd.xlane.f32.xlu0 %v1134_v36  ;;  %v65_v36 = vld [vmem:[%s5721_s0 + $0x178] sm:$0xff] }
  0x42   :  { %v577_v42 = vmul.f32 %v321_v37, %v65_v36  ;;  %v1185_v50 = vsel %vm1049_vm0, %v838_v41, 0.0  ;;  %v332_v36 = vld [vmem:[%s5722_s1 + $0x1d0] sm:$0xff]  ;;  %v849_v41 = vmul.f32 %v2376_v2, %v586_v32 }
  0x43   :  { %v88_v32 = vld [vmem:[%s5721_s0 + $0x230] sm:$0xff] }
  0x44   :  { %1144 = vadd.xlane.f32.xlu1 %v1143_v43  ;;  %v1176_v43 = vsel %vm1049_vm0, %v835_v34, 0.0  ;;  %v840_v51 = vmul.f32 %v2376_v2, %v577_v42  ;;  %v333_v34 = vld [vmem:[%s5722_s1 + $0x1d8] sm:$0xff]  ;;  %v588_v42 = vmul.f32 %v332_v36, %v76_v35 }
  0x45   :  { %1141 = vadd.xlane.f32.xlu0 %v1140_v46  ;;  %v67_v46 = vld [vmem:[%s5721_s0 + $0x188] sm:$0xff] }
  0x46   :  { %v579_v52 = vmul.f32 %v323_v47, %v67_v46  ;;  %v1191_v60 = vsel %vm1049_vm0, %v840_v51, 0.0  ;;  %v334_v46 = vld [vmem:[%s5722_s1 + $0x1e0] sm:$0xff]  ;;  %v851_v51 = vmul.f32 %v2376_v2, %v588_v42 }
  0x47   :  { %v90_v42 = vld [vmem:[%s5721_s0 + $0x240] sm:$0xff] }
  0x48   :  { %1150 = vadd.xlane.f32.xlu1 %v1149_v53  ;;  %v1182_v53 = vsel %vm1049_vm0, %v837_v44, 0.0  ;;  %v842_v61 = vmul.f32 %v2376_v2, %v579_v52  ;;  %v335_v44 = vld [vmem:[%s5722_s1 + $0x1e8] sm:$0xff]  ;;  %v590_v52 = vmul.f32 %v334_v46, %v78_v45 }
  0x49   :  { %1147 = vadd.xlane.f32.xlu0 %v1146_v56  ;;  %v69_v56 = vld [vmem:[%s5721_s0 + $0x198] sm:$0xff] }
  0x4a   :  { %v581_v62 = vmul.f32 %v325_v57, %v69_v56  ;;  %v1197_v7 = vsel %vm1049_vm0, %v842_v61, 0.0  ;;  %v336_v56 = vld [vmem:[%s5722_s1 + $0x1f0] sm:$0xff]  ;;  %v853_v61 = vmul.f32 %v2376_v2, %v590_v52 }
  0x4b   :  { %v92_v52 = vld [vmem:[%s5721_s0 + $0x250] sm:$0xff] }
  0x4c   :  { %1156 = vadd.xlane.f32.xlu1 %v1155_v63  ;;  %v1188_v63 = vsel %vm1049_vm0, %v839_v54, 0.0  ;;  %v844_v8 = vmul.f32 %v2376_v2, %v581_v62  ;;  %v337_v54 = vld [vmem:[%s5722_s1 + $0x1f8] sm:$0xff]  ;;  %v592_v62 = vmul.f32 %v336_v56, %v80_v55 }
  0x4d   :  { %1153 = vadd.xlane.f32.xlu0 %v1152_v3  ;;  %v71_v3 = vld [vmem:[%s5721_s0 + $0x1a8] sm:$0xff] }
  0x4e   :  { %v583_v9 = vmul.f32 %v327_v4, %v71_v3  ;;  %v1203_v17 = vsel %vm1049_vm0, %v844_v8, 0.0  ;;  %v338_v3 = vld [vmem:[%s5722_s1 + $0x200] sm:$0xff]  ;;  %v855_v8 = vmul.f32 %v2376_v2, %v592_v62  ;;  %v2983_v62 = vstv %s5724_s3 }
  0x50   :  { %1162 = vadd.xlane.f32.xlu1 %v1161_v10  ;;  %v1194_v10 = vsel %vm1049_vm0, %v841_v0, 0.0  ;;  %v846_v18 = vmul.f32 %v2376_v2, %v583_v9  ;;  %v339_v0 = vld [vmem:[%s5722_s1 + $0x208] sm:$0xff]  ;;  %v594_v9 = vmul.f32 %v338_v3, %v82_v1 }
  0x51   :  { %1159 = vadd.xlane.f32.xlu0 %v1158_v13  ;;  %v73_v13 = vld [vmem:[%s5721_s0 + $0x1b8] sm:$0xff] }
  0x52   :  { %v585_v19 = vmul.f32 %v329_v14, %v73_v13  ;;  %v1209_v27 = vsel %vm1049_vm0, %v846_v18, 0.0  ;;  %v340_v13 = vld [vmem:[%s5722_s1 + $0x210] sm:$0xff]  ;;  %v857_v18 = vmul.f32 %v2376_v2, %v594_v9 }
  0x54   :  { %1168 = vadd.xlane.f32.xlu1 %v1167_v20  ;;  %v1200_v20 = vsel %vm1049_vm0, %v843_v11, 0.0  ;;  %v848_v28 = vmul.f32 %v2376_v2, %v585_v19  ;;  %v341_v11 = vld [vmem:[%s5722_s1 + $0x218] sm:$0xff]  ;;  %v596_v19 = vmul.f32 %v340_v13, %v84_v12 }
  0x55   :  { %1165 = vadd.xlane.f32.xlu0 %v1164_v23  ;;  %v75_v23 = vld [vmem:[%s5721_s0 + $0x1c8] sm:$0xff]  ;;  %v353_v12 = vld [vmem:[%s5722_s1 + $0x278] sm:$0xff] }
  0x56   :  { %v587_v29 = vmul.f32 %v331_v24, %v75_v23  ;;  %v1215_v37 = vsel %vm1049_vm0, %v848_v28, 0.0  ;;  %v342_v23 = vld [vmem:[%s5722_s1 + $0x220] sm:$0xff]  ;;  %v859_v28 = vmul.f32 %v2376_v2, %v596_v19 }
  0x58   :  { %1174 = vadd.xlane.f32.xlu1 %v1173_v30  ;;  %v1206_v30 = vsel %vm1049_vm0, %v845_v21, 0.0  ;;  %v850_v38 = vmul.f32 %v2376_v2, %v587_v29  ;;  %v343_v21 = vld [vmem:[%s5722_s1 + $0x228] sm:$0xff]  ;;  %v598_v29 = vmul.f32 %v342_v23, %v86_v22 }
  0x59   :  { %1171 = vadd.xlane.f32.xlu0 %v1170_v33  ;;  %v77_v33 = vld [vmem:[%s5721_s0 + $0x1d8] sm:$0xff] }
  0x5a   :  { %v589_v39 = vmul.f32 %v333_v34, %v77_v33  ;;  %v1221_v47 = vsel %vm1049_vm0, %v850_v38, 0.0  ;;  %v344_v33 = vld [vmem:[%s5722_s1 + $0x230] sm:$0xff]  ;;  %v861_v38 = vmul.f32 %v2376_v2, %v598_v29  ;;  %v354_v29 = vld [vmem:[%s5722_s1 + $0x280] sm:$0xff] }
  0x5c   :  { %1180 = vadd.xlane.f32.xlu1 %v1179_v40  ;;  %v1212_v40 = vsel %vm1049_vm0, %v847_v31, 0.0  ;;  %v852_v48 = vmul.f32 %v2376_v2, %v589_v39  ;;  %v345_v31 = vld [vmem:[%s5722_s1 + $0x238] sm:$0xff]  ;;  %v600_v39 = vmul.f32 %v344_v33, %v88_v32 }
  0x5d   :  { %1177 = vadd.xlane.f32.xlu0 %v1176_v43  ;;  %v79_v43 = vld [vmem:[%s5721_s0 + $0x1e8] sm:$0xff] }
  0x5e   :  { %v591_v49 = vmul.f32 %v335_v44, %v79_v43  ;;  %v1227_v57 = vsel %vm1049_vm0, %v852_v48, 0.0  ;;  %v346_v43 = vld [vmem:[%s5722_s1 + $0x240] sm:$0xff]  ;;  %v863_v48 = vmul.f32 %v2376_v2, %v600_v39  ;;  %v101_v39 = vld [vmem:[%s5721_s0 + $0x298] sm:$0xff] }
  0x60   :  { %1186 = vadd.xlane.f32.xlu1 %v1185_v50  ;;  %v1218_v50 = vsel %vm1049_vm0, %v849_v41, 0.0  ;;  %v854_v58 = vmul.f32 %v2376_v2, %v591_v49  ;;  %v347_v41 = vld [vmem:[%s5722_s1 + $0x248] sm:$0xff]  ;;  %v602_v49 = vmul.f32 %v346_v43, %v90_v42  ;;  %v100_v42 = vld [vmem:[%s5721_s0 + $0x290] sm:$0xff] }
  0x61   :  { %1183 = vadd.xlane.f32.xlu0 %v1182_v53  ;;  %v81_v53 = vld [vmem:[%s5721_s0 + $0x1f8] sm:$0xff]  ;;  %v356_v43 = vld [vmem:[%s5722_s1 + $0x290] sm:$0xff] }
  0x62   :  { %v593_v59 = vmul.f32 %v337_v54, %v81_v53  ;;  %v1233_v4 = vsel %vm1049_vm0, %v854_v58, 0.0  ;;  %v348_v53 = vld [vmem:[%s5722_s1 + $0x250] sm:$0xff]  ;;  %v865_v58 = vmul.f32 %v2376_v2, %v602_v49 }
  0x64   :  { %1192 = vadd.xlane.f32.xlu1 %v1191_v60  ;;  %v1224_v60 = vsel %vm1049_vm0, %v851_v51, 0.0  ;;  %v856_v5 = vmul.f32 %v2376_v2, %v593_v59  ;;  %v349_v51 = vld [vmem:[%s5722_s1 + $0x258] sm:$0xff]  ;;  %v604_v59 = vmul.f32 %v348_v53, %v92_v52  ;;  %v612_v53 = vmul.f32 %v356_v43, %v100_v42 }
  0x65   :  { %1189 = vadd.xlane.f32.xlu0 %v1188_v63  ;;  %v83_v63 = vld [vmem:[%s5721_s0 + $0x208] sm:$0xff] }
  0x66   :  { %v595_v6 = vmul.f32 %v339_v0, %v83_v63  ;;  %v1239_v14 = vsel %vm1049_vm0, %v856_v5, 0.0  ;;  %v94_v63 = vld [vmem:[%s5721_s0 + $0x260] sm:$0xff]  ;;  %v867_v9 = vmul.f32 %v2376_v2, %v604_v59 }
  0x67   :  { %v350_v0 = vld [vmem:[%s5722_s1 + $0x260] sm:$0xff] }
  0x68   :  { %1198 = vadd.xlane.f32.xlu1 %v1197_v7  ;;  %v1230_v7 = vsel %vm1049_vm0, %v853_v61, 0.0  ;;  %v858_v15 = vmul.f32 %v2376_v2, %v595_v6  ;;  %v351_v61 = vld [vmem:[%s5722_s1 + $0x268] sm:$0xff]  ;;  %v1272_v22 = vsel %vm1049_vm0, %v867_v9, 0.0  ;;  %v360_v9 = vld [vmem:[%s5722_s1 + $0x2b0] sm:$0xff] }
  0x69   :  { %1195 = vadd.xlane.f32.xlu0 %v1194_v10  ;;  %v85_v10 = vld [vmem:[%s5721_s0 + $0x218] sm:$0xff] }
  0x6a   :  { %v597_v16 = vmul.f32 %v341_v11, %v85_v10  ;;  %v1245_v24 = vsel %vm1049_vm0, %v858_v15, 0.0  ;;  %v606_v10 = vmul.f32 %v350_v0, %v94_v63  ;;  %v97_v11 = vld [vmem:[%s5721_s0 + $0x278] sm:$0xff]  ;;  %v352_v15 = vld [vmem:[%s5722_s1 + $0x270] sm:$0xff] }
  0x6b   :  { %v609_v19 = vmul.f32 %v353_v12, %v97_v11 }
  0x6c   :  { %1204 = vadd.xlane.f32.xlu1 %v1203_v17  ;;  %v1236_v17 = vsel %vm1049_vm0, %v855_v8, 0.0  ;;  %v860_v25 = vmul.f32 %v2376_v2, %v597_v16  ;;  %v1266_v8 = vsel %vm1049_vm0, %v865_v58, 0.0  ;;  %v869_v23 = vmul.f32 %v2376_v2, %v606_v10 }
  0x6d   :  { %1201 = vadd.xlane.f32.xlu0 %v1200_v20  ;;  %v87_v20 = vld [vmem:[%s5721_s0 + $0x228] sm:$0xff]  ;;  %v872_v32 = vmul.f32 %v2376_v2, %v609_v19 }
  0x6e   :  { %v599_v26 = vmul.f32 %v343_v21, %v87_v20  ;;  %v1251_v34 = vsel %vm1049_vm0, %v860_v25, 0.0  ;;  %v99_v25 = vld [vmem:[%s5721_s0 + $0x288] sm:$0xff] }
  0x6f   :  { %v107_v19 = vld [vmem:[%s5721_s0 + $0x2c8] sm:$0xff] }
  0x70   :  { %1210 = vadd.xlane.f32.xlu1 %v1209_v27  ;;  %v1242_v27 = vsel %vm1049_vm0, %v857_v18, 0.0  ;;  %v862_v35 = vmul.f32 %v2376_v2, %v599_v26  ;;  %v355_v26 = vld [vmem:[%s5722_s1 + $0x288] sm:$0xff] }
  0x71   :  { %1207 = vadd.xlane.f32.xlu0 %v1206_v30  ;;  %v89_v30 = vld [vmem:[%s5721_s0 + $0x238] sm:$0xff]  ;;  %v611_v33 = vmul.f32 %v355_v26, %v99_v25 }
  0x72   :  { %v601_v36 = vmul.f32 %v345_v31, %v89_v30  ;;  %v1257_v44 = vsel %vm1049_vm0, %v862_v35, 0.0 }
  0x74   :  { %1216 = vadd.xlane.f32.xlu1 %v1215_v37  ;;  %v1248_v37 = vsel %vm1049_vm0, %v859_v28, 0.0  ;;  %v864_v45 = vmul.f32 %v2376_v2, %v601_v36  ;;  %v98_v28 = vld [vmem:[%s5721_s0 + $0x280] sm:$0xff]  ;;  %v1278_v36 = vsel %vm1049_vm0, %v869_v23, 0.0 }
  0x75   :  { %1213 = vadd.xlane.f32.xlu0 %v1212_v40  ;;  %v91_v40 = vld [vmem:[%s5721_s0 + $0x248] sm:$0xff]  ;;  %v362_v23 = vld [vmem:[%s5722_s1 + $0x2c0] sm:$0xff] }
  0x76   :  { %v603_v46 = vmul.f32 %v347_v41, %v91_v40  ;;  %v1263_v54 = vsel %vm1049_vm0, %v864_v45, 0.0  ;;  %v357_v40 = vld [vmem:[%s5722_s1 + $0x298] sm:$0xff]  ;;  %v1287_v45 = vsel %vm1049_vm0, %v872_v32, 0.0 }
  0x78   :  { %1222 = vadd.xlane.f32.xlu1 %v1221_v47  ;;  %v1254_v47 = vsel %vm1049_vm0, %v861_v38, 0.0  ;;  %v866_v55 = vmul.f32 %v2376_v2, %v603_v46  ;;  %v610_v38 = vmul.f32 %v354_v29, %v98_v28  ;;  %v874_v46 = vmul.f32 %v2376_v2, %v611_v33  ;;  %v109_v33 = vld [vmem:[%s5721_s0 + $0x2d8] sm:$0xff] }
  0x79   :  { %1219 = vadd.xlane.f32.xlu0 %v1218_v50  ;;  %v93_v50 = vld [vmem:[%s5721_s0 + $0x258] sm:$0xff] }
  0x7a   :  { %v605_v56 = vmul.f32 %v349_v51, %v93_v50  ;;  %v1269_v3 = vsel %vm1049_vm0, %v866_v55, 0.0  ;;  %v3076_v51 = vld [vmem:[%s5723_s2] ss:$0 sm:$0xff]  ;;  %v1293_v59 = vsel %vm1049_vm0, %v874_v46, 0.0 }
  0x7b   :  { %v873_v52 = vmul.f32 %v3076_v51, %v610_v38 }
  0x7c   :  { %1228 = vadd.xlane.f32.xlu1 %v1227_v57  ;;  %v1260_v57 = vsel %vm1049_vm0, %v863_v48, 0.0 }
  0x7d   :  { %1225 = vadd.xlane.f32.xlu0 %v1224_v60  ;;  %v95_v60 = vld [vmem:[%s5721_s0 + $0x268] sm:$0xff] }
  0x7e   :  { %v607_v5 = vmul.f32 %v351_v61, %v95_v60 }
  0x80   :  { %1234 = vadd.xlane.f32.xlu1 %v1233_v4  ;;  %v868_v4 = vmul.f32 %v2376_v2, %v605_v56  ;;  %v870_v18 = vmul.f32 %v2376_v2, %v607_v5  ;;  %v102_v56 = vld [vmem:[%s5721_s0 + $0x2a0] sm:$0xff]  ;;  %v105_v5 = vld [vmem:[%s5721_s0 + $0x2b8] sm:$0xff] }
  0x81   :  { %1231 = vadd.xlane.f32.xlu0 %v1230_v7 }
  0x82   :  { %v1281_v31 = vsel %vm1049_vm0, %v870_v18, 0.0 }
  0x84   :  { %1240 = vadd.xlane.f32.xlu1 %v1239_v14  ;;  %v96_v14 = vld [vmem:[%s5721_s0 + $0x270] sm:$0xff] }
  0x85   :  { %1237 = vadd.xlane.f32.xlu0 %v1236_v17  ;;  %v1275_v17 = vsel %vm1049_vm0, %v868_v4, 0.0 }
  0x88   :  { %1246 = vadd.xlane.f32.xlu1 %v1245_v24  ;;  %v608_v24 = vmul.f32 %v352_v15, %v96_v14 }
  0x89   :  { %1243 = vadd.xlane.f32.xlu0 %v1242_v27 }
  0x8c   :  { %1252 = vadd.xlane.f32.xlu1 %v1251_v34 }
  0x8d   :  { %1249 = vadd.xlane.f32.xlu0 %v1248_v37  ;;  %v871_v37 = vmul.f32 %v2376_v2, %v608_v24  ;;  %v359_v2 = vld [vmem:[%s5722_s1 + $0x2a8] sm:$0xff] }
  0x8f   :  { %v1284_v50 = vsel %vm1049_vm0, %v871_v37, 0.0  ;;  %v364_v37 = vld [vmem:[%s5722_s1 + $0x2d0] sm:$0xff] }
  0x90   :  { %1258 = vadd.xlane.f32.xlu1 %v1257_v44 }
  0x91   :  { %1255 = vadd.xlane.f32.xlu0 %v1254_v47  ;;  %v613_v47 = vmul.f32 %v357_v40, %v101_v39 }
  0x93   :  { %v876_v60 = vmul.f32 %v3076_v51, %v613_v47  ;;  %v111_v47 = vld [vmem:[%s5721_s0 + $0x2e8] sm:$0xff] }
  0x94   :  { %1264 = vadd.xlane.f32.xlu1 %v1263_v54  ;;  %v103_v54 = vld [vmem:[%s5721_s0 + $0x2a8] sm:$0xff] }
  0x95   :  { %1261 = vadd.xlane.f32.xlu0 %v1260_v57  ;;  %v1058_v1 = vpop.xlane.xlu1 %1057  ;;  %v358_v57 = vld [vmem:[%s5722_s1 + $0x2a0] sm:$0xff]  ;;  %v615_v61 = vmul.f32 %v359_v2, %v103_v54  ;;  %v1299_v11 = vsel %vm1049_vm0, %v876_v60, 0.0 }
  0x96   :  { %v1822_v6 = vadd.f32 %v2983_v62, %v1058_v1  ;;  %v1052_v7 = vpop.xlane.xlu0 %1051  ;;  %v1290_v1 = vsel %vm1049_vm0, %v873_v52, 0.0  ;;  %v614_v4 = vmul.f32 %v358_v57, %v102_v56  ;;  %v366_v52 = vld [vmem:[%s5722_s1 + $0x2e0] sm:$0xff] }
  0x97   :  { %v1820_v13 = vadd.f32 %v2983_v62, %v1052_v7  ;;  %v878_v12 = vmul.f32 %v3076_v51, %v615_v61  ;;  %v113_v61 = vld [vmem:[%s5721_s0 + $0x2f8] sm:$0xff] }
  0x98   :  { %2079 = vst.msk [vmem:[%s5725_s4 + $0x10] sm:$0xff] %vm2076_vm1, %v1822_v6  ;;  %1270 = vadd.xlane.f32.xlu1 %v1269_v3  ;;  %v875_v3 = vmul.f32 %v3076_v51, %v612_v53  ;;  %v361_v6 = vld [vmem:[%s5722_s1 + $0x2b8] sm:$0xff] }
  0x99   :  { %2077 = vst.msk [vmem:[%s5725_s4] sm:$0xff] %vm2076_vm1, %v1820_v13  ;;  %1267 = vadd.xlane.f32.xlu0 %v1266_v8  ;;  %v1061_v16 = vpop.xlane.xlu1 %1060  ;;  %v104_v8 = vld [vmem:[%s5721_s0 + $0x2b0] sm:$0xff]  ;;  %v617_v13 = vmul.f32 %v361_v6, %v105_v5  ;;  %v1305_v25 = vsel %vm1049_vm0, %v878_v12, 0.0 }
  0x9a   :  { %v1823_v20 = vadd.f32 %v2983_v62, %v1061_v16  ;;  %v1055_v21 = vpop.xlane.xlu0 %1054  ;;  %v1296_v16 = vsel %vm1049_vm0, %v875_v3, 0.0  ;;  %v616_v18 = vmul.f32 %v360_v9, %v104_v8  ;;  %v368_v3 = vld [vmem:[%s5722_s1 + $0x2f0] sm:$0xff] }
  0x9b   :  { %v1821_v27 = vadd.f32 %v2983_v62, %v1055_v21  ;;  %v880_v26 = vmul.f32 %v3076_v51, %v617_v13  ;;  %v115_v13 = vld [vmem:[%s5721_s0 + $0x308] sm:$0xff] }
  0x9c   :  { %2080 = vst.msk [vmem:[%s5725_s4 + $0x18] sm:$0xff] %vm2076_vm1, %v1823_v20  ;;  %1276 = vadd.xlane.f32.xlu1 %v1275_v17  ;;  %v877_v17 = vmul.f32 %v3076_v51, %v614_v4  ;;  %v363_v20 = vld [vmem:[%s5722_s1 + $0x2c8] sm:$0xff] }
  0x9d   :  { %2078 = vst.msk [vmem:[%s5725_s4 + $0x8] sm:$0xff] %vm2076_vm1, %v1821_v27  ;;  %1273 = vadd.xlane.f32.xlu0 %v1272_v22  ;;  %v1067_v30 = vpop.xlane.xlu1 %1066  ;;  %v106_v22 = vld [vmem:[%s5721_s0 + $0x2c0] sm:$0xff]  ;;  %v619_v27 = vmul.f32 %v363_v20, %v107_v19  ;;  %v1311_v39 = vsel %vm1049_vm0, %v880_v26, 0.0 }
  0x9e   :  { %v1825_v34 = vadd.f32 %v2983_v62, %v1067_v30  ;;  %v1064_v35 = vpop.xlane.xlu0 %1063  ;;  %v1302_v30 = vsel %vm1049_vm0, %v877_v17, 0.0  ;;  %v618_v32 = vmul.f32 %v362_v23, %v106_v22  ;;  %v370_v17 = vld [vmem:[%s5722_s1 + $0x300] sm:$0xff] }
  0x9f   :  { %v1824_v41 = vadd.f32 %v2983_v62, %v1064_v35  ;;  %v882_v40 = vmul.f32 %v3076_v51, %v619_v27  ;;  %v117_v27 = vld [vmem:[%s5721_s0 + $0x318] sm:$0xff] }
  0xa0   :  { %2082 = vst.msk [vmem:[%s5725_s4 + $0x28] sm:$0xff] %vm2076_vm1, %v1825_v34  ;;  %1282 = vadd.xlane.f32.xlu1 %v1281_v31  ;;  %v879_v31 = vmul.f32 %v3076_v51, %v616_v18  ;;  %v365_v34 = vld [vmem:[%s5722_s1 + $0x2d8] sm:$0xff] }
  0xa1   :  { %2081 = vst.msk [vmem:[%s5725_s4 + $0x20] sm:$0xff] %vm2076_vm1, %v1824_v41  ;;  %1279 = vadd.xlane.f32.xlu0 %v1278_v36  ;;  %v1073_v44 = vpop.xlane.xlu1 %1072  ;;  %v108_v36 = vld [vmem:[%s5721_s0 + $0x2d0] sm:$0xff]  ;;  %v621_v41 = vmul.f32 %v365_v34, %v109_v33  ;;  %v1317_v54 = vsel %vm1049_vm0, %v882_v40, 0.0 }
  0xa2   :  { %v1827_v48 = vadd.f32 %v2983_v62, %v1073_v44  ;;  %v1070_v49 = vpop.xlane.xlu0 %1069  ;;  %v1308_v44 = vsel %vm1049_vm0, %v879_v31, 0.0  ;;  %v620_v46 = vmul.f32 %v364_v37, %v108_v36  ;;  %v372_v31 = vld [vmem:[%s5722_s1 + $0x310] sm:$0xff] }
  0xa3   :  { %v1826_v55 = vadd.f32 %v2983_v62, %v1070_v49  ;;  %v884_v2 = vmul.f32 %v3076_v51, %v621_v41  ;;  %v119_v41 = vld [vmem:[%s5721_s0 + $0x328] sm:$0xff] }
  0xa4   :  { %2084 = vst.msk [vmem:[%s5725_s4 + $0x38] sm:$0xff] %vm2076_vm1, %v1827_v48  ;;  %1288 = vadd.xlane.f32.xlu1 %v1287_v45  ;;  %v881_v45 = vmul.f32 %v3076_v51, %v618_v32  ;;  %v367_v48 = vld [vmem:[%s5722_s1 + $0x2e8] sm:$0xff] }
  0xa5   :  { %2083 = vst.msk [vmem:[%s5725_s4 + $0x30] sm:$0xff] %vm2076_vm1, %v1826_v55  ;;  %1285 = vadd.xlane.f32.xlu0 %v1284_v50  ;;  %v1079_v58 = vpop.xlane.xlu1 %1078  ;;  %v110_v50 = vld [vmem:[%s5721_s0 + $0x2e0] sm:$0xff]  ;;  %v623_v55 = vmul.f32 %v367_v48, %v111_v47  ;;  %v1323_v5 = vsel %vm1049_vm0, %v884_v2, 0.0 }
  0xa6   :  { %v1829_v63 = vadd.f32 %v2983_v62, %v1079_v58  ;;  %v1076_v0 = vpop.xlane.xlu0 %1075  ;;  %v1314_v58 = vsel %vm1049_vm0, %v881_v45, 0.0  ;;  %v622_v60 = vmul.f32 %v366_v52, %v110_v50  ;;  %v374_v45 = vld [vmem:[%s5722_s1 + $0x320] sm:$0xff] }
  0xa7   :  { %v1828_v7 = vadd.f32 %v2983_v62, %v1076_v0  ;;  %v886_v6 = vmul.f32 %v3076_v51, %v623_v55  ;;  %v121_v55 = vld [vmem:[%s5721_s0 + $0x338] sm:$0xff] }
  0xa8   :  { %2086 = vst.msk [vmem:[%s5725_s4 + $0x48] sm:$0xff] %vm2076_vm1, %v1829_v63  ;;  %1294 = vadd.xlane.f32.xlu1 %v1293_v59  ;;  %v883_v59 = vmul.f32 %v3076_v51, %v620_v46  ;;  %v369_v63 = vld [vmem:[%s5722_s1 + $0x2f8] sm:$0xff] }
  0xa9   :  { %2085 = vst.msk [vmem:[%s5725_s4 + $0x40] sm:$0xff] %vm2076_vm1, %v1828_v7  ;;  %1291 = vadd.xlane.f32.xlu0 %v1290_v1  ;;  %v1085_v10 = vpop.xlane.xlu1 %1084  ;;  %v112_v1 = vld [vmem:[%s5721_s0 + $0x2f0] sm:$0xff]  ;;  %v625_v7 = vmul.f32 %v369_v63, %v113_v61  ;;  %v1329_v19 = vsel %vm1049_vm0, %v886_v6, 0.0 }
  0xaa   :  { %v1831_v14 = vadd.f32 %v2983_v62, %v1085_v10  ;;  %v1082_v15 = vpop.xlane.xlu0 %1081  ;;  %v1320_v10 = vsel %vm1049_vm0, %v883_v59, 0.0  ;;  %v624_v12 = vmul.f32 %v368_v3, %v112_v1  ;;  %v376_v59 = vld [vmem:[%s5722_s1 + $0x330] sm:$0xff] }
  0xab   :  { %v1830_v21 = vadd.f32 %v2983_v62, %v1082_v15  ;;  %v888_v20 = vmul.f32 %v3076_v51, %v625_v7  ;;  %v123_v7 = vld [vmem:[%s5721_s0 + $0x348] sm:$0xff] }
  0xac   :  { %2088 = vst.msk [vmem:[%s5725_s4 + $0x58] sm:$0xff] %vm2076_vm1, %v1831_v14  ;;  %1300 = vadd.xlane.f32.xlu1 %v1299_v11  ;;  %v885_v11 = vmul.f32 %v3076_v51, %v622_v60  ;;  %v371_v14 = vld [vmem:[%s5722_s1 + $0x308] sm:$0xff] }
  0xad   :  { %2087 = vst.msk [vmem:[%s5725_s4 + $0x50] sm:$0xff] %vm2076_vm1, %v1830_v21  ;;  %1297 = vadd.xlane.f32.xlu0 %v1296_v16  ;;  %v1091_v24 = vpop.xlane.xlu1 %1090  ;;  %v114_v16 = vld [vmem:[%s5721_s0 + $0x300] sm:$0xff]  ;;  %v627_v21 = vmul.f32 %v371_v14, %v115_v13  ;;  %v1335_v33 = vsel %vm1049_vm0, %v888_v20, 0.0 }
  0xae   :  { %v1833_v28 = vadd.f32 %v2983_v62, %v1091_v24  ;;  %v1088_v29 = vpop.xlane.xlu0 %1087  ;;  %v1326_v24 = vsel %vm1049_vm0, %v885_v11, 0.0  ;;  %v626_v26 = vmul.f32 %v370_v17, %v114_v16  ;;  %v378_v11 = vld [vmem:[%s5722_s1 + $0x340] sm:$0xff] }
  0xaf   :  { %v1832_v35 = vadd.f32 %v2983_v62, %v1088_v29  ;;  %v890_v34 = vmul.f32 %v3076_v51, %v627_v21  ;;  %v125_v21 = vld [vmem:[%s5721_s0 + $0x358] sm:$0xff] }
  0xb0   :  { %2090 = vst.msk [vmem:[%s5725_s4 + $0x68] sm:$0xff] %vm2076_vm1, %v1833_v28  ;;  %1306 = vadd.xlane.f32.xlu1 %v1305_v25  ;;  %v887_v25 = vmul.f32 %v3076_v51, %v624_v12  ;;  %v373_v28 = vld [vmem:[%s5722_s1 + $0x318] sm:$0xff] }
  0xb1   :  { %2089 = vst.msk [vmem:[%s5725_s4 + $0x60] sm:$0xff] %vm2076_vm1, %v1832_v35  ;;  %1303 = vadd.xlane.f32.xlu0 %v1302_v30  ;;  %v1097_v38 = vpop.xlane.xlu1 %1096  ;;  %v116_v30 = vld [vmem:[%s5721_s0 + $0x310] sm:$0xff]  ;;  %v629_v35 = vmul.f32 %v373_v28, %v117_v27  ;;  %v1341_v47 = vsel %vm1049_vm0, %v890_v34, 0.0 }
  0xb2   :  { %v1835_v42 = vadd.f32 %v2983_v62, %v1097_v38  ;;  %v1094_v43 = vpop.xlane.xlu0 %1093  ;;  %v1332_v38 = vsel %vm1049_vm0, %v887_v25, 0.0  ;;  %v628_v40 = vmul.f32 %v372_v31, %v116_v30  ;;  %v380_v25 = vld [vmem:[%s5722_s1 + $0x350] sm:$0xff] }
  0xb3   :  { %v1834_v49 = vadd.f32 %v2983_v62, %v1094_v43  ;;  %v892_v48 = vmul.f32 %v3076_v51, %v629_v35  ;;  %v127_v35 = vld [vmem:[%s5721_s0 + $0x368] sm:$0xff] }
  0xb4   :  { %2092 = vst.msk [vmem:[%s5725_s4 + $0x78] sm:$0xff] %vm2076_vm1, %v1835_v42  ;;  %1312 = vadd.xlane.f32.xlu1 %v1311_v39  ;;  %v889_v39 = vmul.f32 %v3076_v51, %v626_v26  ;;  %v375_v42 = vld [vmem:[%s5722_s1 + $0x328] sm:$0xff] }
  0xb5   :  { %2091 = vst.msk [vmem:[%s5725_s4 + $0x70] sm:$0xff] %vm2076_vm1, %v1834_v49  ;;  %1309 = vadd.xlane.f32.xlu0 %v1308_v44  ;;  %v1103_v53 = vpop.xlane.xlu1 %1102  ;;  %v118_v44 = vld [vmem:[%s5721_s0 + $0x320] sm:$0xff]  ;;  %v631_v49 = vmul.f32 %v375_v42, %v119_v41  ;;  %v1347_v61 = vsel %vm1049_vm0, %v892_v48, 0.0 }
  0xb6   :  { %v1837_v56 = vadd.f32 %v2983_v62, %v1103_v53  ;;  %v1100_v57 = vpop.xlane.xlu0 %1099  ;;  %v1338_v53 = vsel %vm1049_vm0, %v889_v39, 0.0  ;;  %v630_v2 = vmul.f32 %v374_v45, %v118_v44  ;;  %v382_v39 = vld [vmem:[%s5722_s1 + $0x360] sm:$0xff] }
  0xb7   :  { %v1836_v0 = vadd.f32 %v2983_v62, %v1100_v57  ;;  %v894_v63 = vmul.f32 %v3076_v51, %v631_v49  ;;  %v129_v49 = vld [vmem:[%s5721_s0 + $0x378] sm:$0xff] }
  0xb8   :  { %2094 = vst.msk [vmem:[%s5725_s4 + $0x88] sm:$0xff] %vm2076_vm1, %v1837_v56  ;;  %1318 = vadd.xlane.f32.xlu1 %v1317_v54  ;;  %v891_v54 = vmul.f32 %v3076_v51, %v628_v40  ;;  %v377_v56 = vld [vmem:[%s5722_s1 + $0x338] sm:$0xff] }
  0xb9   :  { %2093 = vst.msk [vmem:[%s5725_s4 + $0x80] sm:$0xff] %vm2076_vm1, %v1836_v0  ;;  %1315 = vadd.xlane.f32.xlu0 %v1314_v58  ;;  %v1109_v4 = vpop.xlane.xlu1 %1108  ;;  %v120_v58 = vld [vmem:[%s5721_s0 + $0x330] sm:$0xff]  ;;  %v633_v0 = vmul.f32 %v377_v56, %v121_v55  ;;  %v1353_v13 = vsel %vm1049_vm0, %v894_v63, 0.0 }
  0xba   :  { %v1839_v8 = vadd.f32 %v2983_v62, %v1109_v4  ;;  %v1106_v9 = vpop.xlane.xlu0 %1105  ;;  %v1344_v4 = vsel %vm1049_vm0, %v891_v54, 0.0  ;;  %v632_v6 = vmul.f32 %v376_v59, %v120_v58  ;;  %v384_v54 = vld [vmem:[%s5722_s1 + $0x370] sm:$0xff] }
  0xbb   :  { %v1838_v15 = vadd.f32 %v2983_v62, %v1106_v9  ;;  %v896_v14 = vmul.f32 %v3076_v51, %v633_v0  ;;  %v131_v0 = vld [vmem:[%s5721_s0 + $0x388] sm:$0xff] }
  0xbc   :  { %2096 = vst.msk [vmem:[%s5725_s4 + $0x98] sm:$0xff] %vm2076_vm1, %v1839_v8  ;;  %1324 = vadd.xlane.f32.xlu1 %v1323_v5  ;;  %v893_v5 = vmul.f32 %v3076_v51, %v630_v2  ;;  %v379_v8 = vld [vmem:[%s5722_s1 + $0x348] sm:$0xff] }
  0xbd   :  { %2095 = vst.msk [vmem:[%s5725_s4 + $0x90] sm:$0xff] %vm2076_vm1, %v1838_v15  ;;  %1321 = vadd.xlane.f32.xlu0 %v1320_v10  ;;  %v1115_v18 = vpop.xlane.xlu1 %1114  ;;  %v122_v10 = vld [vmem:[%s5721_s0 + $0x340] sm:$0xff]  ;;  %v635_v15 = vmul.f32 %v379_v8, %v123_v7  ;;  %v1359_v27 = vsel %vm1049_vm0, %v896_v14, 0.0 }
  0xbe   :  { %v1841_v22 = vadd.f32 %v2983_v62, %v1115_v18  ;;  %v1112_v23 = vpop.xlane.xlu0 %1111  ;;  %v1350_v18 = vsel %vm1049_vm0, %v893_v5, 0.0  ;;  %v634_v20 = vmul.f32 %v378_v11, %v122_v10  ;;  %v386_v5 = vld [vmem:[%s5722_s1 + $0x380] sm:$0xff] }
  0xbf   :  { %v1840_v29 = vadd.f32 %v2983_v62, %v1112_v23  ;;  %v898_v28 = vmul.f32 %v3076_v51, %v635_v15  ;;  %v133_v15 = vld [vmem:[%s5721_s0 + $0x398] sm:$0xff] }
  0xc0   :  { %2098 = vst.msk [vmem:[%s5725_s4 + $0xa8] sm:$0xff] %vm2076_vm1, %v1841_v22  ;;  %1330 = vadd.xlane.f32.xlu1 %v1329_v19  ;;  %v895_v19 = vmul.f32 %v3076_v51, %v632_v6  ;;  %v381_v22 = vld [vmem:[%s5722_s1 + $0x358] sm:$0xff] }
  0xc1   :  { %2097 = vst.msk [vmem:[%s5725_s4 + $0xa0] sm:$0xff] %vm2076_vm1, %v1840_v29  ;;  %1327 = vadd.xlane.f32.xlu0 %v1326_v24  ;;  %v1121_v32 = vpop.xlane.xlu1 %1120  ;;  %v124_v24 = vld [vmem:[%s5721_s0 + $0x350] sm:$0xff]  ;;  %v637_v29 = vmul.f32 %v381_v22, %v125_v21  ;;  %v1365_v41 = vsel %vm1049_vm0, %v898_v28, 0.0 }
  0xc2   :  { %v1843_v36 = vadd.f32 %v2983_v62, %v1121_v32  ;;  %v1118_v37 = vpop.xlane.xlu0 %1117  ;;  %v1356_v32 = vsel %vm1049_vm0, %v895_v19, 0.0  ;;  %v636_v34 = vmul.f32 %v380_v25, %v124_v24  ;;  %v388_v19 = vld [vmem:[%s5722_s1 + $0x390] sm:$0xff] }
  0xc3   :  { %v1842_v43 = vadd.f32 %v2983_v62, %v1118_v37  ;;  %v900_v42 = vmul.f32 %v3076_v51, %v637_v29  ;;  %v135_v29 = vld [vmem:[%s5721_s0 + $0x3a8] sm:$0xff] }
  0xc4   :  { %2100 = vst.msk [vmem:[%s5725_s4 + $0xb8] sm:$0xff] %vm2076_vm1, %v1843_v36  ;;  %1336 = vadd.xlane.f32.xlu1 %v1335_v33  ;;  %v897_v33 = vmul.f32 %v3076_v51, %v634_v20  ;;  %v383_v36 = vld [vmem:[%s5722_s1 + $0x368] sm:$0xff] }
  0xc5   :  { %2099 = vst.msk [vmem:[%s5725_s4 + $0xb0] sm:$0xff] %vm2076_vm1, %v1842_v43  ;;  %1333 = vadd.xlane.f32.xlu0 %v1332_v38  ;;  %v1127_v46 = vpop.xlane.xlu1 %1126  ;;  %v126_v38 = vld [vmem:[%s5721_s0 + $0x360] sm:$0xff]  ;;  %v639_v43 = vmul.f32 %v383_v36, %v127_v35  ;;  %v1371_v55 = vsel %vm1049_vm0, %v900_v42, 0.0 }
  0xc6   :  { %v1845_v50 = vadd.f32 %v2983_v62, %v1127_v46  ;;  %v1124_v52 = vpop.xlane.xlu0 %1123  ;;  %v1362_v46 = vsel %vm1049_vm0, %v897_v33, 0.0  ;;  %v638_v48 = vmul.f32 %v382_v39, %v126_v38  ;;  %v390_v33 = vld [vmem:[%s5722_s1 + $0x3a0] sm:$0xff] }
  0xc7   :  { %v1844_v57 = vadd.f32 %v2983_v62, %v1124_v52  ;;  %v902_v56 = vmul.f32 %v3076_v51, %v639_v43  ;;  %v137_v43 = vld [vmem:[%s5721_s0 + $0x3b8] sm:$0xff] }
  0xc8   :  { %2102 = vst.msk [vmem:[%s5725_s4 + $0xc8] sm:$0xff] %vm2076_vm1, %v1845_v50  ;;  %1342 = vadd.xlane.f32.xlu1 %v1341_v47  ;;  %v899_v47 = vmul.f32 %v3076_v51, %v636_v34  ;;  %v385_v50 = vld [vmem:[%s5722_s1 + $0x378] sm:$0xff] }
  0xc9   :  { %2101 = vst.msk [vmem:[%s5725_s4 + $0xc0] sm:$0xff] %vm2076_vm1, %v1844_v57  ;;  %1339 = vadd.xlane.f32.xlu0 %v1338_v53  ;;  %v1133_v60 = vpop.xlane.xlu1 %1132  ;;  %v128_v53 = vld [vmem:[%s5721_s0 + $0x370] sm:$0xff]  ;;  %v641_v57 = vmul.f32 %v385_v50, %v129_v49  ;;  %v1377_v7 = vsel %vm1049_vm0, %v902_v56, 0.0 }
  0xca   :  { %v1847_v1 = vadd.f32 %v2983_v62, %v1133_v60  ;;  %v1130_v3 = vpop.xlane.xlu0 %1129  ;;  %v1368_v60 = vsel %vm1049_vm0, %v899_v47, 0.0  ;;  %v640_v63 = vmul.f32 %v384_v54, %v128_v53  ;;  %v392_v47 = vld [vmem:[%s5722_s1 + $0x3b0] sm:$0xff] }
  0xcb   :  { %v1846_v9 = vadd.f32 %v2983_v62, %v1130_v3  ;;  %v904_v8 = vmul.f32 %v3076_v51, %v641_v57  ;;  %v139_v57 = vld [vmem:[%s5721_s0 + $0x3c8] sm:$0xff] }
  0xcc   :  { %2104 = vst.msk [vmem:[%s5725_s4 + $0xd8] sm:$0xff] %vm2076_vm1, %v1847_v1  ;;  %1348 = vadd.xlane.f32.xlu1 %v1347_v61  ;;  %v901_v61 = vmul.f32 %v3076_v51, %v638_v48  ;;  %v387_v1 = vld [vmem:[%s5722_s1 + $0x388] sm:$0xff] }
  0xcd   :  { %2103 = vst.msk [vmem:[%s5725_s4 + $0xd0] sm:$0xff] %vm2076_vm1, %v1846_v9  ;;  %1345 = vadd.xlane.f32.xlu0 %v1344_v4  ;;  %v1139_v12 = vpop.xlane.xlu1 %1138  ;;  %v130_v4 = vld [vmem:[%s5721_s0 + $0x380] sm:$0xff]  ;;  %v643_v9 = vmul.f32 %v387_v1, %v131_v0  ;;  %v1383_v21 = vsel %vm1049_vm0, %v904_v8, 0.0 }
  0xce   :  { %v1849_v16 = vadd.f32 %v2983_v62, %v1139_v12  ;;  %v1136_v17 = vpop.xlane.xlu0 %1135  ;;  %v1374_v12 = vsel %vm1049_vm0, %v901_v61, 0.0  ;;  %v642_v14 = vmul.f32 %v386_v5, %v130_v4  ;;  %v394_v61 = vld [vmem:[%s5722_s1 + $0x3c0] sm:$0xff] }
  0xcf   :  { %v1848_v23 = vadd.f32 %v2983_v62, %v1136_v17  ;;  %v906_v22 = vmul.f32 %v3076_v51, %v643_v9  ;;  %v141_v9 = vld [vmem:[%s5721_s0 + $0x3d8] sm:$0xff] }
  0xd0   :  { %2106 = vst.msk [vmem:[%s5725_s4 + $0xe8] sm:$0xff] %vm2076_vm1, %v1849_v16  ;;  %1354 = vadd.xlane.f32.xlu1 %v1353_v13  ;;  %v903_v13 = vmul.f32 %v3076_v51, %v640_v63  ;;  %v389_v16 = vld [vmem:[%s5722_s1 + $0x398] sm:$0xff] }
  0xd1   :  { %2105 = vst.msk [vmem:[%s5725_s4 + $0xe0] sm:$0xff] %vm2076_vm1, %v1848_v23  ;;  %1351 = vadd.xlane.f32.xlu0 %v1350_v18  ;;  %v1145_v26 = vpop.xlane.xlu1 %1144  ;;  %v132_v18 = vld [vmem:[%s5721_s0 + $0x390] sm:$0xff]  ;;  %v645_v23 = vmul.f32 %v389_v16, %v133_v15  ;;  %v1389_v35 = vsel %vm1049_vm0, %v906_v22, 0.0 }
  0xd2   :  { %v1851_v30 = vadd.f32 %v2983_v62, %v1145_v26  ;;  %v1142_v31 = vpop.xlane.xlu0 %1141  ;;  %v1380_v26 = vsel %vm1049_vm0, %v903_v13, 0.0  ;;  %v644_v28 = vmul.f32 %v388_v19, %v132_v18  ;;  %v396_v13 = vld [vmem:[%s5722_s1 + $0x3d0] sm:$0xff] }
  0xd3   :  { %v1850_v37 = vadd.f32 %v2983_v62, %v1142_v31  ;;  %v908_v36 = vmul.f32 %v3076_v51, %v645_v23  ;;  %v143_v23 = vld [vmem:[%s5721_s0 + $0x3e8] sm:$0xff] }
  0xd4   :  { %2108 = vst.msk [vmem:[%s5725_s4 + $0xf8] sm:$0xff] %vm2076_vm1, %v1851_v30  ;;  %1360 = vadd.xlane.f32.xlu1 %v1359_v27  ;;  %v905_v27 = vmul.f32 %v3076_v51, %v642_v14  ;;  %v391_v30 = vld [vmem:[%s5722_s1 + $0x3a8] sm:$0xff] }
  0xd5   :  { %2107 = vst.msk [vmem:[%s5725_s4 + $0xf0] sm:$0xff] %vm2076_vm1, %v1850_v37  ;;  %1357 = vadd.xlane.f32.xlu0 %v1356_v32  ;;  %v1151_v40 = vpop.xlane.xlu1 %1150  ;;  %v134_v32 = vld [vmem:[%s5721_s0 + $0x3a0] sm:$0xff]  ;;  %v647_v37 = vmul.f32 %v391_v30, %v135_v29  ;;  %v1395_v49 = vsel %vm1049_vm0, %v908_v36, 0.0 }
  0xd6   :  { %v1853_v44 = vadd.f32 %v2983_v62, %v1151_v40  ;;  %v1148_v45 = vpop.xlane.xlu0 %1147  ;;  %v1386_v40 = vsel %vm1049_vm0, %v905_v27, 0.0  ;;  %v646_v42 = vmul.f32 %v390_v33, %v134_v32  ;;  %v398_v27 = vld [vmem:[%s5722_s1 + $0x3e0] sm:$0xff] }
  0xd7   :  { %v1852_v52 = vadd.f32 %v2983_v62, %v1148_v45  ;;  %v910_v50 = vmul.f32 %v3076_v51, %v647_v37  ;;  %v145_v37 = vld [vmem:[%s5721_s0 + $0x3f8] sm:$0xff] }
  0xd8   :  { %2110 = vst.msk [vmem:[%s5725_s4 + $0x108] sm:$0xff] %vm2076_vm1, %v1853_v44  ;;  %1366 = vadd.xlane.f32.xlu1 %v1365_v41  ;;  %v907_v41 = vmul.f32 %v3076_v51, %v644_v28  ;;  %v393_v44 = vld [vmem:[%s5722_s1 + $0x3b8] sm:$0xff] }
  0xd9   :  { %2109 = vst.msk [vmem:[%s5725_s4 + $0x100] sm:$0xff] %vm2076_vm1, %v1852_v52  ;;  %1363 = vadd.xlane.f32.xlu0 %v1362_v46  ;;  %v1157_v2 = vpop.xlane.xlu1 %1156  ;;  %v136_v46 = vld [vmem:[%s5721_s0 + $0x3b0] sm:$0xff]  ;;  %v649_v52 = vmul.f32 %v393_v44, %v137_v43  ;;  %v1401_v0 = vsel %vm1049_vm0, %v910_v50, 0.0 }
  0xda   :  { %v1855_v58 = vadd.f32 %v2983_v62, %v1157_v2  ;;  %v1154_v59 = vpop.xlane.xlu0 %1153  ;;  %v1392_v2 = vsel %vm1049_vm0, %v907_v41, 0.0  ;;  %v648_v56 = vmul.f32 %v392_v47, %v136_v46  ;;  %v400_v41 = vld [vmem:[%s5722_s1 + $0x3f0] sm:$0xff] }
  0xdb   :  { %v1854_v3 = vadd.f32 %v2983_v62, %v1154_v59  ;;  %v912_v1 = vmul.f32 %v3076_v51, %v649_v52  ;;  %v147_v52 = vld [vmem:[%s5721_s0 + $0x408] sm:$0xff] }
  0xdc   :  { %2112 = vst.msk [vmem:[%s5725_s4 + $0x118] sm:$0xff] %vm2076_vm1, %v1855_v58  ;;  %1372 = vadd.xlane.f32.xlu1 %v1371_v55  ;;  %v909_v55 = vmul.f32 %v3076_v51, %v646_v42  ;;  %v395_v58 = vld [vmem:[%s5722_s1 + $0x3c8] sm:$0xff] }
  0xdd   :  { %2111 = vst.msk [vmem:[%s5725_s4 + $0x110] sm:$0xff] %vm2076_vm1, %v1854_v3  ;;  %1369 = vadd.xlane.f32.xlu0 %v1368_v60  ;;  %v1163_v6 = vpop.xlane.xlu1 %1162  ;;  %v138_v60 = vld [vmem:[%s5721_s0 + $0x3c0] sm:$0xff]  ;;  %v651_v3 = vmul.f32 %v395_v58, %v139_v57  ;;  %v1407_v15 = vsel %vm1049_vm0, %v912_v1, 0.0 }
  0xde   :  { %v1857_v10 = vadd.f32 %v2983_v62, %v1163_v6  ;;  %v1160_v11 = vpop.xlane.xlu0 %1159  ;;  %v1398_v6 = vsel %vm1049_vm0, %v909_v55, 0.0  ;;  %v650_v8 = vmul.f32 %v394_v61, %v138_v60  ;;  %v402_v55 = vld [vmem:[%s5722_s1 + $0x400] sm:$0xff] }
  0xdf   :  { %v1856_v17 = vadd.f32 %v2983_v62, %v1160_v11  ;;  %v914_v16 = vmul.f32 %v3076_v51, %v651_v3  ;;  %v149_v3 = vld [vmem:[%s5721_s0 + $0x418] sm:$0xff] }
  0xe0   :  { %2114 = vst.msk [vmem:[%s5725_s4 + $0x128] sm:$0xff] %vm2076_vm1, %v1857_v10  ;;  %1378 = vadd.xlane.f32.xlu1 %v1377_v7  ;;  %v911_v7 = vmul.f32 %v3076_v51, %v648_v56  ;;  %v397_v10 = vld [vmem:[%s5722_s1 + $0x3d8] sm:$0xff] }
  0xe1   :  { %2113 = vst.msk [vmem:[%s5725_s4 + $0x120] sm:$0xff] %vm2076_vm1, %v1856_v17  ;;  %1375 = vadd.xlane.f32.xlu0 %v1374_v12  ;;  %v1169_v20 = vpop.xlane.xlu1 %1168  ;;  %v140_v12 = vld [vmem:[%s5721_s0 + $0x3d0] sm:$0xff]  ;;  %v653_v17 = vmul.f32 %v397_v10, %v141_v9  ;;  %v1413_v29 = vsel %vm1049_vm0, %v914_v16, 0.0 }
  0xe2   :  { %v1859_v24 = vadd.f32 %v2983_v62, %v1169_v20  ;;  %v1166_v25 = vpop.xlane.xlu0 %1165  ;;  %v1404_v20 = vsel %vm1049_vm0, %v911_v7, 0.0  ;;  %v652_v22 = vmul.f32 %v396_v13, %v140_v12  ;;  %v404_v7 = vld [vmem:[%s5722_s1 + $0x410] sm:$0xff] }
  0xe3   :  { %v1858_v31 = vadd.f32 %v2983_v62, %v1166_v25  ;;  %v916_v30 = vmul.f32 %v3076_v51, %v653_v17  ;;  %v151_v17 = vld [vmem:[%s5721_s0 + $0x428] sm:$0xff] }
  0xe4   :  { %2116 = vst.msk [vmem:[%s5725_s4 + $0x138] sm:$0xff] %vm2076_vm1, %v1859_v24  ;;  %1384 = vadd.xlane.f32.xlu1 %v1383_v21  ;;  %v913_v21 = vmul.f32 %v3076_v51, %v650_v8  ;;  %v399_v24 = vld [vmem:[%s5722_s1 + $0x3e8] sm:$0xff] }
  0xe5   :  { %2115 = vst.msk [vmem:[%s5725_s4 + $0x130] sm:$0xff] %vm2076_vm1, %v1858_v31  ;;  %1381 = vadd.xlane.f32.xlu0 %v1380_v26  ;;  %v1175_v34 = vpop.xlane.xlu1 %1174  ;;  %v142_v26 = vld [vmem:[%s5721_s0 + $0x3e0] sm:$0xff]  ;;  %v655_v31 = vmul.f32 %v399_v24, %v143_v23  ;;  %v1419_v43 = vsel %vm1049_vm0, %v916_v30, 0.0 }
  0xe6   :  { %v1861_v38 = vadd.f32 %v2983_v62, %v1175_v34  ;;  %v1172_v39 = vpop.xlane.xlu0 %1171  ;;  %v1410_v34 = vsel %vm1049_vm0, %v913_v21, 0.0  ;;  %v654_v36 = vmul.f32 %v398_v27, %v142_v26  ;;  %v406_v21 = vld [vmem:[%s5722_s1 + $0x420] sm:$0xff] }
  0xe7   :  { %v1860_v45 = vadd.f32 %v2983_v62, %v1172_v39  ;;  %v918_v44 = vmul.f32 %v3076_v51, %v655_v31  ;;  %v153_v31 = vld [vmem:[%s5721_s0 + $0x438] sm:$0xff] }
  0xe8   :  { %2118 = vst.msk [vmem:[%s5725_s4 + $0x148] sm:$0xff] %vm2076_vm1, %v1861_v38  ;;  %1390 = vadd.xlane.f32.xlu1 %v1389_v35  ;;  %v915_v35 = vmul.f32 %v3076_v51, %v652_v22  ;;  %v401_v38 = vld [vmem:[%s5722_s1 + $0x3f8] sm:$0xff] }
  0xe9   :  { %2117 = vst.msk [vmem:[%s5725_s4 + $0x140] sm:$0xff] %vm2076_vm1, %v1860_v45  ;;  %1387 = vadd.xlane.f32.xlu0 %v1386_v40  ;;  %v1181_v48 = vpop.xlane.xlu1 %1180  ;;  %v144_v40 = vld [vmem:[%s5721_s0 + $0x3f0] sm:$0xff]  ;;  %v657_v45 = vmul.f32 %v401_v38, %v145_v37  ;;  %v1425_v57 = vsel %vm1049_vm0, %v918_v44, 0.0 }
  0xea   :  { %v1863_v53 = vadd.f32 %v2983_v62, %v1181_v48  ;;  %v1178_v54 = vpop.xlane.xlu0 %1177  ;;  %v1416_v48 = vsel %vm1049_vm0, %v915_v35, 0.0  ;;  %v656_v50 = vmul.f32 %v400_v41, %v144_v40  ;;  %v408_v35 = vld [vmem:[%s5722_s1 + $0x430] sm:$0xff] }
  0xeb   :  { %v1862_v59 = vadd.f32 %v2983_v62, %v1178_v54  ;;  %v920_v58 = vmul.f32 %v3076_v51, %v657_v45  ;;  %v155_v45 = vld [vmem:[%s5721_s0 + $0x448] sm:$0xff] }
  0xec   :  { %2120 = vst.msk [vmem:[%s5725_s4 + $0x158] sm:$0xff] %vm2076_vm1, %v1863_v53  ;;  %1396 = vadd.xlane.f32.xlu1 %v1395_v49  ;;  %v917_v49 = vmul.f32 %v3076_v51, %v654_v36  ;;  %v403_v53 = vld [vmem:[%s5722_s1 + $0x408] sm:$0xff] }
  0xed   :  { %2119 = vst.msk [vmem:[%s5725_s4 + $0x150] sm:$0xff] %vm2076_vm1, %v1862_v59  ;;  %1393 = vadd.xlane.f32.xlu0 %v1392_v2  ;;  %v1187_v63 = vpop.xlane.xlu1 %1186  ;;  %v146_v2 = vld [vmem:[%s5721_s0 + $0x400] sm:$0xff]  ;;  %v659_v59 = vmul.f32 %v403_v53, %v147_v52  ;;  %v1431_v9 = vsel %vm1049_vm0, %v920_v58, 0.0 }
  0xee   :  { %v1865_v4 = vadd.f32 %v2983_v62, %v1187_v63  ;;  %v1184_v5 = vpop.xlane.xlu0 %1183  ;;  %v1422_v63 = vsel %vm1049_vm0, %v917_v49, 0.0  ;;  %v658_v1 = vmul.f32 %v402_v55, %v146_v2  ;;  %v410_v49 = vld [vmem:[%s5722_s1 + $0x440] sm:$0xff] }
  0xef   :  { %v1864_v11 = vadd.f32 %v2983_v62, %v1184_v5  ;;  %v922_v10 = vmul.f32 %v3076_v51, %v659_v59  ;;  %v157_v59 = vld [vmem:[%s5721_s0 + $0x458] sm:$0xff] }
  0xf0   :  { %2122 = vst.msk [vmem:[%s5725_s4 + $0x168] sm:$0xff] %vm2076_vm1, %v1865_v4  ;;  %1402 = vadd.xlane.f32.xlu1 %v1401_v0  ;;  %v919_v0 = vmul.f32 %v3076_v51, %v656_v50  ;;  %v405_v4 = vld [vmem:[%s5722_s1 + $0x418] sm:$0xff] }
  0xf1   :  { %2121 = vst.msk [vmem:[%s5725_s4 + $0x160] sm:$0xff] %vm2076_vm1, %v1864_v11  ;;  %1399 = vadd.xlane.f32.xlu0 %v1398_v6  ;;  %v1193_v14 = vpop.xlane.xlu1 %1192  ;;  %v148_v6 = vld [vmem:[%s5721_s0 + $0x410] sm:$0xff]  ;;  %v661_v11 = vmul.f32 %v405_v4, %v149_v3  ;;  %v1437_v23 = vsel %vm1049_vm0, %v922_v10, 0.0 }
  0xf2   :  { %v1867_v18 = vadd.f32 %v2983_v62, %v1193_v14  ;;  %v1190_v19 = vpop.xlane.xlu0 %1189  ;;  %v1428_v14 = vsel %vm1049_vm0, %v919_v0, 0.0  ;;  %v660_v16 = vmul.f32 %v404_v7, %v148_v6  ;;  %v412_v0 = vld [vmem:[%s5722_s1 + $0x450] sm:$0xff] }
  0xf3   :  { %v1866_v25 = vadd.f32 %v2983_v62, %v1190_v19  ;;  %v924_v24 = vmul.f32 %v3076_v51, %v661_v11  ;;  %v159_v11 = vld [vmem:[%s5721_s0 + $0x468] sm:$0xff] }
  0xf4   :  { %2124 = vst.msk [vmem:[%s5725_s4 + $0x178] sm:$0xff] %vm2076_vm1, %v1867_v18  ;;  %1408 = vadd.xlane.f32.xlu1 %v1407_v15  ;;  %v921_v15 = vmul.f32 %v3076_v51, %v658_v1  ;;  %v407_v18 = vld [vmem:[%s5722_s1 + $0x428] sm:$0xff] }
  0xf5   :  { %2123 = vst.msk [vmem:[%s5725_s4 + $0x170] sm:$0xff] %vm2076_vm1, %v1866_v25  ;;  %1405 = vadd.xlane.f32.xlu0 %v1404_v20  ;;  %v1199_v28 = vpop.xlane.xlu1 %1198  ;;  %v150_v20 = vld [vmem:[%s5721_s0 + $0x420] sm:$0xff]  ;;  %v663_v25 = vmul.f32 %v407_v18, %v151_v17  ;;  %v1443_v37 = vsel %vm1049_vm0, %v924_v24, 0.0 }
  0xf6   :  { %v1869_v32 = vadd.f32 %v2983_v62, %v1199_v28  ;;  %v1196_v33 = vpop.xlane.xlu0 %1195  ;;  %v1434_v28 = vsel %vm1049_vm0, %v921_v15, 0.0  ;;  %v662_v30 = vmul.f32 %v406_v21, %v150_v20  ;;  %v414_v15 = vld [vmem:[%s5722_s1 + $0x460] sm:$0xff] }
  0xf7   :  { %v1868_v39 = vadd.f32 %v2983_v62, %v1196_v33  ;;  %v926_v38 = vmul.f32 %v3076_v51, %v663_v25  ;;  %v3832_v17 = vld [vmem:[%s5723_s2] ss:$0 sm:$0xff]  ;;  %v161_v25 = vld [vmem:[%s5721_s0 + $0x478] sm:$0xff] }
  0xf8   :  { %2126 = vst.msk [vmem:[%s5725_s4 + $0x188] sm:$0xff] %vm2076_vm1, %v1869_v32  ;;  %1414 = vadd.xlane.f32.xlu1 %v1413_v29  ;;  %v923_v29 = vmul.f32 %v3076_v51, %v660_v16  ;;  %v409_v32 = vld [vmem:[%s5722_s1 + $0x438] sm:$0xff] }
  0xf9   :  { %2125 = vst.msk [vmem:[%s5725_s4 + $0x180] sm:$0xff] %vm2076_vm1, %v1868_v39  ;;  %1411 = vadd.xlane.f32.xlu0 %v1410_v34  ;;  %v1205_v42 = vpop.xlane.xlu1 %1204  ;;  %v152_v34 = vld [vmem:[%s5721_s0 + $0x430] sm:$0xff]  ;;  %v665_v39 = vmul.f32 %v409_v32, %v153_v31  ;;  %v1449_v52 = vsel %vm1049_vm0, %v926_v38, 0.0 }
  0xfa   :  { %v1871_v46 = vadd.f32 %v2983_v62, %v1205_v42  ;;  %v1202_v47 = vpop.xlane.xlu0 %1201  ;;  %v1440_v42 = vsel %vm1049_vm0, %v923_v29, 0.0  ;;  %v664_v44 = vmul.f32 %v408_v35, %v152_v34  ;;  %v416_v29 = vld [vmem:[%s5722_s1 + $0x470] sm:$0xff] }
  0xfb   :  { %v1870_v54 = vadd.f32 %v2983_v62, %v1202_v47  ;;  %v928_v53 = vmul.f32 %v3076_v51, %v665_v39  ;;  %v163_v39 = vld [vmem:[%s5721_s0 + $0x488] sm:$0xff] }
  0xfc   :  { %2128 = vst.msk [vmem:[%s5725_s4 + $0x198] sm:$0xff] %vm2076_vm1, %v1871_v46  ;;  %1420 = vadd.xlane.f32.xlu1 %v1419_v43  ;;  %v925_v43 = vmul.f32 %v3076_v51, %v662_v30  ;;  %v411_v46 = vld [vmem:[%s5722_s1 + $0x448] sm:$0xff] }
  0xfd   :  { %2127 = vst.msk [vmem:[%s5725_s4 + $0x190] sm:$0xff] %vm2076_vm1, %v1870_v54  ;;  %1417 = vadd.xlane.f32.xlu0 %v1416_v48  ;;  %v1211_v56 = vpop.xlane.xlu1 %1210  ;;  %v154_v48 = vld [vmem:[%s5721_s0 + $0x440] sm:$0xff]  ;;  %v667_v54 = vmul.f32 %v411_v46, %v155_v45  ;;  %v1455_v3 = vsel %vm1049_vm0, %v928_v53, 0.0 }
  0xfe   :  { %v1873_v60 = vadd.f32 %v2983_v62, %v1211_v56  ;;  %v1208_v61 = vpop.xlane.xlu0 %1207  ;;  %v1446_v56 = vsel %vm1049_vm0, %v925_v43, 0.0  ;;  %v666_v58 = vmul.f32 %v410_v49, %v154_v48  ;;  %v418_v43 = vld [vmem:[%s5722_s1 + $0x480] sm:$0xff] }
  0xff   :  { %v1872_v5 = vadd.f32 %v2983_v62, %v1208_v61  ;;  %v930_v4 = vmul.f32 %v3076_v51, %v667_v54  ;;  %v165_v54 = vld [vmem:[%s5721_s0 + $0x498] sm:$0xff] }
 0x100   :  { %2130 = vst.msk [vmem:[%s5725_s4 + $0x1a8] sm:$0xff] %vm2076_vm1, %v1873_v60  ;;  %1426 = vadd.xlane.f32.xlu1 %v1425_v57  ;;  %v927_v57 = vmul.f32 %v3076_v51, %v664_v44  ;;  %v413_v60 = vld [vmem:[%s5722_s1 + $0x458] sm:$0xff] }
 0x101   :  { %2129 = vst.msk [vmem:[%s5725_s4 + $0x1a0] sm:$0xff] %vm2076_vm1, %v1872_v5  ;;  %1423 = vadd.xlane.f32.xlu0 %v1422_v63  ;;  %v1217_v8 = vpop.xlane.xlu1 %1216  ;;  %v156_v63 = vld [vmem:[%s5721_s0 + $0x450] sm:$0xff]  ;;  %v669_v5 = vmul.f32 %v413_v60, %v157_v59  ;;  %v1461_v16 = vsel %vm1049_vm0, %v930_v4, 0.0 }
 0x102   :  { %v1875_v12 = vadd.f32 %v2983_v62, %v1217_v8  ;;  %v1214_v13 = vpop.xlane.xlu0 %1213  ;;  %v1452_v8 = vsel %vm1049_vm0, %v927_v57, 0.0  ;;  %v668_v10 = vmul.f32 %v412_v0, %v156_v63  ;;  %v420_v57 = vld [vmem:[%s5722_s1 + $0x490] sm:$0xff] }
 0x103   :  { %v1874_v19 = vadd.f32 %v2983_v62, %v1214_v13  ;;  %v932_v18 = vmul.f32 %v3832_v17, %v669_v5  ;;  %v167_v5 = vld [vmem:[%s5721_s0 + $0x4a8] sm:$0xff] }
 0x104   :  { %2132 = vst.msk [vmem:[%s5725_s4 + $0x1b8] sm:$0xff] %vm2076_vm1, %v1875_v12  ;;  %1432 = vadd.xlane.f32.xlu1 %v1431_v9  ;;  %v929_v9 = vmul.f32 %v3076_v51, %v666_v58  ;;  %v415_v12 = vld [vmem:[%s5722_s1 + $0x468] sm:$0xff] }
 0x105   :  { %2131 = vst.msk [vmem:[%s5725_s4 + $0x1b0] sm:$0xff] %vm2076_vm1, %v1874_v19  ;;  %1429 = vadd.xlane.f32.xlu0 %v1428_v14  ;;  %v1223_v22 = vpop.xlane.xlu1 %1222  ;;  %v158_v14 = vld [vmem:[%s5721_s0 + $0x460] sm:$0xff]  ;;  %v671_v19 = vmul.f32 %v415_v12, %v159_v11  ;;  %v1467_v31 = vsel %vm1049_vm0, %v932_v18, 0.0 }
 0x106   :  { %v1877_v26 = vadd.f32 %v2983_v62, %v1223_v22  ;;  %v1220_v27 = vpop.xlane.xlu0 %1219  ;;  %v1458_v22 = vsel %vm1049_vm0, %v929_v9, 0.0  ;;  %v670_v24 = vmul.f32 %v414_v15, %v158_v14  ;;  %v422_v9 = vld [vmem:[%s5722_s1 + $0x4a0] sm:$0xff] }
 0x107   :  { %v1876_v33 = vadd.f32 %v2983_v62, %v1220_v27  ;;  %v934_v32 = vmul.f32 %v3832_v17, %v671_v19  ;;  %v169_v19 = vld [vmem:[%s5721_s0 + $0x4b8] sm:$0xff] }
 0x108   :  { %2134 = vst.msk [vmem:[%s5725_s4 + $0x1c8] sm:$0xff] %vm2076_vm1, %v1877_v26  ;;  %1438 = vadd.xlane.f32.xlu1 %v1437_v23  ;;  %v931_v23 = vmul.f32 %v3832_v17, %v668_v10  ;;  %v417_v26 = vld [vmem:[%s5722_s1 + $0x478] sm:$0xff] }
 0x109   :  { %2133 = vst.msk [vmem:[%s5725_s4 + $0x1c0] sm:$0xff] %vm2076_vm1, %v1876_v33  ;;  %1435 = vadd.xlane.f32.xlu0 %v1434_v28  ;;  %v1229_v36 = vpop.xlane.xlu1 %1228  ;;  %v160_v28 = vld [vmem:[%s5721_s0 + $0x470] sm:$0xff]  ;;  %v673_v33 = vmul.f32 %v417_v26, %v161_v25  ;;  %v1473_v45 = vsel %vm1049_vm0, %v934_v32, 0.0 }
 0x10a   :  { %v1879_v40 = vadd.f32 %v2983_v62, %v1229_v36  ;;  %v1226_v41 = vpop.xlane.xlu0 %1225  ;;  %v1464_v36 = vsel %vm1049_vm0, %v931_v23, 0.0  ;;  %v672_v38 = vmul.f32 %v416_v29, %v160_v28  ;;  %v424_v23 = vld [vmem:[%s5722_s1 + $0x4b0] sm:$0xff] }
 0x10b   :  { %v1878_v47 = vadd.f32 %v2983_v62, %v1226_v41  ;;  %v936_v46 = vmul.f32 %v3832_v17, %v673_v33  ;;  %v171_v33 = vld [vmem:[%s5721_s0 + $0x4c8] sm:$0xff] }
 0x10c   :  { %2136 = vst.msk [vmem:[%s5725_s4 + $0x1d8] sm:$0xff] %vm2076_vm1, %v1879_v40  ;;  %1444 = vadd.xlane.f32.xlu1 %v1443_v37  ;;  %v933_v37 = vmul.f32 %v3832_v17, %v670_v24  ;;  %v419_v40 = vld [vmem:[%s5722_s1 + $0x488] sm:$0xff] }
 0x10d   :  { %2135 = vst.msk [vmem:[%s5725_s4 + $0x1d0] sm:$0xff] %vm2076_vm1, %v1878_v47  ;;  %1441 = vadd.xlane.f32.xlu0 %v1440_v42  ;;  %v1235_v50 = vpop.xlane.xlu1 %1234  ;;  %v162_v42 = vld [vmem:[%s5721_s0 + $0x480] sm:$0xff]  ;;  %v675_v47 = vmul.f32 %v419_v40, %v163_v39  ;;  %v1479_v59 = vsel %vm1049_vm0, %v936_v46, 0.0 }
 0x10e   :  { %v1881_v2 = vadd.f32 %v2983_v62, %v1235_v50  ;;  %v1232_v55 = vpop.xlane.xlu0 %1231  ;;  %v1470_v50 = vsel %vm1049_vm0, %v933_v37, 0.0  ;;  %v674_v53 = vmul.f32 %v418_v43, %v162_v42  ;;  %v426_v37 = vld [vmem:[%s5722_s1 + $0x4c0] sm:$0xff] }
 0x10f   :  { %v1880_v61 = vadd.f32 %v2983_v62, %v1232_v55  ;;  %v938_v60 = vmul.f32 %v3832_v17, %v675_v47  ;;  %v173_v47 = vld [vmem:[%s5721_s0 + $0x4d8] sm:$0xff] }
 0x110   :  { %2138 = vst.msk [vmem:[%s5725_s4 + $0x1e8] sm:$0xff] %vm2076_vm1, %v1881_v2  ;;  %1450 = vadd.xlane.f32.xlu1 %v1449_v52  ;;  %v935_v52 = vmul.f32 %v3832_v17, %v672_v38  ;;  %v421_v2 = vld [vmem:[%s5722_s1 + $0x498] sm:$0xff] }
 0x111   :  { %2137 = vst.msk [vmem:[%s5725_s4 + $0x1e0] sm:$0xff] %vm2076_vm1, %v1880_v61  ;;  %1447 = vadd.xlane.f32.xlu0 %v1446_v56  ;;  %v1241_v1 = vpop.xlane.xlu1 %1240  ;;  %v164_v56 = vld [vmem:[%s5721_s0 + $0x490] sm:$0xff]  ;;  %v677_v61 = vmul.f32 %v421_v2, %v165_v54  ;;  %v1485_v11 = vsel %vm1049_vm0, %v938_v60, 0.0 }
 0x112   :  { %v1883_v6 = vadd.f32 %v2983_v62, %v1241_v1  ;;  %v1238_v7 = vpop.xlane.xlu0 %1237  ;;  %v1476_v1 = vsel %vm1049_vm0, %v935_v52, 0.0  ;;  %v676_v4 = vmul.f32 %v420_v57, %v164_v56  ;;  %v428_v52 = vld [vmem:[%s5722_s1 + $0x4d0] sm:$0xff] }
 0x113   :  { %v1882_v13 = vadd.f32 %v2983_v62, %v1238_v7  ;;  %v940_v12 = vmul.f32 %v3832_v17, %v677_v61  ;;  %v175_v61 = vld [vmem:[%s5721_s0 + $0x4e8] sm:$0xff] }
 0x114   :  { %2140 = vst.msk [vmem:[%s5725_s4 + $0x1f8] sm:$0xff] %vm2076_vm1, %v1883_v6  ;;  %1456 = vadd.xlane.f32.xlu1 %v1455_v3  ;;  %v937_v3 = vmul.f32 %v3832_v17, %v674_v53  ;;  %v423_v6 = vld [vmem:[%s5722_s1 + $0x4a8] sm:$0xff] }
 0x115   :  { %2139 = vst.msk [vmem:[%s5725_s4 + $0x1f0] sm:$0xff] %vm2076_vm1, %v1882_v13  ;;  %1453 = vadd.xlane.f32.xlu0 %v1452_v8  ;;  %v1247_v51 = vpop.xlane.xlu1 %1246  ;;  %v166_v8 = vld [vmem:[%s5721_s0 + $0x4a0] sm:$0xff]  ;;  %v679_v13 = vmul.f32 %v423_v6, %v167_v5  ;;  %v1491_v25 = vsel %vm1049_vm0, %v940_v12, 0.0 }
 0x116   :  { %v1885_v20 = vadd.f32 %v2983_v62, %v1247_v51  ;;  %v1244_v21 = vpop.xlane.xlu0 %1243  ;;  %v1482_v51 = vsel %vm1049_vm0, %v937_v3, 0.0  ;;  %v678_v18 = vmul.f32 %v422_v9, %v166_v8  ;;  %v430_v3 = vld [vmem:[%s5722_s1 + $0x4e0] sm:$0xff] }
 0x117   :  { %v1884_v27 = vadd.f32 %v2983_v62, %v1244_v21  ;;  %v942_v26 = vmul.f32 %v3832_v17, %v679_v13  ;;  %v177_v13 = vld [vmem:[%s5721_s0 + $0x4f8] sm:$0xff] }
 0x118   :  { %2142 = vst.msk [vmem:[%s5725_s4 + $0x208] sm:$0xff] %vm2076_vm1, %v1885_v20  ;;  %1462 = vadd.xlane.f32.xlu1 %v1461_v16  ;;  %v939_v16 = vmul.f32 %v3832_v17, %v676_v4  ;;  %v425_v20 = vld [vmem:[%s5722_s1 + $0x4b8] sm:$0xff] }
 0x119   :  { %2141 = vst.msk [vmem:[%s5725_s4 + $0x200] sm:$0xff] %vm2076_vm1, %v1884_v27  ;;  %1459 = vadd.xlane.f32.xlu0 %v1458_v22  ;;  %v1253_v30 = vpop.xlane.xlu1 %1252  ;;  %v168_v22 = vld [vmem:[%s5721_s0 + $0x4b0] sm:$0xff]  ;;  %v681_v27 = vmul.f32 %v425_v20, %v169_v19  ;;  %v1497_v39 = vsel %vm1049_vm0, %v942_v26, 0.0 }
 0x11a   :  { %v1887_v34 = vadd.f32 %v2983_v62, %v1253_v30  ;;  %v1250_v35 = vpop.xlane.xlu0 %1249  ;;  %v1488_v30 = vsel %vm1049_vm0, %v939_v16, 0.0  ;;  %v680_v32 = vmul.f32 %v424_v23, %v168_v22  ;;  %v432_v16 = vld [vmem:[%s5722_s1 + $0x4f0] sm:$0xff] }
 0x11b   :  { %v1886_v41 = vadd.f32 %v2983_v62, %v1250_v35  ;;  %v944_v40 = vmul.f32 %v3832_v17, %v681_v27  ;;  %v179_v27 = vld [vmem:[%s5721_s0 + $0x508] sm:$0xff] }
 0x11c   :  { %2144 = vst.msk [vmem:[%s5725_s4 + $0x218] sm:$0xff] %vm2076_vm1, %v1887_v34  ;;  %1468 = vadd.xlane.f32.xlu1 %v1467_v31  ;;  %v941_v31 = vmul.f32 %v3832_v17, %v678_v18  ;;  %v427_v34 = vld [vmem:[%s5722_s1 + $0x4c8] sm:$0xff] }
 0x11d   :  { %2143 = vst.msk [vmem:[%s5725_s4 + $0x210] sm:$0xff] %vm2076_vm1, %v1886_v41  ;;  %1465 = vadd.xlane.f32.xlu0 %v1464_v36  ;;  %v1259_v44 = vpop.xlane.xlu1 %1258  ;;  %v170_v36 = vld [vmem:[%s5721_s0 + $0x4c0] sm:$0xff]  ;;  %v683_v41 = vmul.f32 %v427_v34, %v171_v33  ;;  %v1503_v54 = vsel %vm1049_vm0, %v944_v40, 0.0 }
 0x11e   :  { %v1889_v48 = vadd.f32 %v2983_v62, %v1259_v44  ;;  %v1256_v49 = vpop.xlane.xlu0 %1255  ;;  %v1494_v44 = vsel %vm1049_vm0, %v941_v31, 0.0  ;;  %v682_v46 = vmul.f32 %v426_v37, %v170_v36  ;;  %v434_v31 = vld [vmem:[%s5722_s1 + $0x500] sm:$0xff] }
 0x11f   :  { %v1888_v55 = vadd.f32 %v2983_v62, %v1256_v49  ;;  %v946_v2 = vmul.f32 %v3832_v17, %v683_v41  ;;  %v181_v41 = vld [vmem:[%s5721_s0 + $0x518] sm:$0xff] }
 0x120   :  { %2146 = vst.msk [vmem:[%s5725_s4 + $0x228] sm:$0xff] %vm2076_vm1, %v1889_v48  ;;  %1474 = vadd.xlane.f32.xlu1 %v1473_v45  ;;  %v943_v45 = vmul.f32 %v3832_v17, %v680_v32  ;;  %v429_v48 = vld [vmem:[%s5722_s1 + $0x4d8] sm:$0xff] }
 0x121   :  { %2145 = vst.msk [vmem:[%s5725_s4 + $0x220] sm:$0xff] %vm2076_vm1, %v1888_v55  ;;  %1471 = vadd.xlane.f32.xlu0 %v1470_v50  ;;  %v1265_v58 = vpop.xlane.xlu1 %1264  ;;  %v172_v50 = vld [vmem:[%s5721_s0 + $0x4d0] sm:$0xff]  ;;  %v685_v55 = vmul.f32 %v429_v48, %v173_v47  ;;  %v1509_v5 = vsel %vm1049_vm0, %v946_v2, 0.0 }
 0x122   :  { %v1891_v63 = vadd.f32 %v2983_v62, %v1265_v58  ;;  %v1262_v0 = vpop.xlane.xlu0 %1261  ;;  %v1500_v58 = vsel %vm1049_vm0, %v943_v45, 0.0  ;;  %v684_v60 = vmul.f32 %v428_v52, %v172_v50  ;;  %v436_v45 = vld [vmem:[%s5722_s1 + $0x510] sm:$0xff] }
 0x123   :  { %v1890_v7 = vadd.f32 %v2983_v62, %v1262_v0  ;;  %v948_v6 = vmul.f32 %v3832_v17, %v685_v55  ;;  %v183_v55 = vld [vmem:[%s5721_s0 + $0x528] sm:$0xff] }
 0x124   :  { %2148 = vst.msk [vmem:[%s5725_s4 + $0x238] sm:$0xff] %vm2076_vm1, %v1891_v63  ;;  %1480 = vadd.xlane.f32.xlu1 %v1479_v59  ;;  %v945_v59 = vmul.f32 %v3832_v17, %v682_v46  ;;  %v431_v63 = vld [vmem:[%s5722_s1 + $0x4e8] sm:$0xff] }
 0x125   :  { %2147 = vst.msk [vmem:[%s5725_s4 + $0x230] sm:$0xff] %vm2076_vm1, %v1890_v7  ;;  %1477 = vadd.xlane.f32.xlu0 %v1476_v1  ;;  %v1271_v10 = vpop.xlane.xlu1 %1270  ;;  %v174_v1 = vld [vmem:[%s5721_s0 + $0x4e0] sm:$0xff]  ;;  %v687_v7 = vmul.f32 %v431_v63, %v175_v61  ;;  %v1515_v19 = vsel %vm1049_vm0, %v948_v6, 0.0 }
 0x126   :  { %v1893_v14 = vadd.f32 %v2983_v62, %v1271_v10  ;;  %v1268_v15 = vpop.xlane.xlu0 %1267  ;;  %v1506_v10 = vsel %vm1049_vm0, %v945_v59, 0.0  ;;  %v686_v12 = vmul.f32 %v430_v3, %v174_v1  ;;  %v438_v59 = vld [vmem:[%s5722_s1 + $0x520] sm:$0xff] }
 0x127   :  { %v1892_v21 = vadd.f32 %v2983_v62, %v1268_v15  ;;  %v950_v20 = vmul.f32 %v3832_v17, %v687_v7  ;;  %v185_v7 = vld [vmem:[%s5721_s0 + $0x538] sm:$0xff] }
 0x128   :  { %2150 = vst.msk [vmem:[%s5725_s4 + $0x248] sm:$0xff] %vm2076_vm1, %v1893_v14  ;;  %1486 = vadd.xlane.f32.xlu1 %v1485_v11  ;;  %v947_v11 = vmul.f32 %v3832_v17, %v684_v60  ;;  %v433_v14 = vld [vmem:[%s5722_s1 + $0x4f8] sm:$0xff] }
 0x129   :  { %2149 = vst.msk [vmem:[%s5725_s4 + $0x240] sm:$0xff] %vm2076_vm1, %v1892_v21  ;;  %1483 = vadd.xlane.f32.xlu0 %v1482_v51  ;;  %v1277_v24 = vpop.xlane.xlu1 %1276  ;;  %v176_v51 = vld [vmem:[%s5721_s0 + $0x4f0] sm:$0xff]  ;;  %v689_v21 = vmul.f32 %v433_v14, %v177_v13  ;;  %v1521_v33 = vsel %vm1049_vm0, %v950_v20, 0.0 }
 0x12a   :  { %v1895_v28 = vadd.f32 %v2983_v62, %v1277_v24  ;;  %v1274_v29 = vpop.xlane.xlu0 %1273  ;;  %v1512_v24 = vsel %vm1049_vm0, %v947_v11, 0.0  ;;  %v688_v26 = vmul.f32 %v432_v16, %v176_v51  ;;  %v440_v11 = vld [vmem:[%s5722_s1 + $0x530] sm:$0xff] }
 0x12b   :  { %v1894_v35 = vadd.f32 %v2983_v62, %v1274_v29  ;;  %v952_v34 = vmul.f32 %v3832_v17, %v689_v21  ;;  %v187_v21 = vld [vmem:[%s5721_s0 + $0x548] sm:$0xff] }
 0x12c   :  { %2152 = vst.msk [vmem:[%s5725_s4 + $0x258] sm:$0xff] %vm2076_vm1, %v1895_v28  ;;  %1492 = vadd.xlane.f32.xlu1 %v1491_v25  ;;  %v949_v25 = vmul.f32 %v3832_v17, %v686_v12  ;;  %v435_v28 = vld [vmem:[%s5722_s1 + $0x508] sm:$0xff] }
 0x12d   :  { %2151 = vst.msk [vmem:[%s5725_s4 + $0x250] sm:$0xff] %vm2076_vm1, %v1894_v35  ;;  %1489 = vadd.xlane.f32.xlu0 %v1488_v30  ;;  %v1283_v38 = vpop.xlane.xlu1 %1282  ;;  %v178_v30 = vld [vmem:[%s5721_s0 + $0x500] sm:$0xff]  ;;  %v691_v35 = vmul.f32 %v435_v28, %v179_v27  ;;  %v1527_v47 = vsel %vm1049_vm0, %v952_v34, 0.0 }
 0x12e   :  { %v1897_v42 = vadd.f32 %v2983_v62, %v1283_v38  ;;  %v1280_v43 = vpop.xlane.xlu0 %1279  ;;  %v1518_v38 = vsel %vm1049_vm0, %v949_v25, 0.0  ;;  %v690_v40 = vmul.f32 %v434_v31, %v178_v30  ;;  %v442_v25 = vld [vmem:[%s5722_s1 + $0x540] sm:$0xff] }
 0x12f   :  { %v1896_v49 = vadd.f32 %v2983_v62, %v1280_v43  ;;  %v954_v48 = vmul.f32 %v3832_v17, %v691_v35  ;;  %v189_v35 = vld [vmem:[%s5721_s0 + $0x558] sm:$0xff] }
 0x130   :  { %2154 = vst.msk [vmem:[%s5725_s4 + $0x268] sm:$0xff] %vm2076_vm1, %v1897_v42  ;;  %1498 = vadd.xlane.f32.xlu1 %v1497_v39  ;;  %v951_v39 = vmul.f32 %v3832_v17, %v688_v26  ;;  %v437_v42 = vld [vmem:[%s5722_s1 + $0x518] sm:$0xff] }
 0x131   :  { %2153 = vst.msk [vmem:[%s5725_s4 + $0x260] sm:$0xff] %vm2076_vm1, %v1896_v49  ;;  %1495 = vadd.xlane.f32.xlu0 %v1494_v44  ;;  %v1289_v53 = vpop.xlane.xlu1 %1288  ;;  %v180_v44 = vld [vmem:[%s5721_s0 + $0x510] sm:$0xff]  ;;  %v693_v49 = vmul.f32 %v437_v42, %v181_v41  ;;  %v1533_v61 = vsel %vm1049_vm0, %v954_v48, 0.0 }
 0x132   :  { %v1899_v56 = vadd.f32 %v2983_v62, %v1289_v53  ;;  %v1286_v57 = vpop.xlane.xlu0 %1285  ;;  %v1524_v53 = vsel %vm1049_vm0, %v951_v39, 0.0  ;;  %v692_v2 = vmul.f32 %v436_v45, %v180_v44  ;;  %v444_v39 = vld [vmem:[%s5722_s1 + $0x550] sm:$0xff] }
 0x133   :  { %v1898_v0 = vadd.f32 %v2983_v62, %v1286_v57  ;;  %v956_v63 = vmul.f32 %v3832_v17, %v693_v49  ;;  %v191_v49 = vld [vmem:[%s5721_s0 + $0x568] sm:$0xff] }
 0x134   :  { %2156 = vst.msk [vmem:[%s5725_s4 + $0x278] sm:$0xff] %vm2076_vm1, %v1899_v56  ;;  %1504 = vadd.xlane.f32.xlu1 %v1503_v54  ;;  %v953_v54 = vmul.f32 %v3832_v17, %v690_v40  ;;  %v439_v56 = vld [vmem:[%s5722_s1 + $0x528] sm:$0xff] }
 0x135   :  { %2155 = vst.msk [vmem:[%s5725_s4 + $0x270] sm:$0xff] %vm2076_vm1, %v1898_v0  ;;  %1501 = vadd.xlane.f32.xlu0 %v1500_v58  ;;  %v1295_v4 = vpop.xlane.xlu1 %1294  ;;  %v182_v58 = vld [vmem:[%s5721_s0 + $0x520] sm:$0xff]  ;;  %v695_v0 = vmul.f32 %v439_v56, %v183_v55  ;;  %v1539_v13 = vsel %vm1049_vm0, %v956_v63, 0.0 }
 0x136   :  { %v1901_v8 = vadd.f32 %v2983_v62, %v1295_v4  ;;  %v1292_v9 = vpop.xlane.xlu0 %1291  ;;  %v1530_v4 = vsel %vm1049_vm0, %v953_v54, 0.0  ;;  %v694_v6 = vmul.f32 %v438_v59, %v182_v58  ;;  %v446_v54 = vld [vmem:[%s5722_s1 + $0x560] sm:$0xff] }
 0x137   :  { %v1900_v15 = vadd.f32 %v2983_v62, %v1292_v9  ;;  %v958_v14 = vmul.f32 %v3832_v17, %v695_v0  ;;  %v193_v0 = vld [vmem:[%s5721_s0 + $0x578] sm:$0xff] }
 0x138   :  { %2158 = vst.msk [vmem:[%s5725_s4 + $0x288] sm:$0xff] %vm2076_vm1, %v1901_v8  ;;  %1510 = vadd.xlane.f32.xlu1 %v1509_v5  ;;  %v955_v5 = vmul.f32 %v3832_v17, %v692_v2  ;;  %v441_v8 = vld [vmem:[%s5722_s1 + $0x538] sm:$0xff] }
 0x139   :  { %2157 = vst.msk [vmem:[%s5725_s4 + $0x280] sm:$0xff] %vm2076_vm1, %v1900_v15  ;;  %1507 = vadd.xlane.f32.xlu0 %v1506_v10  ;;  %v1301_v18 = vpop.xlane.xlu1 %1300  ;;  %v184_v10 = vld [vmem:[%s5721_s0 + $0x530] sm:$0xff]  ;;  %v697_v15 = vmul.f32 %v441_v8, %v185_v7  ;;  %v1545_v27 = vsel %vm1049_vm0, %v958_v14, 0.0 }
 0x13a   :  { %v1903_v22 = vadd.f32 %v2983_v62, %v1301_v18  ;;  %v1298_v23 = vpop.xlane.xlu0 %1297  ;;  %v1536_v18 = vsel %vm1049_vm0, %v955_v5, 0.0  ;;  %v696_v20 = vmul.f32 %v440_v11, %v184_v10  ;;  %v448_v5 = vld [vmem:[%s5722_s1 + $0x570] sm:$0xff] }
 0x13b   :  { %v1902_v29 = vadd.f32 %v2983_v62, %v1298_v23  ;;  %v960_v28 = vmul.f32 %v3832_v17, %v697_v15  ;;  %v195_v15 = vld [vmem:[%s5721_s0 + $0x588] sm:$0xff] }
 0x13c   :  { %2160 = vst.msk [vmem:[%s5725_s4 + $0x298] sm:$0xff] %vm2076_vm1, %v1903_v22  ;;  %1516 = vadd.xlane.f32.xlu1 %v1515_v19  ;;  %v957_v19 = vmul.f32 %v3832_v17, %v694_v6  ;;  %v443_v22 = vld [vmem:[%s5722_s1 + $0x548] sm:$0xff] }
 0x13d   :  { %2159 = vst.msk [vmem:[%s5725_s4 + $0x290] sm:$0xff] %vm2076_vm1, %v1902_v29  ;;  %1513 = vadd.xlane.f32.xlu0 %v1512_v24  ;;  %v1307_v32 = vpop.xlane.xlu1 %1306  ;;  %v186_v24 = vld [vmem:[%s5721_s0 + $0x540] sm:$0xff]  ;;  %v699_v29 = vmul.f32 %v443_v22, %v187_v21  ;;  %v1551_v41 = vsel %vm1049_vm0, %v960_v28, 0.0 }
 0x13e   :  { %v1905_v36 = vadd.f32 %v2983_v62, %v1307_v32  ;;  %v1304_v37 = vpop.xlane.xlu0 %1303  ;;  %v1542_v32 = vsel %vm1049_vm0, %v957_v19, 0.0  ;;  %v698_v34 = vmul.f32 %v442_v25, %v186_v24  ;;  %v450_v19 = vld [vmem:[%s5722_s1 + $0x580] sm:$0xff] }
 0x13f   :  { %v1904_v43 = vadd.f32 %v2983_v62, %v1304_v37  ;;  %v962_v42 = vmul.f32 %v3832_v17, %v699_v29  ;;  %v197_v29 = vld [vmem:[%s5721_s0 + $0x598] sm:$0xff] }
 0x140   :  { %2162 = vst.msk [vmem:[%s5725_s4 + $0x2a8] sm:$0xff] %vm2076_vm1, %v1905_v36  ;;  %1522 = vadd.xlane.f32.xlu1 %v1521_v33  ;;  %v959_v33 = vmul.f32 %v3832_v17, %v696_v20  ;;  %v445_v36 = vld [vmem:[%s5722_s1 + $0x558] sm:$0xff] }
 0x141   :  { %2161 = vst.msk [vmem:[%s5725_s4 + $0x2a0] sm:$0xff] %vm2076_vm1, %v1904_v43  ;;  %1519 = vadd.xlane.f32.xlu0 %v1518_v38  ;;  %v1313_v46 = vpop.xlane.xlu1 %1312  ;;  %v188_v38 = vld [vmem:[%s5721_s0 + $0x550] sm:$0xff]  ;;  %v701_v43 = vmul.f32 %v445_v36, %v189_v35  ;;  %v1557_v55 = vsel %vm1049_vm0, %v962_v42, 0.0 }
 0x142   :  { %v1907_v50 = vadd.f32 %v2983_v62, %v1313_v46  ;;  %v1310_v52 = vpop.xlane.xlu0 %1309  ;;  %v1548_v46 = vsel %vm1049_vm0, %v959_v33, 0.0  ;;  %v700_v48 = vmul.f32 %v444_v39, %v188_v38  ;;  %v452_v33 = vld [vmem:[%s5722_s1 + $0x590] sm:$0xff] }
 0x143   :  { %v1906_v57 = vadd.f32 %v2983_v62, %v1310_v52  ;;  %v964_v56 = vmul.f32 %v3832_v17, %v701_v43  ;;  %v199_v43 = vld [vmem:[%s5721_s0 + $0x5a8] sm:$0xff] }
 0x144   :  { %2164 = vst.msk [vmem:[%s5725_s4 + $0x2b8] sm:$0xff] %vm2076_vm1, %v1907_v50  ;;  %1528 = vadd.xlane.f32.xlu1 %v1527_v47  ;;  %v961_v47 = vmul.f32 %v3832_v17, %v698_v34  ;;  %v447_v50 = vld [vmem:[%s5722_s1 + $0x568] sm:$0xff] }
 0x145   :  { %2163 = vst.msk [vmem:[%s5725_s4 + $0x2b0] sm:$0xff] %vm2076_vm1, %v1906_v57  ;;  %1525 = vadd.xlane.f32.xlu0 %v1524_v53  ;;  %v1319_v60 = vpop.xlane.xlu1 %1318  ;;  %v190_v53 = vld [vmem:[%s5721_s0 + $0x560] sm:$0xff]  ;;  %v703_v57 = vmul.f32 %v447_v50, %v191_v49  ;;  %v1563_v7 = vsel %vm1049_vm0, %v964_v56, 0.0 }
 0x146   :  { %v1909_v1 = vadd.f32 %v2983_v62, %v1319_v60  ;;  %v1316_v3 = vpop.xlane.xlu0 %1315  ;;  %v1554_v60 = vsel %vm1049_vm0, %v961_v47, 0.0  ;;  %v702_v63 = vmul.f32 %v446_v54, %v190_v53  ;;  %v454_v47 = vld [vmem:[%s5722_s1 + $0x5a0] sm:$0xff] }
 0x147   :  { %v1908_v9 = vadd.f32 %v2983_v62, %v1316_v3  ;;  %v966_v8 = vmul.f32 %v3832_v17, %v703_v57  ;;  %v201_v57 = vld [vmem:[%s5721_s0 + $0x5b8] sm:$0xff] }
 0x148   :  { %2166 = vst.msk [vmem:[%s5725_s4 + $0x2c8] sm:$0xff] %vm2076_vm1, %v1909_v1  ;;  %1534 = vadd.xlane.f32.xlu1 %v1533_v61  ;;  %v963_v61 = vmul.f32 %v3832_v17, %v700_v48  ;;  %v449_v1 = vld [vmem:[%s5722_s1 + $0x578] sm:$0xff] }
 0x149   :  { %2165 = vst.msk [vmem:[%s5725_s4 + $0x2c0] sm:$0xff] %vm2076_vm1, %v1908_v9  ;;  %1531 = vadd.xlane.f32.xlu0 %v1530_v4  ;;  %v1325_v12 = vpop.xlane.xlu1 %1324  ;;  %v192_v4 = vld [vmem:[%s5721_s0 + $0x570] sm:$0xff]  ;;  %v705_v9 = vmul.f32 %v449_v1, %v193_v0  ;;  %v1569_v21 = vsel %vm1049_vm0, %v966_v8, 0.0 }
 0x14a   :  { %v1911_v51 = vadd.f32 %v2983_v62, %v1325_v12  ;;  %v1322_v16 = vpop.xlane.xlu0 %1321  ;;  %v1560_v12 = vsel %vm1049_vm0, %v963_v61, 0.0  ;;  %v704_v14 = vmul.f32 %v448_v5, %v192_v4  ;;  %v456_v61 = vld [vmem:[%s5722_s1 + $0x5b0] sm:$0xff] }
 0x14b   :  { %v1910_v23 = vadd.f32 %v2983_v62, %v1322_v16  ;;  %v968_v22 = vmul.f32 %v3832_v17, %v705_v9  ;;  %v203_v9 = vld [vmem:[%s5721_s0 + $0x5c8] sm:$0xff] }
 0x14c   :  { %2168 = vst.msk [vmem:[%s5725_s4 + $0x2d8] sm:$0xff] %vm2076_vm1, %v1911_v51  ;;  %1540 = vadd.xlane.f32.xlu1 %v1539_v13  ;;  %v965_v13 = vmul.f32 %v3832_v17, %v702_v63  ;;  %v451_v51 = vld [vmem:[%s5722_s1 + $0x588] sm:$0xff] }
 0x14d   :  { %2167 = vst.msk [vmem:[%s5725_s4 + $0x2d0] sm:$0xff] %vm2076_vm1, %v1910_v23  ;;  %1537 = vadd.xlane.f32.xlu0 %v1536_v18  ;;  %v1331_v26 = vpop.xlane.xlu1 %1330  ;;  %v194_v18 = vld [vmem:[%s5721_s0 + $0x580] sm:$0xff]  ;;  %v707_v23 = vmul.f32 %v451_v51, %v195_v15  ;;  %v1575_v35 = vsel %vm1049_vm0, %v968_v22, 0.0 }
 0x14e   :  { %v1913_v30 = vadd.f32 %v2983_v62, %v1331_v26  ;;  %v1328_v31 = vpop.xlane.xlu0 %1327  ;;  %v1566_v26 = vsel %vm1049_vm0, %v965_v13, 0.0  ;;  %v706_v28 = vmul.f32 %v450_v19, %v194_v18  ;;  %v458_v13 = vld [vmem:[%s5722_s1 + $0x5c0] sm:$0xff] }
 0x14f   :  { %v1912_v37 = vadd.f32 %v2983_v62, %v1328_v31  ;;  %v970_v36 = vmul.f32 %v3832_v17, %v707_v23  ;;  %v205_v23 = vld [vmem:[%s5721_s0 + $0x5d8] sm:$0xff] }
 0x150   :  { %2170 = vst.msk [vmem:[%s5725_s4 + $0x2e8] sm:$0xff] %vm2076_vm1, %v1913_v30  ;;  %1546 = vadd.xlane.f32.xlu1 %v1545_v27  ;;  %v967_v27 = vmul.f32 %v3832_v17, %v704_v14  ;;  %v453_v30 = vld [vmem:[%s5722_s1 + $0x598] sm:$0xff] }
 0x151   :  { %2169 = vst.msk [vmem:[%s5725_s4 + $0x2e0] sm:$0xff] %vm2076_vm1, %v1912_v37  ;;  %1543 = vadd.xlane.f32.xlu0 %v1542_v32  ;;  %v1337_v40 = vpop.xlane.xlu1 %1336  ;;  %v196_v32 = vld [vmem:[%s5721_s0 + $0x590] sm:$0xff]  ;;  %v709_v37 = vmul.f32 %v453_v30, %v197_v29  ;;  %v1581_v49 = vsel %vm1049_vm0, %v970_v36, 0.0 }
 0x152   :  { %v1915_v44 = vadd.f32 %v2983_v62, %v1337_v40  ;;  %v1334_v45 = vpop.xlane.xlu0 %1333  ;;  %v1572_v40 = vsel %vm1049_vm0, %v967_v27, 0.0  ;;  %v708_v42 = vmul.f32 %v452_v33, %v196_v32  ;;  %v460_v27 = vld [vmem:[%s5722_s1 + $0x5d0] sm:$0xff] }
 0x153   :  { %v1914_v52 = vadd.f32 %v2983_v62, %v1334_v45  ;;  %v972_v50 = vmul.f32 %v3832_v17, %v709_v37  ;;  %v207_v37 = vld [vmem:[%s5721_s0 + $0x5e8] sm:$0xff] }
 0x154   :  { %2172 = vst.msk [vmem:[%s5725_s4 + $0x2f8] sm:$0xff] %vm2076_vm1, %v1915_v44  ;;  %1552 = vadd.xlane.f32.xlu1 %v1551_v41  ;;  %v969_v41 = vmul.f32 %v3832_v17, %v706_v28  ;;  %v455_v44 = vld [vmem:[%s5722_s1 + $0x5a8] sm:$0xff] }
 0x155   :  { %2171 = vst.msk [vmem:[%s5725_s4 + $0x2f0] sm:$0xff] %vm2076_vm1, %v1914_v52  ;;  %1549 = vadd.xlane.f32.xlu0 %v1548_v46  ;;  %v1343_v2 = vpop.xlane.xlu1 %1342  ;;  %v198_v46 = vld [vmem:[%s5721_s0 + $0x5a0] sm:$0xff]  ;;  %v711_v52 = vmul.f32 %v455_v44, %v199_v43  ;;  %v1587_v0 = vsel %vm1049_vm0, %v972_v50, 0.0 }
 0x156   :  { %v1917_v58 = vadd.f32 %v2983_v62, %v1343_v2  ;;  %v1340_v59 = vpop.xlane.xlu0 %1339  ;;  %v1578_v2 = vsel %vm1049_vm0, %v969_v41, 0.0  ;;  %v710_v56 = vmul.f32 %v454_v47, %v198_v46  ;;  %v462_v41 = vld [vmem:[%s5722_s1 + $0x5e0] sm:$0xff] }
 0x157   :  { %v1916_v3 = vadd.f32 %v2983_v62, %v1340_v59  ;;  %v974_v1 = vmul.f32 %v3832_v17, %v711_v52  ;;  %v209_v52 = vld [vmem:[%s5721_s0 + $0x5f8] sm:$0xff] }
 0x158   :  { %2174 = vst.msk [vmem:[%s5725_s4 + $0x308] sm:$0xff] %vm2076_vm1, %v1917_v58  ;;  %1558 = vadd.xlane.f32.xlu1 %v1557_v55  ;;  %v971_v55 = vmul.f32 %v3832_v17, %v708_v42  ;;  %v457_v58 = vld [vmem:[%s5722_s1 + $0x5b8] sm:$0xff] }
 0x159   :  { %2173 = vst.msk [vmem:[%s5725_s4 + $0x300] sm:$0xff] %vm2076_vm1, %v1916_v3  ;;  %1555 = vadd.xlane.f32.xlu0 %v1554_v60  ;;  %v1349_v6 = vpop.xlane.xlu1 %1348  ;;  %v200_v60 = vld [vmem:[%s5721_s0 + $0x5b0] sm:$0xff]  ;;  %v713_v3 = vmul.f32 %v457_v58, %v201_v57  ;;  %v1593_v15 = vsel %vm1049_vm0, %v974_v1, 0.0 }
 0x15a   :  { %v1919_v10 = vadd.f32 %v2983_v62, %v1349_v6  ;;  %v1346_v11 = vpop.xlane.xlu0 %1345  ;;  %v1584_v6 = vsel %vm1049_vm0, %v971_v55, 0.0  ;;  %v712_v8 = vmul.f32 %v456_v61, %v200_v60  ;;  %v464_v55 = vld [vmem:[%s5722_s1 + $0x5f0] sm:$0xff] }
 0x15b   :  { %v1918_v16 = vadd.f32 %v2983_v62, %v1346_v11  ;;  %v976_v51 = vmul.f32 %v3832_v17, %v713_v3  ;;  %v211_v3 = vld [vmem:[%s5721_s0 + $0x608] sm:$0xff] }
 0x15c   :  { %2176 = vst.msk [vmem:[%s5725_s4 + $0x318] sm:$0xff] %vm2076_vm1, %v1919_v10  ;;  %1564 = vadd.xlane.f32.xlu1 %v1563_v7  ;;  %v973_v7 = vmul.f32 %v3832_v17, %v710_v56  ;;  %v459_v10 = vld [vmem:[%s5722_s1 + $0x5c8] sm:$0xff] }
 0x15d   :  { %2175 = vst.msk [vmem:[%s5725_s4 + $0x310] sm:$0xff] %vm2076_vm1, %v1918_v16  ;;  %1561 = vadd.xlane.f32.xlu0 %v1560_v12  ;;  %v1355_v20 = vpop.xlane.xlu1 %1354  ;;  %v202_v12 = vld [vmem:[%s5721_s0 + $0x5c0] sm:$0xff]  ;;  %v715_v16 = vmul.f32 %v459_v10, %v203_v9  ;;  %v1599_v29 = vsel %vm1049_vm0, %v976_v51, 0.0 }
 0x15e   :  { %v1921_v24 = vadd.f32 %v2983_v62, %v1355_v20  ;;  %v1352_v25 = vpop.xlane.xlu0 %1351  ;;  %v1590_v20 = vsel %vm1049_vm0, %v973_v7, 0.0  ;;  %v714_v22 = vmul.f32 %v458_v13, %v202_v12  ;;  %v466_v7 = vld [vmem:[%s5722_s1 + $0x600] sm:$0xff] }
 0x15f   :  { %v1920_v31 = vadd.f32 %v2983_v62, %v1352_v25  ;;  %v978_v30 = vmul.f32 %v3832_v17, %v715_v16  ;;  %v213_v16 = vld [vmem:[%s5721_s0 + $0x618] sm:$0xff] }
 0x160   :  { %2178 = vst.msk [vmem:[%s5725_s4 + $0x328] sm:$0xff] %vm2076_vm1, %v1921_v24  ;;  %1570 = vadd.xlane.f32.xlu1 %v1569_v21  ;;  %v975_v21 = vmul.f32 %v3832_v17, %v712_v8  ;;  %v461_v24 = vld [vmem:[%s5722_s1 + $0x5d8] sm:$0xff] }
 0x161   :  { %2177 = vst.msk [vmem:[%s5725_s4 + $0x320] sm:$0xff] %vm2076_vm1, %v1920_v31  ;;  %1567 = vadd.xlane.f32.xlu0 %v1566_v26  ;;  %v1361_v34 = vpop.xlane.xlu1 %1360  ;;  %v204_v26 = vld [vmem:[%s5721_s0 + $0x5d0] sm:$0xff]  ;;  %v717_v31 = vmul.f32 %v461_v24, %v205_v23  ;;  %v1605_v43 = vsel %vm1049_vm0, %v978_v30, 0.0 }
 0x162   :  { %v1923_v38 = vadd.f32 %v2983_v62, %v1361_v34  ;;  %v1358_v39 = vpop.xlane.xlu0 %1357  ;;  %v1596_v34 = vsel %vm1049_vm0, %v975_v21, 0.0  ;;  %v716_v36 = vmul.f32 %v460_v27, %v204_v26  ;;  %v468_v21 = vld [vmem:[%s5722_s1 + $0x610] sm:$0xff] }
 0x163   :  { %v1922_v45 = vadd.f32 %v2983_v62, %v1358_v39  ;;  %v980_v44 = vmul.f32 %v3832_v17, %v717_v31  ;;  %v215_v31 = vld [vmem:[%s5721_s0 + $0x628] sm:$0xff] }
 0x164   :  { %2180 = vst.msk [vmem:[%s5725_s4 + $0x338] sm:$0xff] %vm2076_vm1, %v1923_v38  ;;  %1576 = vadd.xlane.f32.xlu1 %v1575_v35  ;;  %v977_v35 = vmul.f32 %v3832_v17, %v714_v22  ;;  %v463_v38 = vld [vmem:[%s5722_s1 + $0x5e8] sm:$0xff] }
 0x165   :  { %2179 = vst.msk [vmem:[%s5725_s4 + $0x330] sm:$0xff] %vm2076_vm1, %v1922_v45  ;;  %1573 = vadd.xlane.f32.xlu0 %v1572_v40  ;;  %v1367_v48 = vpop.xlane.xlu1 %1366  ;;  %v206_v40 = vld [vmem:[%s5721_s0 + $0x5e0] sm:$0xff]  ;;  %v719_v45 = vmul.f32 %v463_v38, %v207_v37  ;;  %v1611_v57 = vsel %vm1049_vm0, %v980_v44, 0.0 }
 0x166   :  { %v1925_v53 = vadd.f32 %v2983_v62, %v1367_v48  ;;  %v1364_v54 = vpop.xlane.xlu0 %1363  ;;  %v1602_v48 = vsel %vm1049_vm0, %v977_v35, 0.0  ;;  %v718_v50 = vmul.f32 %v462_v41, %v206_v40  ;;  %v470_v35 = vld [vmem:[%s5722_s1 + $0x620] sm:$0xff] }
 0x167   :  { %v1924_v59 = vadd.f32 %v2983_v62, %v1364_v54  ;;  %v982_v58 = vmul.f32 %v3832_v17, %v719_v45  ;;  %v217_v45 = vld [vmem:[%s5721_s0 + $0x638] sm:$0xff] }
 0x168   :  { %2182 = vst.msk [vmem:[%s5725_s4 + $0x348] sm:$0xff] %vm2076_vm1, %v1925_v53  ;;  %1582 = vadd.xlane.f32.xlu1 %v1581_v49  ;;  %v979_v49 = vmul.f32 %v3832_v17, %v716_v36  ;;  %v465_v53 = vld [vmem:[%s5722_s1 + $0x5f8] sm:$0xff] }
 0x169   :  { %2181 = vst.msk [vmem:[%s5725_s4 + $0x340] sm:$0xff] %vm2076_vm1, %v1924_v59  ;;  %1579 = vadd.xlane.f32.xlu0 %v1578_v2  ;;  %v1373_v63 = vpop.xlane.xlu1 %1372  ;;  %v208_v2 = vld [vmem:[%s5721_s0 + $0x5f0] sm:$0xff]  ;;  %v721_v59 = vmul.f32 %v465_v53, %v209_v52  ;;  %v1617_v9 = vsel %vm1049_vm0, %v982_v58, 0.0  ;;  %v4591_v52 = vld [vmem:[%s5723_s2] ss:$0 sm:$0xff] }
 0x16a   :  { %v1927_v4 = vadd.f32 %v2983_v62, %v1373_v63  ;;  %v1370_v5 = vpop.xlane.xlu0 %1369  ;;  %v1608_v63 = vsel %vm1049_vm0, %v979_v49, 0.0  ;;  %v720_v1 = vmul.f32 %v464_v55, %v208_v2  ;;  %v472_v49 = vld [vmem:[%s5722_s1 + $0x630] sm:$0xff] }
 0x16b   :  { %v1926_v11 = vadd.f32 %v2983_v62, %v1370_v5  ;;  %v984_v10 = vmul.f32 %v3832_v17, %v721_v59  ;;  %v219_v59 = vld [vmem:[%s5721_s0 + $0x648] sm:$0xff] }
 0x16c   :  { %2184 = vst.msk [vmem:[%s5725_s4 + $0x358] sm:$0xff] %vm2076_vm1, %v1927_v4  ;;  %1588 = vadd.xlane.f32.xlu1 %v1587_v0  ;;  %v981_v0 = vmul.f32 %v3832_v17, %v718_v50  ;;  %v467_v4 = vld [vmem:[%s5722_s1 + $0x608] sm:$0xff] }
 0x16d   :  { %2183 = vst.msk [vmem:[%s5725_s4 + $0x350] sm:$0xff] %vm2076_vm1, %v1926_v11  ;;  %1585 = vadd.xlane.f32.xlu0 %v1584_v6  ;;  %v1379_v14 = vpop.xlane.xlu1 %1378  ;;  %v210_v6 = vld [vmem:[%s5721_s0 + $0x600] sm:$0xff]  ;;  %v723_v11 = vmul.f32 %v467_v4, %v211_v3  ;;  %v1623_v23 = vsel %vm1049_vm0, %v984_v10, 0.0 }
 0x16e   :  { %v1929_v18 = vadd.f32 %v2983_v62, %v1379_v14  ;;  %v1376_v19 = vpop.xlane.xlu0 %1375  ;;  %v1614_v14 = vsel %vm1049_vm0, %v981_v0, 0.0  ;;  %v722_v51 = vmul.f32 %v466_v7, %v210_v6  ;;  %v474_v0 = vld [vmem:[%s5722_s1 + $0x640] sm:$0xff] }
 0x16f   :  { %v1928_v25 = vadd.f32 %v2983_v62, %v1376_v19  ;;  %v986_v24 = vmul.f32 %v3832_v17, %v723_v11  ;;  %v221_v11 = vld [vmem:[%s5721_s0 + $0x658] sm:$0xff] }
 0x170   :  { %2186 = vst.msk [vmem:[%s5725_s4 + $0x368] sm:$0xff] %vm2076_vm1, %v1929_v18  ;;  %1594 = vadd.xlane.f32.xlu1 %v1593_v15  ;;  %v983_v15 = vmul.f32 %v3832_v17, %v720_v1  ;;  %v469_v18 = vld [vmem:[%s5722_s1 + $0x618] sm:$0xff] }
 0x171   :  { %2185 = vst.msk [vmem:[%s5725_s4 + $0x360] sm:$0xff] %vm2076_vm1, %v1928_v25  ;;  %1591 = vadd.xlane.f32.xlu0 %v1590_v20  ;;  %v1385_v28 = vpop.xlane.xlu1 %1384  ;;  %v212_v20 = vld [vmem:[%s5721_s0 + $0x610] sm:$0xff]  ;;  %v725_v25 = vmul.f32 %v469_v18, %v213_v16  ;;  %v1629_v37 = vsel %vm1049_vm0, %v986_v24, 0.0 }
 0x172   :  { %v1931_v32 = vadd.f32 %v2983_v62, %v1385_v28  ;;  %v1382_v33 = vpop.xlane.xlu0 %1381  ;;  %v1620_v28 = vsel %vm1049_vm0, %v983_v15, 0.0  ;;  %v724_v30 = vmul.f32 %v468_v21, %v212_v20  ;;  %v476_v15 = vld [vmem:[%s5722_s1 + $0x650] sm:$0xff] }
 0x173   :  { %v1930_v39 = vadd.f32 %v2983_v62, %v1382_v33  ;;  %v988_v38 = vmul.f32 %v3832_v17, %v725_v25  ;;  %v223_v25 = vld [vmem:[%s5721_s0 + $0x668] sm:$0xff] }
 0x174   :  { %2188 = vst.msk [vmem:[%s5725_s4 + $0x378] sm:$0xff] %vm2076_vm1, %v1931_v32  ;;  %1600 = vadd.xlane.f32.xlu1 %v1599_v29  ;;  %v985_v29 = vmul.f32 %v3832_v17, %v722_v51  ;;  %v471_v32 = vld [vmem:[%s5722_s1 + $0x628] sm:$0xff] }
 0x175   :  { %2187 = vst.msk [vmem:[%s5725_s4 + $0x370] sm:$0xff] %vm2076_vm1, %v1930_v39  ;;  %1597 = vadd.xlane.f32.xlu0 %v1596_v34  ;;  %v1391_v42 = vpop.xlane.xlu1 %1390  ;;  %v214_v34 = vld [vmem:[%s5721_s0 + $0x620] sm:$0xff]  ;;  %v727_v39 = vmul.f32 %v471_v32, %v215_v31  ;;  %v1635_v50 = vsel %vm1049_vm0, %v988_v38, 0.0 }
 0x176   :  { %v1933_v46 = vadd.f32 %v2983_v62, %v1391_v42  ;;  %v1388_v47 = vpop.xlane.xlu0 %1387  ;;  %v1626_v42 = vsel %vm1049_vm0, %v985_v29, 0.0  ;;  %v726_v44 = vmul.f32 %v470_v35, %v214_v34  ;;  %v478_v29 = vld [vmem:[%s5722_s1 + $0x660] sm:$0xff] }
 0x177   :  { %v1932_v54 = vadd.f32 %v2983_v62, %v1388_v47  ;;  %v990_v53 = vmul.f32 %v4591_v52, %v727_v39  ;;  %v225_v39 = vld [vmem:[%s5721_s0 + $0x678] sm:$0xff] }
 0x178   :  { %2190 = vst.msk [vmem:[%s5725_s4 + $0x388] sm:$0xff] %vm2076_vm1, %v1933_v46  ;;  %1606 = vadd.xlane.f32.xlu1 %v1605_v43  ;;  %v987_v43 = vmul.f32 %v3832_v17, %v724_v30  ;;  %v473_v46 = vld [vmem:[%s5722_s1 + $0x638] sm:$0xff] }
 0x179   :  { %2189 = vst.msk [vmem:[%s5725_s4 + $0x380] sm:$0xff] %vm2076_vm1, %v1932_v54  ;;  %1603 = vadd.xlane.f32.xlu0 %v1602_v48  ;;  %v1397_v56 = vpop.xlane.xlu1 %1396  ;;  %v216_v48 = vld [vmem:[%s5721_s0 + $0x630] sm:$0xff]  ;;  %v729_v54 = vmul.f32 %v473_v46, %v217_v45  ;;  %v1641_v3 = vsel %vm1049_vm0, %v990_v53, 0.0 }
 0x17a   :  { %v1935_v60 = vadd.f32 %v2983_v62, %v1397_v56  ;;  %v1394_v61 = vpop.xlane.xlu0 %1393  ;;  %v1632_v56 = vsel %vm1049_vm0, %v987_v43, 0.0  ;;  %v728_v58 = vmul.f32 %v472_v49, %v216_v48  ;;  %v480_v43 = vld [vmem:[%s5722_s1 + $0x670] sm:$0xff] }
 0x17b   :  { %v1934_v5 = vadd.f32 %v2983_v62, %v1394_v61  ;;  %v992_v4 = vmul.f32 %v4591_v52, %v729_v54  ;;  %v227_v54 = vld [vmem:[%s5721_s0 + $0x688] sm:$0xff] }
 0x17c   :  { %2192 = vst.msk [vmem:[%s5725_s4 + $0x398] sm:$0xff] %vm2076_vm1, %v1935_v60  ;;  %1612 = vadd.xlane.f32.xlu1 %v1611_v57  ;;  %v989_v57 = vmul.f32 %v4591_v52, %v726_v44  ;;  %v475_v60 = vld [vmem:[%s5722_s1 + $0x648] sm:$0xff] }
 0x17d   :  { %2191 = vst.msk [vmem:[%s5725_s4 + $0x390] sm:$0xff] %vm2076_vm1, %v1934_v5  ;;  %1609 = vadd.xlane.f32.xlu0 %v1608_v63  ;;  %v1403_v8 = vpop.xlane.xlu1 %1402  ;;  %v218_v63 = vld [vmem:[%s5721_s0 + $0x640] sm:$0xff]  ;;  %v731_v5 = vmul.f32 %v475_v60, %v219_v59  ;;  %v1647_v16 = vsel %vm1049_vm0, %v992_v4, 0.0 }
 0x17e   :  { %v1937_v12 = vadd.f32 %v2983_v62, %v1403_v8  ;;  %v1400_v13 = vpop.xlane.xlu0 %1399  ;;  %v1638_v8 = vsel %vm1049_vm0, %v989_v57, 0.0  ;;  %v730_v10 = vmul.f32 %v474_v0, %v218_v63  ;;  %v482_v57 = vld [vmem:[%s5722_s1 + $0x680] sm:$0xff] }
 0x17f   :  { %v1936_v19 = vadd.f32 %v2983_v62, %v1400_v13  ;;  %v994_v18 = vmul.f32 %v4591_v52, %v731_v5  ;;  %v229_v5 = vld [vmem:[%s5721_s0 + $0x698] sm:$0xff] }
 0x180   :  { %2194 = vst.msk [vmem:[%s5725_s4 + $0x3a8] sm:$0xff] %vm2076_vm1, %v1937_v12  ;;  %1618 = vadd.xlane.f32.xlu1 %v1617_v9  ;;  %v991_v9 = vmul.f32 %v4591_v52, %v728_v58  ;;  %v477_v12 = vld [vmem:[%s5722_s1 + $0x658] sm:$0xff] }
 0x181   :  { %2193 = vst.msk [vmem:[%s5725_s4 + $0x3a0] sm:$0xff] %vm2076_vm1, %v1936_v19  ;;  %1615 = vadd.xlane.f32.xlu0 %v1614_v14  ;;  %v1409_v22 = vpop.xlane.xlu1 %1408  ;;  %v220_v14 = vld [vmem:[%s5721_s0 + $0x650] sm:$0xff]  ;;  %v733_v19 = vmul.f32 %v477_v12, %v221_v11  ;;  %v1653_v31 = vsel %vm1049_vm0, %v994_v18, 0.0 }
 0x182   :  { %v1939_v26 = vadd.f32 %v2983_v62, %v1409_v22  ;;  %v1406_v27 = vpop.xlane.xlu0 %1405  ;;  %v1644_v22 = vsel %vm1049_vm0, %v991_v9, 0.0  ;;  %v732_v24 = vmul.f32 %v476_v15, %v220_v14  ;;  %v484_v9 = vld [vmem:[%s5722_s1 + $0x690] sm:$0xff] }
 0x183   :  { %v1938_v33 = vadd.f32 %v2983_v62, %v1406_v27  ;;  %v996_v32 = vmul.f32 %v4591_v52, %v733_v19  ;;  %v231_v19 = vld [vmem:[%s5721_s0 + $0x6a8] sm:$0xff] }
 0x184   :  { %2196 = vst.msk [vmem:[%s5725_s4 + $0x3b8] sm:$0xff] %vm2076_vm1, %v1939_v26  ;;  %1624 = vadd.xlane.f32.xlu1 %v1623_v23  ;;  %v993_v23 = vmul.f32 %v4591_v52, %v730_v10  ;;  %v479_v26 = vld [vmem:[%s5722_s1 + $0x668] sm:$0xff] }
 0x185   :  { %2195 = vst.msk [vmem:[%s5725_s4 + $0x3b0] sm:$0xff] %vm2076_vm1, %v1938_v33  ;;  %1621 = vadd.xlane.f32.xlu0 %v1620_v28  ;;  %v1415_v36 = vpop.xlane.xlu1 %1414  ;;  %v222_v28 = vld [vmem:[%s5721_s0 + $0x660] sm:$0xff]  ;;  %v735_v33 = vmul.f32 %v479_v26, %v223_v25  ;;  %v1659_v45 = vsel %vm1049_vm0, %v996_v32, 0.0 }
 0x186   :  { %v1941_v40 = vadd.f32 %v2983_v62, %v1415_v36  ;;  %v1412_v41 = vpop.xlane.xlu0 %1411  ;;  %v1650_v36 = vsel %vm1049_vm0, %v993_v23, 0.0  ;;  %v734_v38 = vmul.f32 %v478_v29, %v222_v28  ;;  %v486_v23 = vld [vmem:[%s5722_s1 + $0x6a0] sm:$0xff] }
 0x187   :  { %v1940_v47 = vadd.f32 %v2983_v62, %v1412_v41  ;;  %v998_v46 = vmul.f32 %v4591_v52, %v735_v33  ;;  %v233_v33 = vld [vmem:[%s5721_s0 + $0x6b8] sm:$0xff] }
 0x188   :  { %2198 = vst.msk [vmem:[%s5725_s4 + $0x3c8] sm:$0xff] %vm2076_vm1, %v1941_v40  ;;  %1630 = vadd.xlane.f32.xlu1 %v1629_v37  ;;  %v995_v37 = vmul.f32 %v4591_v52, %v732_v24  ;;  %v481_v40 = vld [vmem:[%s5722_s1 + $0x678] sm:$0xff] }
 0x189   :  { %2197 = vst.msk [vmem:[%s5725_s4 + $0x3c0] sm:$0xff] %vm2076_vm1, %v1940_v47  ;;  %1627 = vadd.xlane.f32.xlu0 %v1626_v42  ;;  %v1421_v17 = vpop.xlane.xlu1 %1420  ;;  %v224_v42 = vld [vmem:[%s5721_s0 + $0x670] sm:$0xff]  ;;  %v737_v47 = vmul.f32 %v481_v40, %v225_v39  ;;  %v1665_v59 = vsel %vm1049_vm0, %v998_v46, 0.0 }
 0x18a   :  { %v1943_v2 = vadd.f32 %v2983_v62, %v1421_v17  ;;  %v1418_v55 = vpop.xlane.xlu0 %1417  ;;  %v1656_v17 = vsel %vm1049_vm0, %v995_v37, 0.0  ;;  %v736_v53 = vmul.f32 %v480_v43, %v224_v42  ;;  %v488_v37 = vld [vmem:[%s5722_s1 + $0x6b0] sm:$0xff] }
 0x18b   :  { %v1942_v61 = vadd.f32 %v2983_v62, %v1418_v55  ;;  %v1000_v60 = vmul.f32 %v4591_v52, %v737_v47  ;;  %v235_v47 = vld [vmem:[%s5721_s0 + $0x6c8] sm:$0xff] }
 0x18c   :  { %2200 = vst.msk [vmem:[%s5725_s4 + $0x3d8] sm:$0xff] %vm2076_vm1, %v1943_v2  ;;  %1636 = vadd.xlane.f32.xlu1 %v1635_v50  ;;  %v997_v50 = vmul.f32 %v4591_v52, %v734_v38  ;;  %v483_v2 = vld [vmem:[%s5722_s1 + $0x688] sm:$0xff] }
 0x18d   :  { %2199 = vst.msk [vmem:[%s5725_s4 + $0x3d0] sm:$0xff] %vm2076_vm1, %v1942_v61  ;;  %1633 = vadd.xlane.f32.xlu0 %v1632_v56  ;;  %v1427_v1 = vpop.xlane.xlu1 %1426  ;;  %v226_v56 = vld [vmem:[%s5721_s0 + $0x680] sm:$0xff]  ;;  %v739_v61 = vmul.f32 %v483_v2, %v227_v54  ;;  %v1671_v11 = vsel %vm1049_vm0, %v1000_v60, 0.0 }
 0x18e   :  { %v1945_v6 = vadd.f32 %v2983_v62, %v1427_v1  ;;  %v1424_v7 = vpop.xlane.xlu0 %1423  ;;  %v1662_v1 = vsel %vm1049_vm0, %v997_v50, 0.0  ;;  %v738_v4 = vmul.f32 %v482_v57, %v226_v56  ;;  %v490_v50 = vld [vmem:[%s5722_s1 + $0x6c0] sm:$0xff] }
 0x18f   :  { %v1944_v13 = vadd.f32 %v2983_v62, %v1424_v7  ;;  %v1002_v12 = vmul.f32 %v4591_v52, %v739_v61  ;;  %v237_v61 = vld [vmem:[%s5721_s0 + $0x6d8] sm:$0xff] }
 0x190   :  { %2202 = vst.msk [vmem:[%s5725_s4 + $0x3e8] sm:$0xff] %vm2076_vm1, %v1945_v6  ;;  %1642 = vadd.xlane.f32.xlu1 %v1641_v3  ;;  %v999_v3 = vmul.f32 %v4591_v52, %v736_v53  ;;  %v485_v6 = vld [vmem:[%s5722_s1 + $0x698] sm:$0xff] }
 0x191   :  { %2201 = vst.msk [vmem:[%s5725_s4 + $0x3e0] sm:$0xff] %vm2076_vm1, %v1944_v13  ;;  %1639 = vadd.xlane.f32.xlu0 %v1638_v8  ;;  %v1433_v51 = vpop.xlane.xlu1 %1432  ;;  %v228_v8 = vld [vmem:[%s5721_s0 + $0x690] sm:$0xff]  ;;  %v741_v13 = vmul.f32 %v485_v6, %v229_v5  ;;  %v1677_v25 = vsel %vm1049_vm0, %v1002_v12, 0.0 }
 0x192   :  { %v1947_v20 = vadd.f32 %v2983_v62, %v1433_v51  ;;  %v1430_v21 = vpop.xlane.xlu0 %1429  ;;  %v1668_v51 = vsel %vm1049_vm0, %v999_v3, 0.0  ;;  %v740_v18 = vmul.f32 %v484_v9, %v228_v8  ;;  %v492_v3 = vld [vmem:[%s5722_s1 + $0x6d0] sm:$0xff] }
 0x193   :  { %v1946_v27 = vadd.f32 %v2983_v62, %v1430_v21  ;;  %v1004_v26 = vmul.f32 %v4591_v52, %v741_v13  ;;  %v239_v13 = vld [vmem:[%s5721_s0 + $0x6e8] sm:$0xff] }
 0x194   :  { %2204 = vst.msk [vmem:[%s5725_s4 + $0x3f8] sm:$0xff] %vm2076_vm1, %v1947_v20  ;;  %1648 = vadd.xlane.f32.xlu1 %v1647_v16  ;;  %v1001_v16 = vmul.f32 %v4591_v52, %v738_v4  ;;  %v487_v20 = vld [vmem:[%s5722_s1 + $0x6a8] sm:$0xff] }
 0x195   :  { %2203 = vst.msk [vmem:[%s5725_s4 + $0x3f0] sm:$0xff] %vm2076_vm1, %v1946_v27  ;;  %1645 = vadd.xlane.f32.xlu0 %v1644_v22  ;;  %v1439_v30 = vpop.xlane.xlu1 %1438  ;;  %v230_v22 = vld [vmem:[%s5721_s0 + $0x6a0] sm:$0xff]  ;;  %v743_v27 = vmul.f32 %v487_v20, %v231_v19  ;;  %v1683_v39 = vsel %vm1049_vm0, %v1004_v26, 0.0 }
 0x196   :  { %v1949_v34 = vadd.f32 %v2983_v62, %v1439_v30  ;;  %v1436_v35 = vpop.xlane.xlu0 %1435  ;;  %v1674_v30 = vsel %vm1049_vm0, %v1001_v16, 0.0  ;;  %v742_v32 = vmul.f32 %v486_v23, %v230_v22  ;;  %v494_v16 = vld [vmem:[%s5722_s1 + $0x6e0] sm:$0xff] }
 0x197   :  { %v1948_v41 = vadd.f32 %v2983_v62, %v1436_v35  ;;  %v1006_v40 = vmul.f32 %v4591_v52, %v743_v27  ;;  %v241_v27 = vld [vmem:[%s5721_s0 + $0x6f8] sm:$0xff] }
 0x198   :  { %2206 = vst.msk [vmem:[%s5725_s4 + $0x408] sm:$0xff] %vm2076_vm1, %v1949_v34  ;;  %1654 = vadd.xlane.f32.xlu1 %v1653_v31  ;;  %v1003_v31 = vmul.f32 %v4591_v52, %v740_v18  ;;  %v489_v34 = vld [vmem:[%s5722_s1 + $0x6b8] sm:$0xff] }
 0x199   :  { %2205 = vst.msk [vmem:[%s5725_s4 + $0x400] sm:$0xff] %vm2076_vm1, %v1948_v41  ;;  %1651 = vadd.xlane.f32.xlu0 %v1650_v36  ;;  %v1445_v44 = vpop.xlane.xlu1 %1444  ;;  %v232_v36 = vld [vmem:[%s5721_s0 + $0x6b0] sm:$0xff]  ;;  %v745_v41 = vmul.f32 %v489_v34, %v233_v33  ;;  %v1689_v54 = vsel %vm1049_vm0, %v1006_v40, 0.0 }
 0x19a   :  { %v1951_v48 = vadd.f32 %v2983_v62, %v1445_v44  ;;  %v1442_v49 = vpop.xlane.xlu0 %1441  ;;  %v1680_v44 = vsel %vm1049_vm0, %v1003_v31, 0.0  ;;  %v744_v46 = vmul.f32 %v488_v37, %v232_v36  ;;  %v496_v31 = vld [vmem:[%s5722_s1 + $0x6f0] sm:$0xff] }
 0x19b   :  { %v1950_v55 = vadd.f32 %v2983_v62, %v1442_v49  ;;  %v1008_v2 = vmul.f32 %v4591_v52, %v745_v41  ;;  %v243_v41 = vld [vmem:[%s5721_s0 + $0x708] sm:$0xff] }
 0x19c   :  { %2208 = vst.msk [vmem:[%s5725_s4 + $0x418] sm:$0xff] %vm2076_vm1, %v1951_v48  ;;  %1660 = vadd.xlane.f32.xlu1 %v1659_v45  ;;  %v1005_v45 = vmul.f32 %v4591_v52, %v742_v32  ;;  %v491_v48 = vld [vmem:[%s5722_s1 + $0x6c8] sm:$0xff] }
 0x19d   :  { %2207 = vst.msk [vmem:[%s5725_s4 + $0x410] sm:$0xff] %vm2076_vm1, %v1950_v55  ;;  %1657 = vadd.xlane.f32.xlu0 %v1656_v17  ;;  %v1451_v58 = vpop.xlane.xlu1 %1450  ;;  %v234_v17 = vld [vmem:[%s5721_s0 + $0x6c0] sm:$0xff]  ;;  %v747_v55 = vmul.f32 %v491_v48, %v235_v47  ;;  %v1695_v5 = vsel %vm1049_vm0, %v1008_v2, 0.0 }
 0x19e   :  { %v1953_v63 = vadd.f32 %v2983_v62, %v1451_v58  ;;  %v1448_v0 = vpop.xlane.xlu0 %1447  ;;  %v1686_v58 = vsel %vm1049_vm0, %v1005_v45, 0.0  ;;  %v746_v60 = vmul.f32 %v490_v50, %v234_v17  ;;  %v498_v45 = vld [vmem:[%s5722_s1 + $0x700] sm:$0xff] }
 0x19f   :  { %v1952_v7 = vadd.f32 %v2983_v62, %v1448_v0  ;;  %v1010_v6 = vmul.f32 %v4591_v52, %v747_v55  ;;  %v245_v55 = vld [vmem:[%s5721_s0 + $0x718] sm:$0xff] }
 0x1a0   :  { %2210 = vst.msk [vmem:[%s5725_s4 + $0x428] sm:$0xff] %vm2076_vm1, %v1953_v63  ;;  %1666 = vadd.xlane.f32.xlu1 %v1665_v59  ;;  %v1007_v59 = vmul.f32 %v4591_v52, %v744_v46  ;;  %v493_v63 = vld [vmem:[%s5722_s1 + $0x6d8] sm:$0xff] }
 0x1a1   :  { %2209 = vst.msk [vmem:[%s5725_s4 + $0x420] sm:$0xff] %vm2076_vm1, %v1952_v7  ;;  %1663 = vadd.xlane.f32.xlu0 %v1662_v1  ;;  %v1457_v10 = vpop.xlane.xlu1 %1456  ;;  %v236_v1 = vld [vmem:[%s5721_s0 + $0x6d0] sm:$0xff]  ;;  %v749_v7 = vmul.f32 %v493_v63, %v237_v61  ;;  %v1701_v19 = vsel %vm1049_vm0, %v1010_v6, 0.0 }
 0x1a2   :  { %v1955_v14 = vadd.f32 %v2983_v62, %v1457_v10  ;;  %v1454_v15 = vpop.xlane.xlu0 %1453  ;;  %v1692_v10 = vsel %vm1049_vm0, %v1007_v59, 0.0  ;;  %v748_v12 = vmul.f32 %v492_v3, %v236_v1  ;;  %v500_v59 = vld [vmem:[%s5722_s1 + $0x710] sm:$0xff] }
 0x1a3   :  { %v1954_v21 = vadd.f32 %v2983_v62, %v1454_v15  ;;  %v1012_v20 = vmul.f32 %v4591_v52, %v749_v7  ;;  %v247_v7 = vld [vmem:[%s5721_s0 + $0x728] sm:$0xff] }
 0x1a4   :  { %2212 = vst.msk [vmem:[%s5725_s4 + $0x438] sm:$0xff] %vm2076_vm1, %v1955_v14  ;;  %1672 = vadd.xlane.f32.xlu1 %v1671_v11  ;;  %v1009_v11 = vmul.f32 %v4591_v52, %v746_v60  ;;  %v495_v14 = vld [vmem:[%s5722_s1 + $0x6e8] sm:$0xff] }
 0x1a5   :  { %2211 = vst.msk [vmem:[%s5725_s4 + $0x430] sm:$0xff] %vm2076_vm1, %v1954_v21  ;;  %1669 = vadd.xlane.f32.xlu0 %v1668_v51  ;;  %v1463_v24 = vpop.xlane.xlu1 %1462  ;;  %v238_v51 = vld [vmem:[%s5721_s0 + $0x6e0] sm:$0xff]  ;;  %v751_v21 = vmul.f32 %v495_v14, %v239_v13  ;;  %v1707_v33 = vsel %vm1049_vm0, %v1012_v20, 0.0 }
 0x1a6   :  { %v1957_v28 = vadd.f32 %v2983_v62, %v1463_v24  ;;  %v1460_v29 = vpop.xlane.xlu0 %1459  ;;  %v1698_v24 = vsel %vm1049_vm0, %v1009_v11, 0.0  ;;  %v750_v26 = vmul.f32 %v494_v16, %v238_v51  ;;  %v502_v11 = vld [vmem:[%s5722_s1 + $0x720] sm:$0xff] }
 0x1a7   :  { %v1956_v35 = vadd.f32 %v2983_v62, %v1460_v29  ;;  %v1014_v34 = vmul.f32 %v4591_v52, %v751_v21  ;;  %v249_v21 = vld [vmem:[%s5721_s0 + $0x738] sm:$0xff] }
 0x1a8   :  { %2214 = vst.msk [vmem:[%s5725_s4 + $0x448] sm:$0xff] %vm2076_vm1, %v1957_v28  ;;  %1678 = vadd.xlane.f32.xlu1 %v1677_v25  ;;  %v1011_v25 = vmul.f32 %v4591_v52, %v748_v12  ;;  %v497_v28 = vld [vmem:[%s5722_s1 + $0x6f8] sm:$0xff] }
 0x1a9   :  { %2213 = vst.msk [vmem:[%s5725_s4 + $0x440] sm:$0xff] %vm2076_vm1, %v1956_v35  ;;  %1675 = vadd.xlane.f32.xlu0 %v1674_v30  ;;  %v1469_v38 = vpop.xlane.xlu1 %1468  ;;  %v240_v30 = vld [vmem:[%s5721_s0 + $0x6f0] sm:$0xff]  ;;  %v753_v35 = vmul.f32 %v497_v28, %v241_v27  ;;  %v1713_v47 = vsel %vm1049_vm0, %v1014_v34, 0.0 }
 0x1aa   :  { %v1959_v42 = vadd.f32 %v2983_v62, %v1469_v38  ;;  %v1466_v43 = vpop.xlane.xlu0 %1465  ;;  %v1704_v38 = vsel %vm1049_vm0, %v1011_v25, 0.0  ;;  %v752_v40 = vmul.f32 %v496_v31, %v240_v30  ;;  %v504_v25 = vld [vmem:[%s5722_s1 + $0x730] sm:$0xff] }
 0x1ab   :  { %v1958_v49 = vadd.f32 %v2983_v62, %v1466_v43  ;;  %v1016_v48 = vmul.f32 %v4591_v52, %v753_v35  ;;  %v251_v35 = vld [vmem:[%s5721_s0 + $0x748] sm:$0xff] }
 0x1ac   :  { %2216 = vst.msk [vmem:[%s5725_s4 + $0x458] sm:$0xff] %vm2076_vm1, %v1959_v42  ;;  %1684 = vadd.xlane.f32.xlu1 %v1683_v39  ;;  %v1013_v39 = vmul.f32 %v4591_v52, %v750_v26  ;;  %v499_v42 = vld [vmem:[%s5722_s1 + $0x708] sm:$0xff] }
 0x1ad   :  { %2215 = vst.msk [vmem:[%s5725_s4 + $0x450] sm:$0xff] %vm2076_vm1, %v1958_v49  ;;  %1681 = vadd.xlane.f32.xlu0 %v1680_v44  ;;  %v1475_v53 = vpop.xlane.xlu1 %1474  ;;  %v242_v44 = vld [vmem:[%s5721_s0 + $0x700] sm:$0xff]  ;;  %v755_v49 = vmul.f32 %v499_v42, %v243_v41  ;;  %v1719_v61 = vsel %vm1049_vm0, %v1016_v48, 0.0 }
 0x1ae   :  { %v1961_v56 = vadd.f32 %v2983_v62, %v1475_v53  ;;  %v1472_v57 = vpop.xlane.xlu0 %1471  ;;  %v1710_v53 = vsel %vm1049_vm0, %v1013_v39, 0.0  ;;  %v754_v2 = vmul.f32 %v498_v45, %v242_v44  ;;  %v506_v39 = vld [vmem:[%s5722_s1 + $0x740] sm:$0xff] }
 0x1af   :  { %v1960_v0 = vadd.f32 %v2983_v62, %v1472_v57  ;;  %v1018_v63 = vmul.f32 %v4591_v52, %v755_v49  ;;  %v253_v49 = vld [vmem:[%s5721_s0 + $0x758] sm:$0xff] }
 0x1b0   :  { %2218 = vst.msk [vmem:[%s5725_s4 + $0x468] sm:$0xff] %vm2076_vm1, %v1961_v56  ;;  %1690 = vadd.xlane.f32.xlu1 %v1689_v54  ;;  %v1015_v54 = vmul.f32 %v4591_v52, %v752_v40  ;;  %v501_v56 = vld [vmem:[%s5722_s1 + $0x718] sm:$0xff] }
 0x1b1   :  { %2217 = vst.msk [vmem:[%s5725_s4 + $0x460] sm:$0xff] %vm2076_vm1, %v1960_v0  ;;  %1687 = vadd.xlane.f32.xlu0 %v1686_v58  ;;  %v1481_v4 = vpop.xlane.xlu1 %1480  ;;  %v244_v58 = vld [vmem:[%s5721_s0 + $0x710] sm:$0xff]  ;;  %v757_v0 = vmul.f32 %v501_v56, %v245_v55  ;;  %v1725_v13 = vsel %vm1049_vm0, %v1018_v63, 0.0 }
 0x1b2   :  { %v1963_v8 = vadd.f32 %v2983_v62, %v1481_v4  ;;  %v1478_v9 = vpop.xlane.xlu0 %1477  ;;  %v1716_v4 = vsel %vm1049_vm0, %v1015_v54, 0.0  ;;  %v756_v6 = vmul.f32 %v500_v59, %v244_v58  ;;  %v508_v54 = vld [vmem:[%s5722_s1 + $0x750] sm:$0xff] }
 0x1b3   :  { %v1962_v15 = vadd.f32 %v2983_v62, %v1478_v9  ;;  %v1020_v14 = vmul.f32 %v4591_v52, %v757_v0  ;;  %v255_v0 = vld [vmem:[%s5721_s0 + $0x768] sm:$0xff] }
 0x1b4   :  { %2220 = vst.msk [vmem:[%s5725_s4 + $0x478] sm:$0xff] %vm2076_vm1, %v1963_v8  ;;  %1696 = vadd.xlane.f32.xlu1 %v1695_v5  ;;  %v1017_v5 = vmul.f32 %v4591_v52, %v754_v2  ;;  %v503_v8 = vld [vmem:[%s5722_s1 + $0x728] sm:$0xff] }
 0x1b5   :  { %2219 = vst.msk [vmem:[%s5725_s4 + $0x470] sm:$0xff] %vm2076_vm1, %v1962_v15  ;;  %1693 = vadd.xlane.f32.xlu0 %v1692_v10  ;;  %v1487_v18 = vpop.xlane.xlu1 %1486  ;;  %v246_v10 = vld [vmem:[%s5721_s0 + $0x720] sm:$0xff]  ;;  %v759_v15 = vmul.f32 %v503_v8, %v247_v7  ;;  %v1731_v27 = vsel %vm1049_vm0, %v1020_v14, 0.0 }
 0x1b6   :  { %v1965_v22 = vadd.f32 %v2983_v62, %v1487_v18  ;;  %v1484_v23 = vpop.xlane.xlu0 %1483  ;;  %v1722_v18 = vsel %vm1049_vm0, %v1017_v5, 0.0  ;;  %v758_v20 = vmul.f32 %v502_v11, %v246_v10  ;;  %v510_v5 = vld [vmem:[%s5722_s1 + $0x760] sm:$0xff] }
 0x1b7   :  { %v1964_v29 = vadd.f32 %v2983_v62, %v1484_v23  ;;  %v1022_v28 = vmul.f32 %v4591_v52, %v759_v15  ;;  %v257_v15 = vld [vmem:[%s5721_s0 + $0x778] sm:$0xff] }
 0x1b8   :  { %2222 = vst.msk [vmem:[%s5725_s4 + $0x488] sm:$0xff] %vm2076_vm1, %v1965_v22  ;;  %1702 = vadd.xlane.f32.xlu1 %v1701_v19  ;;  %v1019_v19 = vmul.f32 %v4591_v52, %v756_v6  ;;  %v505_v22 = vld [vmem:[%s5722_s1 + $0x738] sm:$0xff] }
 0x1b9   :  { %2221 = vst.msk [vmem:[%s5725_s4 + $0x480] sm:$0xff] %vm2076_vm1, %v1964_v29  ;;  %1699 = vadd.xlane.f32.xlu0 %v1698_v24  ;;  %v1493_v32 = vpop.xlane.xlu1 %1492  ;;  %v248_v24 = vld [vmem:[%s5721_s0 + $0x730] sm:$0xff]  ;;  %v761_v29 = vmul.f32 %v505_v22, %v249_v21  ;;  %v1737_v41 = vsel %vm1049_vm0, %v1022_v28, 0.0 }
 0x1ba   :  { %v1967_v36 = vadd.f32 %v2983_v62, %v1493_v32  ;;  %v1490_v37 = vpop.xlane.xlu0 %1489  ;;  %v1728_v32 = vsel %vm1049_vm0, %v1019_v19, 0.0  ;;  %v760_v34 = vmul.f32 %v504_v25, %v248_v24  ;;  %v512_v19 = vld [vmem:[%s5722_s1 + $0x770] sm:$0xff] }
 0x1bb   :  { %v1966_v43 = vadd.f32 %v2983_v62, %v1490_v37  ;;  %v1024_v42 = vmul.f32 %v4591_v52, %v761_v29  ;;  %v259_v29 = vld [vmem:[%s5721_s0 + $0x788] sm:$0xff] }
 0x1bc   :  { %2224 = vst.msk [vmem:[%s5725_s4 + $0x498] sm:$0xff] %vm2076_vm1, %v1967_v36  ;;  %1708 = vadd.xlane.f32.xlu1 %v1707_v33  ;;  %v1021_v33 = vmul.f32 %v4591_v52, %v758_v20  ;;  %v507_v36 = vld [vmem:[%s5722_s1 + $0x748] sm:$0xff] }
 0x1bd   :  { %2223 = vst.msk [vmem:[%s5725_s4 + $0x490] sm:$0xff] %vm2076_vm1, %v1966_v43  ;;  %1705 = vadd.xlane.f32.xlu0 %v1704_v38  ;;  %v1499_v46 = vpop.xlane.xlu1 %1498  ;;  %v250_v38 = vld [vmem:[%s5721_s0 + $0x740] sm:$0xff]  ;;  %v763_v43 = vmul.f32 %v507_v36, %v251_v35  ;;  %v1743_v55 = vsel %vm1049_vm0, %v1024_v42, 0.0 }
 0x1be   :  { %v1969_v17 = vadd.f32 %v2983_v62, %v1499_v46  ;;  %v1496_v50 = vpop.xlane.xlu0 %1495  ;;  %v1734_v46 = vsel %vm1049_vm0, %v1021_v33, 0.0  ;;  %v762_v48 = vmul.f32 %v506_v39, %v250_v38  ;;  %v514_v33 = vld [vmem:[%s5722_s1 + $0x780] sm:$0xff] }
 0x1bf   :  { %v1968_v57 = vadd.f32 %v2983_v62, %v1496_v50  ;;  %v1026_v56 = vmul.f32 %v4591_v52, %v763_v43  ;;  %v261_v43 = vld [vmem:[%s5721_s0 + $0x798] sm:$0xff] }
 0x1c0   :  { %2226 = vst.msk [vmem:[%s5725_s4 + $0x4a8] sm:$0xff] %vm2076_vm1, %v1969_v17  ;;  %1714 = vadd.xlane.f32.xlu1 %v1713_v47  ;;  %v1023_v47 = vmul.f32 %v4591_v52, %v760_v34  ;;  %v509_v17 = vld [vmem:[%s5722_s1 + $0x758] sm:$0xff] }
 0x1c1   :  { %2225 = vst.msk [vmem:[%s5725_s4 + $0x4a0] sm:$0xff] %vm2076_vm1, %v1968_v57  ;;  %1711 = vadd.xlane.f32.xlu0 %v1710_v53  ;;  %v1505_v60 = vpop.xlane.xlu1 %1504  ;;  %v252_v53 = vld [vmem:[%s5721_s0 + $0x750] sm:$0xff]  ;;  %v765_v57 = vmul.f32 %v509_v17, %v253_v49  ;;  %v1749_v7 = vsel %vm1049_vm0, %v1026_v56, 0.0 }
 0x1c2   :  { %v1971_v1 = vadd.f32 %v2983_v62, %v1505_v60  ;;  %v1502_v3 = vpop.xlane.xlu0 %1501  ;;  %v1740_v60 = vsel %vm1049_vm0, %v1023_v47, 0.0  ;;  %v764_v63 = vmul.f32 %v508_v54, %v252_v53  ;;  %v516_v47 = vld [vmem:[%s5722_s1 + $0x790] sm:$0xff] }
 0x1c3   :  { %v1970_v9 = vadd.f32 %v2983_v62, %v1502_v3  ;;  %v1028_v8 = vmul.f32 %v4591_v52, %v765_v57  ;;  %v263_v57 = vld [vmem:[%s5721_s0 + $0x7a8] sm:$0xff] }
 0x1c4   :  { %2228 = vst.msk [vmem:[%s5725_s4 + $0x4b8] sm:$0xff] %vm2076_vm1, %v1971_v1  ;;  %1720 = vadd.xlane.f32.xlu1 %v1719_v61  ;;  %v1025_v61 = vmul.f32 %v4591_v52, %v762_v48  ;;  %v511_v1 = vld [vmem:[%s5722_s1 + $0x768] sm:$0xff] }
 0x1c5   :  { %2227 = vst.msk [vmem:[%s5725_s4 + $0x4b0] sm:$0xff] %vm2076_vm1, %v1970_v9  ;;  %1717 = vadd.xlane.f32.xlu0 %v1716_v4  ;;  %v1511_v12 = vpop.xlane.xlu1 %1510  ;;  %v254_v4 = vld [vmem:[%s5721_s0 + $0x760] sm:$0xff]  ;;  %v767_v9 = vmul.f32 %v511_v1, %v255_v0  ;;  %v1755_v21 = vsel %vm1049_vm0, %v1028_v8, 0.0 }
 0x1c6   :  { %v1973_v51 = vadd.f32 %v2983_v62, %v1511_v12  ;;  %v1508_v16 = vpop.xlane.xlu0 %1507  ;;  %v1746_v12 = vsel %vm1049_vm0, %v1025_v61, 0.0  ;;  %v766_v14 = vmul.f32 %v510_v5, %v254_v4  ;;  %v518_v61 = vld [vmem:[%s5722_s1 + $0x7a0] sm:$0xff] }
 0x1c7   :  { %v1972_v23 = vadd.f32 %v2983_v62, %v1508_v16  ;;  %v1030_v22 = vmul.f32 %v4591_v52, %v767_v9  ;;  %v265_v9 = vld [vmem:[%s5721_s0 + $0x7b8] sm:$0xff] }
 0x1c8   :  { %2230 = vst.msk [vmem:[%s5725_s4 + $0x4c8] sm:$0xff] %vm2076_vm1, %v1973_v51  ;;  %1726 = vadd.xlane.f32.xlu1 %v1725_v13  ;;  %v1027_v13 = vmul.f32 %v4591_v52, %v764_v63  ;;  %v513_v51 = vld [vmem:[%s5722_s1 + $0x778] sm:$0xff] }
 0x1c9   :  { %2229 = vst.msk [vmem:[%s5725_s4 + $0x4c0] sm:$0xff] %vm2076_vm1, %v1972_v23  ;;  %1723 = vadd.xlane.f32.xlu0 %v1722_v18  ;;  %v1517_v26 = vpop.xlane.xlu1 %1516  ;;  %v256_v18 = vld [vmem:[%s5721_s0 + $0x770] sm:$0xff]  ;;  %v769_v23 = vmul.f32 %v513_v51, %v257_v15  ;;  %v1761_v35 = vsel %vm1049_vm0, %v1030_v22, 0.0 }
 0x1ca   :  { %v1975_v30 = vadd.f32 %v2983_v62, %v1517_v26  ;;  %v1514_v31 = vpop.xlane.xlu0 %1513  ;;  %v1752_v26 = vsel %vm1049_vm0, %v1027_v13, 0.0  ;;  %v768_v28 = vmul.f32 %v512_v19, %v256_v18  ;;  %v520_v13 = vld [vmem:[%s5722_s1 + $0x7b0] sm:$0xff] }
 0x1cb   :  { %v1974_v37 = vadd.f32 %v2983_v62, %v1514_v31  ;;  %v1032_v36 = vmul.f32 %v4591_v52, %v769_v23  ;;  %v267_v23 = vld [vmem:[%s5721_s0 + $0x7c8] sm:$0xff] }
 0x1cc   :  { %2232 = vst.msk [vmem:[%s5725_s4 + $0x4d8] sm:$0xff] %vm2076_vm1, %v1975_v30  ;;  %1732 = vadd.xlane.f32.xlu1 %v1731_v27  ;;  %v1029_v27 = vmul.f32 %v4591_v52, %v766_v14  ;;  %v515_v30 = vld [vmem:[%s5722_s1 + $0x788] sm:$0xff] }
 0x1cd   :  { %2231 = vst.msk [vmem:[%s5725_s4 + $0x4d0] sm:$0xff] %vm2076_vm1, %v1974_v37  ;;  %1729 = vadd.xlane.f32.xlu0 %v1728_v32  ;;  %v1523_v40 = vpop.xlane.xlu1 %1522  ;;  %v258_v32 = vld [vmem:[%s5721_s0 + $0x780] sm:$0xff]  ;;  %v771_v37 = vmul.f32 %v515_v30, %v259_v29  ;;  %v1767_v49 = vsel %vm1049_vm0, %v1032_v36, 0.0 }
 0x1ce   :  { %v1977_v44 = vadd.f32 %v2983_v62, %v1523_v40  ;;  %v1520_v45 = vpop.xlane.xlu0 %1519  ;;  %v1758_v40 = vsel %vm1049_vm0, %v1029_v27, 0.0  ;;  %v770_v42 = vmul.f32 %v514_v33, %v258_v32  ;;  %v522_v27 = vld [vmem:[%s5722_s1 + $0x7c0] sm:$0xff] }
 0x1cf   :  { %v1976_v50 = vadd.f32 %v2983_v62, %v1520_v45  ;;  %v1034_v17 = vmul.f32 %v4591_v52, %v771_v37  ;;  %v269_v37 = vld [vmem:[%s5721_s0 + $0x7d8] sm:$0xff] }
 0x1d0   :  { %2234 = vst.msk [vmem:[%s5725_s4 + $0x4e8] sm:$0xff] %vm2076_vm1, %v1977_v44  ;;  %1738 = vadd.xlane.f32.xlu1 %v1737_v41  ;;  %v1031_v41 = vmul.f32 %v4591_v52, %v768_v28  ;;  %v517_v44 = vld [vmem:[%s5722_s1 + $0x798] sm:$0xff] }
 0x1d1   :  { %2233 = vst.msk [vmem:[%s5725_s4 + $0x4e0] sm:$0xff] %vm2076_vm1, %v1976_v50  ;;  %1735 = vadd.xlane.f32.xlu0 %v1734_v46  ;;  %v1529_v2 = vpop.xlane.xlu1 %1528  ;;  %v260_v46 = vld [vmem:[%s5721_s0 + $0x790] sm:$0xff]  ;;  %v773_v50 = vmul.f32 %v517_v44, %v261_v43  ;;  %v1773_v0 = vsel %vm1049_vm0, %v1034_v17, 0.0 }
 0x1d2   :  { %v1979_v58 = vadd.f32 %v2983_v62, %v1529_v2  ;;  %v1526_v59 = vpop.xlane.xlu0 %1525  ;;  %v1764_v2 = vsel %vm1049_vm0, %v1031_v41, 0.0  ;;  %v772_v56 = vmul.f32 %v516_v47, %v260_v46  ;;  %v524_v41 = vld [vmem:[%s5722_s1 + $0x7d0] sm:$0xff] }
 0x1d3   :  { %v1978_v3 = vadd.f32 %v2983_v62, %v1526_v59  ;;  %v1036_v1 = vmul.f32 %v4591_v52, %v773_v50  ;;  %v271_v50 = vld [vmem:[%s5721_s0 + $0x7e8] sm:$0xff] }
 0x1d4   :  { %2236 = vst.msk [vmem:[%s5725_s4 + $0x4f8] sm:$0xff] %vm2076_vm1, %v1979_v58  ;;  %1744 = vadd.xlane.f32.xlu1 %v1743_v55  ;;  %v1033_v55 = vmul.f32 %v4591_v52, %v770_v42  ;;  %v519_v58 = vld [vmem:[%s5722_s1 + $0x7a8] sm:$0xff] }
 0x1d5   :  { %2235 = vst.msk [vmem:[%s5725_s4 + $0x4f0] sm:$0xff] %vm2076_vm1, %v1978_v3  ;;  %1741 = vadd.xlane.f32.xlu0 %v1740_v60  ;;  %v1535_v6 = vpop.xlane.xlu1 %1534  ;;  %v262_v60 = vld [vmem:[%s5721_s0 + $0x7a0] sm:$0xff]  ;;  %v775_v3 = vmul.f32 %v519_v58, %v263_v57  ;;  %v1779_v15 = vsel %vm1049_vm0, %v1036_v1, 0.0 }
 0x1d6   :  { %v1981_v10 = vadd.f32 %v2983_v62, %v1535_v6  ;;  %v1532_v11 = vpop.xlane.xlu0 %1531  ;;  %v1770_v6 = vsel %vm1049_vm0, %v1033_v55, 0.0  ;;  %v774_v8 = vmul.f32 %v518_v61, %v262_v60  ;;  %v526_v55 = vld [vmem:[%s5722_s1 + $0x7e0] sm:$0xff] }
 0x1d7   :  { %v1980_v16 = vadd.f32 %v2983_v62, %v1532_v11  ;;  %v1038_v51 = vmul.f32 %v4591_v52, %v775_v3  ;;  %v273_v3 = vld [vmem:[%s5721_s0 + $0x7f8] sm:$0xff] }
 0x1d8   :  { %2238 = vst.msk [vmem:[%s5725_s4 + $0x508] sm:$0xff] %vm2076_vm1, %v1981_v10  ;;  %1750 = vadd.xlane.f32.xlu1 %v1749_v7  ;;  %v1035_v7 = vmul.f32 %v4591_v52, %v772_v56  ;;  %v521_v10 = vld [vmem:[%s5722_s1 + $0x7b8] sm:$0xff] }
 0x1d9   :  { %2237 = vst.msk [vmem:[%s5725_s4 + $0x500] sm:$0xff] %vm2076_vm1, %v1980_v16  ;;  %1747 = vadd.xlane.f32.xlu0 %v1746_v12  ;;  %v1541_v20 = vpop.xlane.xlu1 %1540  ;;  %v264_v12 = vld [vmem:[%s5721_s0 + $0x7b0] sm:$0xff]  ;;  %v777_v16 = vmul.f32 %v521_v10, %v265_v9  ;;  %v1785_v29 = vsel %vm1049_vm0, %v1038_v51, 0.0 }
 0x1da   :  { %v1983_v24 = vadd.f32 %v2983_v62, %v1541_v20  ;;  %v1538_v25 = vpop.xlane.xlu0 %1537  ;;  %v1776_v20 = vsel %vm1049_vm0, %v1035_v7, 0.0  ;;  %v776_v22 = vmul.f32 %v520_v13, %v264_v12  ;;  %v528_v7 = vld [vmem:[%s5722_s1 + $0x7f0] sm:$0xff] }
 0x1db   :  { %v1982_v31 = vadd.f32 %v2983_v62, %v1538_v25  ;;  %v1040_v30 = vmul.f32 %v4591_v52, %v777_v16 }
 0x1dc   :  { %2240 = vst.msk [vmem:[%s5725_s4 + $0x518] sm:$0xff] %vm2076_vm1, %v1983_v24  ;;  %1756 = vadd.xlane.f32.xlu1 %v1755_v21  ;;  %v1037_v21 = vmul.f32 %v4591_v52, %v774_v8  ;;  %v523_v24 = vld [vmem:[%s5722_s1 + $0x7c8] sm:$0xff] }
 0x1dd   :  { %2239 = vst.msk [vmem:[%s5725_s4 + $0x510] sm:$0xff] %vm2076_vm1, %v1982_v31  ;;  %1753 = vadd.xlane.f32.xlu0 %v1752_v26  ;;  %v1547_v34 = vpop.xlane.xlu1 %1546  ;;  %v266_v26 = vld [vmem:[%s5721_s0 + $0x7c0] sm:$0xff]  ;;  %v779_v31 = vmul.f32 %v523_v24, %v267_v23  ;;  %v1791_v43 = vsel %vm1049_vm0, %v1040_v30, 0.0 }
 0x1de   :  { %v1985_v38 = vadd.f32 %v2983_v62, %v1547_v34  ;;  %v1544_v39 = vpop.xlane.xlu0 %1543  ;;  %v1782_v34 = vsel %vm1049_vm0, %v1037_v21, 0.0  ;;  %v778_v36 = vmul.f32 %v522_v27, %v266_v26 }
 0x1df   :  { %v1984_v45 = vadd.f32 %v2983_v62, %v1544_v39  ;;  %v1042_v44 = vmul.f32 %v4591_v52, %v779_v31 }
 0x1e0   :  { %2242 = vst.msk [vmem:[%s5725_s4 + $0x528] sm:$0xff] %vm2076_vm1, %v1985_v38  ;;  %1762 = vadd.xlane.f32.xlu1 %v1761_v35  ;;  %v1039_v35 = vmul.f32 %v4591_v52, %v776_v22  ;;  %v525_v38 = vld [vmem:[%s5722_s1 + $0x7d8] sm:$0xff] }
 0x1e1   :  { %2241 = vst.msk [vmem:[%s5725_s4 + $0x520] sm:$0xff] %vm2076_vm1, %v1984_v45  ;;  %1759 = vadd.xlane.f32.xlu0 %v1758_v40  ;;  %v1553_v48 = vpop.xlane.xlu1 %1552  ;;  %v268_v40 = vld [vmem:[%s5721_s0 + $0x7d0] sm:$0xff]  ;;  %v781_v45 = vmul.f32 %v525_v38, %v269_v37  ;;  %v1797_v57 = vsel %vm1049_vm0, %v1042_v44, 0.0 }
 0x1e2   :  { %v1987_v53 = vadd.f32 %v2983_v62, %v1553_v48  ;;  %v1550_v54 = vpop.xlane.xlu0 %1549  ;;  %v1788_v48 = vsel %vm1049_vm0, %v1039_v35, 0.0  ;;  %v780_v17 = vmul.f32 %v524_v41, %v268_v40 }
 0x1e3   :  { %v1986_v59 = vadd.f32 %v2983_v62, %v1550_v54  ;;  %v1044_v58 = vmul.f32 %v4591_v52, %v781_v45 }
 0x1e4   :  { %2244 = vst.msk [vmem:[%s5725_s4 + $0x538] sm:$0xff] %vm2076_vm1, %v1987_v53  ;;  %1768 = vadd.xlane.f32.xlu1 %v1767_v49  ;;  %v1041_v49 = vmul.f32 %v4591_v52, %v778_v36  ;;  %v527_v53 = vld [vmem:[%s5722_s1 + $0x7e8] sm:$0xff] }
 0x1e5   :  { %2243 = vst.msk [vmem:[%s5725_s4 + $0x530] sm:$0xff] %vm2076_vm1, %v1986_v59  ;;  %1765 = vadd.xlane.f32.xlu0 %v1764_v2  ;;  %v1559_v63 = vpop.xlane.xlu1 %1558  ;;  %v270_v2 = vld [vmem:[%s5721_s0 + $0x7e0] sm:$0xff]  ;;  %v783_v59 = vmul.f32 %v527_v53, %v271_v50  ;;  %v1803_v9 = vsel %vm1049_vm0, %v1044_v58, 0.0 }
 0x1e6   :  { %v1989_v4 = vadd.f32 %v2983_v62, %v1559_v63  ;;  %v1556_v5 = vpop.xlane.xlu0 %1555  ;;  %v1794_v63 = vsel %vm1049_vm0, %v1041_v49, 0.0  ;;  %v782_v1 = vmul.f32 %v526_v55, %v270_v2 }
 0x1e7   :  { %v1988_v11 = vadd.f32 %v2983_v62, %v1556_v5  ;;  %v1046_v10 = vmul.f32 %v4591_v52, %v783_v59 }
 0x1e8   :  { %2246 = vst.msk [vmem:[%s5725_s4 + $0x548] sm:$0xff] %vm2076_vm1, %v1989_v4  ;;  %1774 = vadd.xlane.f32.xlu1 %v1773_v0  ;;  %v1043_v0 = vmul.f32 %v4591_v52, %v780_v17  ;;  %v529_v4 = vld [vmem:[%s5722_s1 + $0x7f8] sm:$0xff] }
 0x1e9   :  { %2245 = vst.msk [vmem:[%s5725_s4 + $0x540] sm:$0xff] %vm2076_vm1, %v1988_v11  ;;  %1771 = vadd.xlane.f32.xlu0 %v1770_v6  ;;  %v1565_v14 = vpop.xlane.xlu1 %1564  ;;  %v272_v6 = vld [vmem:[%s5721_s0 + $0x7f0] sm:$0xff]  ;;  %v785_v11 = vmul.f32 %v529_v4, %v273_v3 }
 0x1ea   :  { %v1991_v18 = vadd.f32 %v2983_v62, %v1565_v14  ;;  %v1562_v19 = vpop.xlane.xlu0 %1561  ;;  %v1800_v14 = vsel %vm1049_vm0, %v1043_v0, 0.0  ;;  %v784_v51 = vmul.f32 %v528_v7, %v272_v6 }
 0x1eb   :  { %v1990_v25 = vadd.f32 %v2983_v62, %v1562_v19  ;;  %v1809_v19 = vsel %vm1049_vm0, %v1046_v10, 0.0 }
 0x1ec   :  { %2248 = vst.msk [vmem:[%s5725_s4 + $0x558] sm:$0xff] %vm2076_vm1, %v1991_v18  ;;  %1780 = vadd.xlane.f32.xlu1 %v1779_v15  ;;  %v1045_v15 = vmul.f32 %v4591_v52, %v782_v1  ;;  %v2341_v52 = vld [vmem:[%s5723_s2] ss:$0 sm:$0xff] }
 0x1ed   :  { %2247 = vst.msk [vmem:[%s5725_s4 + $0x550] sm:$0xff] %vm2076_vm1, %v1990_v25  ;;  %1777 = vadd.xlane.f32.xlu0 %v1776_v20  ;;  %v1571_v28 = vpop.xlane.xlu1 %1570  ;;  %v1048_v20 = vmul.f32 %v2341_v52, %v785_v11  ;;  %v1047_v24 = vmul.f32 %v2341_v52, %v784_v51 }
 0x1ee   :  { %v1993_v32 = vadd.f32 %v2983_v62, %v1571_v28  ;;  %v1568_v33 = vpop.xlane.xlu0 %1567  ;;  %v1806_v23 = vsel %vm1049_vm0, %v1045_v15, 0.0 }
 0x1ef   :  { %v1992_v39 = vadd.f32 %v2983_v62, %v1568_v33  ;;  %v1815_v27 = vsel %vm1049_vm0, %v1048_v20, 0.0  ;;  %v1812_v30 = vsel %vm1049_vm0, %v1047_v24, 0.0 }
 0x1f0   :  { %2250 = vst.msk [vmem:[%s5725_s4 + $0x568] sm:$0xff] %vm2076_vm1, %v1993_v32  ;;  %1786 = vadd.xlane.f32.xlu1 %v1785_v29 }
 0x1f1   :  { %2249 = vst.msk [vmem:[%s5725_s4 + $0x560] sm:$0xff] %vm2076_vm1, %v1992_v39  ;;  %1783 = vadd.xlane.f32.xlu0 %v1782_v34  ;;  %v1577_v42 = vpop.xlane.xlu1 %1576 }
 0x1f2   :  { %v1995_v46 = vadd.f32 %v2983_v62, %v1577_v42  ;;  %v1574_v47 = vpop.xlane.xlu0 %1573 }
 0x1f3   :  { %v1994_v54 = vadd.f32 %v2983_v62, %v1574_v47 }
 0x1f4   :  { %2252 = vst.msk [vmem:[%s5725_s4 + $0x578] sm:$0xff] %vm2076_vm1, %v1995_v46  ;;  %1792 = vadd.xlane.f32.xlu1 %v1791_v43 }
 0x1f5   :  { %2251 = vst.msk [vmem:[%s5725_s4 + $0x570] sm:$0xff] %vm2076_vm1, %v1994_v54  ;;  %1789 = vadd.xlane.f32.xlu0 %v1788_v48  ;;  %v1583_v56 = vpop.xlane.xlu1 %1582 }
 0x1f6   :  { %v1997_v60 = vadd.f32 %v2983_v62, %v1583_v56  ;;  %v1580_v61 = vpop.xlane.xlu0 %1579 }
 0x1f7   :  { %v1996_v5 = vadd.f32 %v2983_v62, %v1580_v61 }
 0x1f8   :  { %2254 = vst.msk [vmem:[%s5725_s4 + $0x588] sm:$0xff] %vm2076_vm1, %v1997_v60  ;;  %1798 = vadd.xlane.f32.xlu1 %v1797_v57 }
 0x1f9   :  { %2253 = vst.msk [vmem:[%s5725_s4 + $0x580] sm:$0xff] %vm2076_vm1, %v1996_v5  ;;  %1795 = vadd.xlane.f32.xlu0 %v1794_v63  ;;  %v1589_v8 = vpop.xlane.xlu1 %1588 }
 0x1fa   :  { %v1999_v12 = vadd.f32 %v2983_v62, %v1589_v8  ;;  %v1586_v13 = vpop.xlane.xlu0 %1585 }
 0x1fb   :  { %v1998_v16 = vadd.f32 %v2983_v62, %v1586_v13 }
 0x1fc   :  { %2256 = vst.msk [vmem:[%s5725_s4 + $0x598] sm:$0xff] %vm2076_vm1, %v1999_v12  ;;  %1804 = vadd.xlane.f32.xlu1 %v1803_v9 }
 0x1fd   :  { %2255 = vst.msk [vmem:[%s5725_s4 + $0x590] sm:$0xff] %vm2076_vm1, %v1998_v16  ;;  %1801 = vadd.xlane.f32.xlu0 %v1800_v14  ;;  %v1595_v18 = vpop.xlane.xlu1 %1594 }
 0x1fe   :  { %v2001_v21 = vadd.f32 %v2983_v62, %v1595_v18  ;;  %v1592_v22 = vpop.xlane.xlu0 %1591 }
 0x1ff   :  { %v2000_v25 = vadd.f32 %v2983_v62, %v1592_v22 }
 0x200   :  { %2258 = vst.msk [vmem:[%s5725_s4 + $0x5a8] sm:$0xff] %vm2076_vm1, %v2001_v21  ;;  %1810 = vadd.xlane.f32.xlu1 %v1809_v19 }
 0x201   :  { %2257 = vst.msk [vmem:[%s5725_s4 + $0x5a0] sm:$0xff] %vm2076_vm1, %v2000_v25  ;;  %1807 = vadd.xlane.f32.xlu0 %v1806_v23  ;;  %v1601_v26 = vpop.xlane.xlu1 %1600 }
 0x202   :  { %v2003_v28 = vadd.f32 %v2983_v62, %v1601_v26  ;;  %v1598_v29 = vpop.xlane.xlu0 %1597 }
 0x203   :  { %v2002_v31 = vadd.f32 %v2983_v62, %v1598_v29 }
 0x204   :  { %2260 = vst.msk [vmem:[%s5725_s4 + $0x5b8] sm:$0xff] %vm2076_vm1, %v2003_v28  ;;  %1816 = vadd.xlane.f32.xlu1 %v1815_v27 }
 0x205   :  { %2259 = vst.msk [vmem:[%s5725_s4 + $0x5b0] sm:$0xff] %vm2076_vm1, %v2002_v31  ;;  %1813 = vadd.xlane.f32.xlu0 %v1812_v30  ;;  %v1607_v32 = vpop.xlane.xlu1 %1606 }
 0x206   :  { %v2005_v33 = vadd.f32 %v2983_v62, %v1607_v32  ;;  %v1604_v34 = vpop.xlane.xlu0 %1603 }
 0x207   :  { %v2004_v35 = vadd.f32 %v2983_v62, %v1604_v34 }
 0x208   :  { %2262 = vst.msk [vmem:[%s5725_s4 + $0x5c8] sm:$0xff] %vm2076_vm1, %v2005_v33 }
 0x209   :  { %2261 = vst.msk [vmem:[%s5725_s4 + $0x5c0] sm:$0xff] %vm2076_vm1, %v2004_v35  ;;  %v1613_v36 = vpop.xlane.xlu1 %1612 }
 0x20a   :  { %v2007_v37 = vadd.f32 %v2983_v62, %v1613_v36  ;;  %v1610_v38 = vpop.xlane.xlu0 %1609 }
 0x20b   :  { %v2006_v39 = vadd.f32 %v2983_v62, %v1610_v38 }
 0x20c   :  { %2264 = vst.msk [vmem:[%s5725_s4 + $0x5d8] sm:$0xff] %vm2076_vm1, %v2007_v37 }
 0x20d   :  { %2263 = vst.msk [vmem:[%s5725_s4 + $0x5d0] sm:$0xff] %vm2076_vm1, %v2006_v39  ;;  %v1619_v40 = vpop.xlane.xlu1 %1618 }
 0x20e   :  { %v2009_v41 = vadd.f32 %v2983_v62, %v1619_v40  ;;  %v1616_v42 = vpop.xlane.xlu0 %1615 }
 0x20f   :  { %v2008_v43 = vadd.f32 %v2983_v62, %v1616_v42 }
 0x210   :  { %2266 = vst.msk [vmem:[%s5725_s4 + $0x5e8] sm:$0xff] %vm2076_vm1, %v2009_v41 }
 0x211   :  { %2265 = vst.msk [vmem:[%s5725_s4 + $0x5e0] sm:$0xff] %vm2076_vm1, %v2008_v43  ;;  %v1625_v44 = vpop.xlane.xlu1 %1624 }
 0x212   :  { %v2011_v45 = vadd.f32 %v2983_v62, %v1625_v44  ;;  %v1622_v46 = vpop.xlane.xlu0 %1621 }
 0x213   :  { %v2010_v47 = vadd.f32 %v2983_v62, %v1622_v46 }
 0x214   :  { %2268 = vst.msk [vmem:[%s5725_s4 + $0x5f8] sm:$0xff] %vm2076_vm1, %v2011_v45 }
 0x215   :  { %2267 = vst.msk [vmem:[%s5725_s4 + $0x5f0] sm:$0xff] %vm2076_vm1, %v2010_v47  ;;  %v1631_v48 = vpop.xlane.xlu1 %1630 }
 0x216   :  { %v2013_v49 = vadd.f32 %v2983_v62, %v1631_v48  ;;  %v1628_v17 = vpop.xlane.xlu0 %1627 }
 0x217   :  { %v2012_v50 = vadd.f32 %v2983_v62, %v1628_v17 }
 0x218   :  { %2270 = vst.msk [vmem:[%s5725_s4 + $0x608] sm:$0xff] %vm2076_vm1, %v2013_v49 }
 0x219   :  { %2269 = vst.msk [vmem:[%s5725_s4 + $0x600] sm:$0xff] %vm2076_vm1, %v2012_v50  ;;  %v1637_v53 = vpop.xlane.xlu1 %1636 }
 0x21a   :  { %v2015_v54 = vadd.f32 %v2983_v62, %v1637_v53  ;;  %v1634_v2 = vpop.xlane.xlu0 %1633 }
 0x21b   :  { %v2014_v55 = vadd.f32 %v2983_v62, %v1634_v2 }
 0x21c   :  { %2272 = vst.msk [vmem:[%s5725_s4 + $0x618] sm:$0xff] %vm2076_vm1, %v2015_v54 }
 0x21d   :  { %2271 = vst.msk [vmem:[%s5725_s4 + $0x610] sm:$0xff] %vm2076_vm1, %v2014_v55  ;;  %v1643_v56 = vpop.xlane.xlu1 %1642 }
 0x21e   :  { %v2017_v57 = vadd.f32 %v2983_v62, %v1643_v56  ;;  %v1640_v58 = vpop.xlane.xlu0 %1639 }
 0x21f   :  { %v2016_v59 = vadd.f32 %v2983_v62, %v1640_v58 }
 0x220   :  { %2274 = vst.msk [vmem:[%s5725_s4 + $0x628] sm:$0xff] %vm2076_vm1, %v2017_v57 }
 0x221   :  { %2273 = vst.msk [vmem:[%s5725_s4 + $0x620] sm:$0xff] %vm2076_vm1, %v2016_v59  ;;  %v1649_v60 = vpop.xlane.xlu1 %1648 }
 0x222   :  { %v2019_v61 = vadd.f32 %v2983_v62, %v1649_v60  ;;  %v1646_v63 = vpop.xlane.xlu0 %1645 }
 0x223   :  { %v2018_v0 = vadd.f32 %v2983_v62, %v1646_v63 }
 0x224   :  { %2276 = vst.msk [vmem:[%s5725_s4 + $0x638] sm:$0xff] %vm2076_vm1, %v2019_v61 }
 0x225   :  { %2275 = vst.msk [vmem:[%s5725_s4 + $0x630] sm:$0xff] %vm2076_vm1, %v2018_v0  ;;  %v1655_v1 = vpop.xlane.xlu1 %1654 }
 0x226   :  { %v2021_v3 = vadd.f32 %v2983_v62, %v1655_v1  ;;  %v1652_v4 = vpop.xlane.xlu0 %1651 }
 0x227   :  { %v2020_v5 = vadd.f32 %v2983_v62, %v1652_v4 }
 0x228   :  { %2278 = vst.msk [vmem:[%s5725_s4 + $0x648] sm:$0xff] %vm2076_vm1, %v2021_v3 }
 0x229   :  { %2277 = vst.msk [vmem:[%s5725_s4 + $0x640] sm:$0xff] %vm2076_vm1, %v2020_v5  ;;  %v1661_v6 = vpop.xlane.xlu1 %1660 }
 0x22a   :  { %v2023_v7 = vadd.f32 %v2983_v62, %v1661_v6  ;;  %v1658_v8 = vpop.xlane.xlu0 %1657 }
 0x22b   :  { %v2022_v9 = vadd.f32 %v2983_v62, %v1658_v8 }
 0x22c   :  { %2280 = vst.msk [vmem:[%s5725_s4 + $0x658] sm:$0xff] %vm2076_vm1, %v2023_v7 }
 0x22d   :  { %2279 = vst.msk [vmem:[%s5725_s4 + $0x650] sm:$0xff] %vm2076_vm1, %v2022_v9  ;;  %v1667_v10 = vpop.xlane.xlu1 %1666 }
 0x22e   :  { %v2025_v11 = vadd.f32 %v2983_v62, %v1667_v10  ;;  %v1664_v12 = vpop.xlane.xlu0 %1663 }
 0x22f   :  { %v2024_v13 = vadd.f32 %v2983_v62, %v1664_v12 }
 0x230   :  { %2282 = vst.msk [vmem:[%s5725_s4 + $0x668] sm:$0xff] %vm2076_vm1, %v2025_v11 }
 0x231   :  { %2281 = vst.msk [vmem:[%s5725_s4 + $0x660] sm:$0xff] %vm2076_vm1, %v2024_v13  ;;  %v1673_v14 = vpop.xlane.xlu1 %1672 }
 0x232   :  { %v2027_v15 = vadd.f32 %v2983_v62, %v1673_v14  ;;  %v1670_v51 = vpop.xlane.xlu0 %1669 }
 0x233   :  { %v2026_v16 = vadd.f32 %v2983_v62, %v1670_v51 }
 0x234   :  { %2284 = vst.msk [vmem:[%s5725_s4 + $0x678] sm:$0xff] %vm2076_vm1, %v2027_v15 }
 0x235   :  { %2283 = vst.msk [vmem:[%s5725_s4 + $0x670] sm:$0xff] %vm2076_vm1, %v2026_v16  ;;  %v1679_v18 = vpop.xlane.xlu1 %1678 }
 0x236   :  { %v2029_v19 = vadd.f32 %v2983_v62, %v1679_v18  ;;  %v1676_v52 = vpop.xlane.xlu0 %1675 }
 0x237   :  { %v2028_v20 = vadd.f32 %v2983_v62, %v1676_v52 }
 0x238   :  { %2286 = vst.msk [vmem:[%s5725_s4 + $0x688] sm:$0xff] %vm2076_vm1, %v2029_v19 }
 0x239   :  { %2285 = vst.msk [vmem:[%s5725_s4 + $0x680] sm:$0xff] %vm2076_vm1, %v2028_v20  ;;  %v1685_v21 = vpop.xlane.xlu1 %1684 }
 0x23a   :  { %v2031_v22 = vadd.f32 %v2983_v62, %v1685_v21  ;;  %v1682_v23 = vpop.xlane.xlu0 %1681 }
 0x23b   :  { %v2030_v24 = vadd.f32 %v2983_v62, %v1682_v23 }
 0x23c   :  { %2288 = vst.msk [vmem:[%s5725_s4 + $0x698] sm:$0xff] %vm2076_vm1, %v2031_v22 }
 0x23d   :  { %2287 = vst.msk [vmem:[%s5725_s4 + $0x690] sm:$0xff] %vm2076_vm1, %v2030_v24  ;;  %v1691_v25 = vpop.xlane.xlu1 %1690 }
 0x23e   :  { %v2033_v26 = vadd.f32 %v2983_v62, %v1691_v25  ;;  %v1688_v27 = vpop.xlane.xlu0 %1687 }
 0x23f   :  { %v2032_v28 = vadd.f32 %v2983_v62, %v1688_v27 }
 0x240   :  { %2290 = vst.msk [vmem:[%s5725_s4 + $0x6a8] sm:$0xff] %vm2076_vm1, %v2033_v26 }
 0x241   :  { %2289 = vst.msk [vmem:[%s5725_s4 + $0x6a0] sm:$0xff] %vm2076_vm1, %v2032_v28  ;;  %v1697_v29 = vpop.xlane.xlu1 %1696 }
 0x242   :  { %v2035_v30 = vadd.f32 %v2983_v62, %v1697_v29  ;;  %v1694_v31 = vpop.xlane.xlu0 %1693 }
 0x243   :  { %v2034_v32 = vadd.f32 %v2983_v62, %v1694_v31 }
 0x244   :  { %2292 = vst.msk [vmem:[%s5725_s4 + $0x6b8] sm:$0xff] %vm2076_vm1, %v2035_v30 }
 0x245   :  { %2291 = vst.msk [vmem:[%s5725_s4 + $0x6b0] sm:$0xff] %vm2076_vm1, %v2034_v32  ;;  %v1703_v33 = vpop.xlane.xlu1 %1702 }
 0x246   :  { %v2037_v34 = vadd.f32 %v2983_v62, %v1703_v33  ;;  %v1700_v35 = vpop.xlane.xlu0 %1699 }
 0x247   :  { %v2036_v36 = vadd.f32 %v2983_v62, %v1700_v35 }
 0x248   :  { %2294 = vst.msk [vmem:[%s5725_s4 + $0x6c8] sm:$0xff] %vm2076_vm1, %v2037_v34 }
 0x249   :  { %2293 = vst.msk [vmem:[%s5725_s4 + $0x6c0] sm:$0xff] %vm2076_vm1, %v2036_v36  ;;  %v1709_v37 = vpop.xlane.xlu1 %1708 }
 0x24a   :  { %v2039_v38 = vadd.f32 %v2983_v62, %v1709_v37  ;;  %v1706_v39 = vpop.xlane.xlu0 %1705 }
 0x24b   :  { %v2038_v40 = vadd.f32 %v2983_v62, %v1706_v39 }
 0x24c   :  { %2296 = vst.msk [vmem:[%s5725_s4 + $0x6d8] sm:$0xff] %vm2076_vm1, %v2039_v38 }
 0x24d   :  { %2295 = vst.msk [vmem:[%s5725_s4 + $0x6d0] sm:$0xff] %vm2076_vm1, %v2038_v40  ;;  %v1715_v41 = vpop.xlane.xlu1 %1714 }
 0x24e   :  { %v2041_v42 = vadd.f32 %v2983_v62, %v1715_v41  ;;  %v1712_v43 = vpop.xlane.xlu0 %1711 }
 0x24f   :  { %v2040_v44 = vadd.f32 %v2983_v62, %v1712_v43 }
 0x250   :  { %2298 = vst.msk [vmem:[%s5725_s4 + $0x6e8] sm:$0xff] %vm2076_vm1, %v2041_v42 }
 0x251   :  { %2297 = vst.msk [vmem:[%s5725_s4 + $0x6e0] sm:$0xff] %vm2076_vm1, %v2040_v44  ;;  %v1721_v45 = vpop.xlane.xlu1 %1720 }
 0x252   :  { %v2043_v46 = vadd.f32 %v2983_v62, %v1721_v45  ;;  %v1718_v47 = vpop.xlane.xlu0 %1717 }
 0x253   :  { %v2042_v48 = vadd.f32 %v2983_v62, %v1718_v47 }
 0x254   :  { %2300 = vst.msk [vmem:[%s5725_s4 + $0x6f8] sm:$0xff] %vm2076_vm1, %v2043_v46 }
 0x255   :  { %2299 = vst.msk [vmem:[%s5725_s4 + $0x6f0] sm:$0xff] %vm2076_vm1, %v2042_v48  ;;  %v1727_v49 = vpop.xlane.xlu1 %1726 }
 0x256   :  { %v2045_v17 = vadd.f32 %v2983_v62, %v1727_v49  ;;  %v1724_v50 = vpop.xlane.xlu0 %1723 }
 0x257   :  { %v2044_v53 = vadd.f32 %v2983_v62, %v1724_v50 }
 0x258   :  { %2302 = vst.msk [vmem:[%s5725_s4 + $0x708] sm:$0xff] %vm2076_vm1, %v2045_v17 }
 0x259   :  { %2301 = vst.msk [vmem:[%s5725_s4 + $0x700] sm:$0xff] %vm2076_vm1, %v2044_v53  ;;  %v1733_v54 = vpop.xlane.xlu1 %1732 }
 0x25a   :  { %v2047_v2 = vadd.f32 %v2983_v62, %v1733_v54  ;;  %v1730_v55 = vpop.xlane.xlu0 %1729 }
 0x25b   :  { %v2046_v56 = vadd.f32 %v2983_v62, %v1730_v55 }
 0x25c   :  { %2304 = vst.msk [vmem:[%s5725_s4 + $0x718] sm:$0xff] %vm2076_vm1, %v2047_v2 }
 0x25d   :  { %2303 = vst.msk [vmem:[%s5725_s4 + $0x710] sm:$0xff] %vm2076_vm1, %v2046_v56  ;;  %v1739_v57 = vpop.xlane.xlu1 %1738 }
 0x25e   :  { %v2049_v58 = vadd.f32 %v2983_v62, %v1739_v57  ;;  %v1736_v59 = vpop.xlane.xlu0 %1735 }
 0x25f   :  { %v2048_v60 = vadd.f32 %v2983_v62, %v1736_v59 }
 0x260   :  { %2306 = vst.msk [vmem:[%s5725_s4 + $0x728] sm:$0xff] %vm2076_vm1, %v2049_v58 }
 0x261   :  { %2305 = vst.msk [vmem:[%s5725_s4 + $0x720] sm:$0xff] %vm2076_vm1, %v2048_v60  ;;  %v1745_v61 = vpop.xlane.xlu1 %1744 }
 0x262   :  { %v2051_v63 = vadd.f32 %v2983_v62, %v1745_v61  ;;  %v1742_v0 = vpop.xlane.xlu0 %1741 }
 0x263   :  { %v2050_v1 = vadd.f32 %v2983_v62, %v1742_v0 }
 0x264   :  { %2308 = vst.msk [vmem:[%s5725_s4 + $0x738] sm:$0xff] %vm2076_vm1, %v2051_v63 }
 0x265   :  { %2307 = vst.msk [vmem:[%s5725_s4 + $0x730] sm:$0xff] %vm2076_vm1, %v2050_v1  ;;  %v1751_v3 = vpop.xlane.xlu1 %1750 }
 0x266   :  { %v2053_v4 = vadd.f32 %v2983_v62, %v1751_v3  ;;  %v1748_v5 = vpop.xlane.xlu0 %1747 }
 0x267   :  { %v2052_v6 = vadd.f32 %v2983_v62, %v1748_v5 }
 0x268   :  { %2310 = vst.msk [vmem:[%s5725_s4 + $0x748] sm:$0xff] %vm2076_vm1, %v2053_v4 }
 0x269   :  { %2309 = vst.msk [vmem:[%s5725_s4 + $0x740] sm:$0xff] %vm2076_vm1, %v2052_v6  ;;  %v1757_v7 = vpop.xlane.xlu1 %1756 }
 0x26a   :  { %v2055_v8 = vadd.f32 %v2983_v62, %v1757_v7  ;;  %v1754_v9 = vpop.xlane.xlu0 %1753 }
 0x26b   :  { %v2054_v10 = vadd.f32 %v2983_v62, %v1754_v9 }
 0x26c   :  { %2312 = vst.msk [vmem:[%s5725_s4 + $0x758] sm:$0xff] %vm2076_vm1, %v2055_v8 }
 0x26d   :  { %2311 = vst.msk [vmem:[%s5725_s4 + $0x750] sm:$0xff] %vm2076_vm1, %v2054_v10  ;;  %v1763_v11 = vpop.xlane.xlu1 %1762 }
 0x26e   :  { %v2057_v12 = vadd.f32 %v2983_v62, %v1763_v11  ;;  %v1760_v13 = vpop.xlane.xlu0 %1759 }
 0x26f   :  { %v2056_v14 = vadd.f32 %v2983_v62, %v1760_v13 }
 0x270   :  { %2314 = vst.msk [vmem:[%s5725_s4 + $0x768] sm:$0xff] %vm2076_vm1, %v2057_v12 }
 0x271   :  { %2313 = vst.msk [vmem:[%s5725_s4 + $0x760] sm:$0xff] %vm2076_vm1, %v2056_v14  ;;  %v1769_v15 = vpop.xlane.xlu1 %1768 }
 0x272   :  { %v2059_v51 = vadd.f32 %v2983_v62, %v1769_v15  ;;  %v1766_v16 = vpop.xlane.xlu0 %1765 }
 0x273   :  { %v2058_v18 = vadd.f32 %v2983_v62, %v1766_v16 }
 0x274   :  { %2316 = vst.msk [vmem:[%s5725_s4 + $0x778] sm:$0xff] %vm2076_vm1, %v2059_v51 }
 0x275   :  { %2315 = vst.msk [vmem:[%s5725_s4 + $0x770] sm:$0xff] %vm2076_vm1, %v2058_v18  ;;  %v1775_v19 = vpop.xlane.xlu1 %1774 }
 0x276   :  { %v2061_v52 = vadd.f32 %v2983_v62, %v1775_v19  ;;  %v1772_v20 = vpop.xlane.xlu0 %1771 }
 0x277   :  { %v2060_v21 = vadd.f32 %v2983_v62, %v1772_v20 }
 0x278   :  { %2318 = vst.msk [vmem:[%s5725_s4 + $0x788] sm:$0xff] %vm2076_vm1, %v2061_v52 }
 0x279   :  { %2317 = vst.msk [vmem:[%s5725_s4 + $0x780] sm:$0xff] %vm2076_vm1, %v2060_v21  ;;  %v1781_v22 = vpop.xlane.xlu1 %1780 }
 0x27a   :  { %v2063_v23 = vadd.f32 %v2983_v62, %v1781_v22  ;;  %v1778_v24 = vpop.xlane.xlu0 %1777 }
 0x27b   :  { %v2062_v25 = vadd.f32 %v2983_v62, %v1778_v24 }
 0x27c   :  { %2320 = vst.msk [vmem:[%s5725_s4 + $0x798] sm:$0xff] %vm2076_vm1, %v2063_v23 }
 0x27d   :  { %2319 = vst.msk [vmem:[%s5725_s4 + $0x790] sm:$0xff] %vm2076_vm1, %v2062_v25  ;;  %v1787_v26 = vpop.xlane.xlu1 %1786 }
 0x27e   :  { %v2065_v27 = vadd.f32 %v2983_v62, %v1787_v26  ;;  %v1784_v28 = vpop.xlane.xlu0 %1783 }
 0x27f   :  { %v2064_v29 = vadd.f32 %v2983_v62, %v1784_v28 }
 0x280   :  { %2322 = vst.msk [vmem:[%s5725_s4 + $0x7a8] sm:$0xff] %vm2076_vm1, %v2065_v27 }
 0x281   :  { %2321 = vst.msk [vmem:[%s5725_s4 + $0x7a0] sm:$0xff] %vm2076_vm1, %v2064_v29  ;;  %v1793_v30 = vpop.xlane.xlu1 %1792 }
 0x282   :  { %v2067_v31 = vadd.f32 %v2983_v62, %v1793_v30  ;;  %v1790_v32 = vpop.xlane.xlu0 %1789 }
 0x283   :  { %v2066_v33 = vadd.f32 %v2983_v62, %v1790_v32 }
 0x284   :  { %2324 = vst.msk [vmem:[%s5725_s4 + $0x7b8] sm:$0xff] %vm2076_vm1, %v2067_v31 }
 0x285   :  { %2323 = vst.msk [vmem:[%s5725_s4 + $0x7b0] sm:$0xff] %vm2076_vm1, %v2066_v33  ;;  %v1799_v34 = vpop.xlane.xlu1 %1798 }
 0x286   :  { %v2069_v35 = vadd.f32 %v2983_v62, %v1799_v34  ;;  %v1796_v36 = vpop.xlane.xlu0 %1795 }
 0x287   :  { %v2068_v37 = vadd.f32 %v2983_v62, %v1796_v36 }
 0x288   :  { %2326 = vst.msk [vmem:[%s5725_s4 + $0x7c8] sm:$0xff] %vm2076_vm1, %v2069_v35 }
 0x289   :  { %2325 = vst.msk [vmem:[%s5725_s4 + $0x7c0] sm:$0xff] %vm2076_vm1, %v2068_v37  ;;  %v1805_v38 = vpop.xlane.xlu1 %1804 }
 0x28a   :  { %v2071_v39 = vadd.f32 %v2983_v62, %v1805_v38  ;;  %v1802_v40 = vpop.xlane.xlu0 %1801 }
 0x28b   :  { %v2070_v41 = vadd.f32 %v2983_v62, %v1802_v40 }
 0x28c   :  { %2328 = vst.msk [vmem:[%s5725_s4 + $0x7d8] sm:$0xff] %vm2076_vm1, %v2071_v39 }
 0x28d   :  { %2327 = vst.msk [vmem:[%s5725_s4 + $0x7d0] sm:$0xff] %vm2076_vm1, %v2070_v41  ;;  %v1811_v42 = vpop.xlane.xlu1 %1810 }
 0x28e   :  { %v2073_v43 = vadd.f32 %v2983_v62, %v1811_v42  ;;  %v1808_v44 = vpop.xlane.xlu0 %1807 }
 0x28f   :  { %v2072_v45 = vadd.f32 %v2983_v62, %v1808_v44 }
 0x290   :  { %2330 = vst.msk [vmem:[%s5725_s4 + $0x7e8] sm:$0xff] %vm2076_vm1, %v2073_v43 }
 0x291   :  { %2329 = vst.msk [vmem:[%s5725_s4 + $0x7e0] sm:$0xff] %vm2076_vm1, %v2072_v45  ;;  %v1817_v46 = vpop.xlane.xlu1 %1816 }
 0x292   :  { %v2075_v47 = vadd.f32 %v2983_v62, %v1817_v46  ;;  %v1814_v48 = vpop.xlane.xlu0 %1813 }
 0x293   :  { %v2074_v49 = vadd.f32 %v2983_v62, %v1814_v48 }
 0x294   :  { %2332 = vst.msk [vmem:[%s5725_s4 + $0x7f8] sm:$0xff] %vm2076_vm1, %v2075_v47 }
 0x295   :  { %2331 = vst.msk [vmem:[%s5725_s4 + $0x7f0] sm:$0xff] %vm2076_vm1, %v2074_v49 }

</bundles_post_ra>
